<compile_context>
chip_gen: v7x
topology: tpu7x:2x2x1
jax: 0.10.0
libtpu: 0.0.40
codegen_flags: <defaults>
</compile_context>

<pallas_src>
import functools
import math

import jax
import jax.numpy as jnp
from jax.experimental import pallas as pl
from jax.experimental.pallas import tpu as pltpu

EPS = 1e-5            # torch.nn.LayerNorm default eps
NEG_INF = -1e30
VMEM_LIMIT_BYTES = 64 * 1024 * 1024   # > scoped defaults, <= v7x physical


def _layernorm_f32(x, g, b):
    mu = jnp.mean(x, axis=-1, keepdims=True)
    var = jnp.mean((x - mu) ** 2, axis=-1, keepdims=True)
    return (x - mu) * jax.lax.rsqrt(var + EPS) * g + b


# --------------------- fused LayerNorm + MHA + residual ----------------------
def _mha_kernel(n_heads, causal, normalize_kv, has_mask, *args):
    if has_mask:
        (xq_ref, kv_ref, kvm_ref, g_ref, b_ref, wq_ref, bq_ref,
         wkv_ref, bkv_ref, wo_ref, bo_ref,
         o_ref, kc_ref, vc_ref, ctx_ref) = args
    else:
        (xq_ref, kv_ref, g_ref, b_ref, wq_ref, bq_ref,
         wkv_ref, bkv_ref, wo_ref, bo_ref,
         o_ref, kc_ref, vc_ref, ctx_ref) = args
        kvm_ref = None

    tq, D = xq_ref.shape
    S = kv_ref.shape[0]
    dh = D // n_heads
    scale = 1.0 / math.sqrt(dh)
    i = pl.program_id(1)

    # ---- per-batch K/V LayerNorm + projection, computed once (i == 0) into
    #      persistent bf16 VMEM scratch; reused by every query tile ----
    @pl.when(i == 0)
    def _():
        xkv = kv_ref[...].astype(jnp.float32)
        if normalize_kv:                    # self-attention: K/V come from LN(x) too
            xkv = _layernorm_f32(xkv, g_ref[...], b_ref[...])
        xkv_b = xkv.astype(jnp.bfloat16)
        wkv = wkv_ref[...]                  # (D, 2D) bf16 (one DMA stream)
        bkv = bkv_ref[...]                  # (1, 2D) f32
        k = jnp.dot(xkv_b, wkv[:, :D], preferred_element_type=jnp.float32) + bkv[:, :D]
        kc_ref[...] = k.astype(jnp.bfloat16)
        v = jnp.dot(xkv_b, wkv[:, D:], preferred_element_type=jnp.float32) + bkv[:, D:]
        vc_ref[...] = v.astype(jnp.bfloat16)

    # ---- query-side LayerNorm + Q projection (per query tile) ----
    # Residual uses the NORMED query input, exactly as in the reference forward.
    xqn = _layernorm_f32(xq_ref[...].astype(jnp.float32), g_ref[...], b_ref[...])
    q = jnp.dot(xqn.astype(jnp.bfloat16), wq_ref[...],
                preferred_element_type=jnp.float32) + bq_ref[...]
    q_b = q.astype(jnp.bfloat16)

    if causal:
        # Flash-style online softmax over KV chunks; chunks entirely above the
        # diagonal are skipped (loop bound = i + 1). S == T for self-attention.
        tkv = tq
        num_chunks = i + 1
        q0 = i * tq
        row_ids = q0 + jax.lax.broadcasted_iota(jnp.int32, (tq, tkv), 0)
        col_iota = jax.lax.broadcasted_iota(jnp.int32, (tq, tkv), 1)

        for h in range(n_heads):
            sl = slice(h * dh, (h + 1) * dh)
            q_h = q_b[:, sl]

            def body(j, carry, q_h=q_h, sl=sl):
                m_i, l_i, acc = carry
                off = pl.multiple_of(j * tkv, tkv)
                k_c = kc_ref[pl.ds(off, tkv), sl]
                v_c = vc_ref[pl.ds(off, tkv), sl]
                s = jax.lax.dot_general(q_h, k_c, (((1,), (1,)), ((), ())),
                                        preferred_element_type=jnp.float32) * scale
                s = jnp.where(j * tkv + col_iota <= row_ids, s, NEG_INF)
                m_new = jnp.maximum(m_i, jnp.max(s, axis=-1, keepdims=True))
                alpha = jnp.exp(m_i - m_new)
                p = jnp.exp(s - m_new)
                l_new = alpha * l_i + jnp.sum(p, axis=-1, keepdims=True)
                acc_new = alpha * acc + jnp.dot(p.astype(jnp.bfloat16), v_c,
                                                preferred_element_type=jnp.float32)
                return m_new, l_new, acc_new

            m0 = jnp.full((tq, 1), NEG_INF, jnp.float32)
            l0 = jnp.zeros((tq, 1), jnp.float32)
            a0 = jnp.zeros((tq, dh), jnp.float32)
            _, l_i, acc = jax.lax.fori_loop(0, num_chunks, body, (m0, l0, a0))
            ctx_ref[:, sl] = acc * pl.reciprocal(l_i, approx=True)
    else:
        # Cross-attention: one-shot softmax over the full encoder length with an
        # additive key-mask bias (built once, hoisted out of the head loop).
        if has_mask:
            allow = kvm_ref[...].astype(jnp.int32) != 0            # (1, S)
            bias = jnp.where(allow, 0.0, NEG_INF).astype(jnp.float32)
        else:
            bias = None
        for h in range(n_heads):
            sl = slice(h * dh, (h + 1) * dh)
            s = jax.lax.dot_general(q_b[:, sl], kc_ref[:, sl],
                                    (((1,), (1,)), ((), ())),
                                    preferred_element_type=jnp.float32) * scale
            if bias is not None:
                s = s + bias
            s = s - jnp.max(s, axis=-1, keepdims=True)
            p = jnp.exp(s)
            p = p * pl.reciprocal(jnp.sum(p, axis=-1, keepdims=True), approx=True)
            ctx_ref[:, sl] = jnp.dot(p.astype(jnp.bfloat16), vc_ref[:, sl],
                                     preferred_element_type=jnp.float32)

    # Single full-width output projection (one K=D matmul instead of n_heads K=dh).
    attn = jnp.dot(ctx_ref[...].astype(jnp.bfloat16), wo_ref[...],
                   preferred_element_type=jnp.float32)
    o_ref[...] = (xqn + attn + bo_ref[...]).astype(o_ref.dtype)


# ---------------- fused LayerNorm + MLP + residual (tiled over DM) -----------
def _mlp_kernel(x_ref, g_ref, b_ref, w1_ref, b1_ref, w2_ref, b2_ref, o_ref,
                xn_ref, acc_ref):
    k = pl.program_id(2)

    @pl.when(k == 0)
    def _():
        xn_ref[...] = _layernorm_f32(x_ref[...].astype(jnp.float32),
                                     g_ref[...], b_ref[...])
        acc_ref[...] = jnp.zeros_like(acc_ref)

    h = jnp.dot(xn_ref[...].astype(jnp.bfloat16), w1_ref[...],
                preferred_element_type=jnp.float32) + b1_ref[...]
    h = jnp.maximum(h, 0.0)
    acc_ref[...] += jnp.dot(h.astype(jnp.bfloat16), w2_ref[...],
                            preferred_element_type=jnp.float32)

    @pl.when(k == pl.num_programs(2) - 1)
    def _():
        o_ref[...] = (xn_ref[...] + acc_ref[...] + b2_ref[...]).astype(o_ref.dtype)


# --------------------------------- wrappers ----------------------------------
def _q_tile(T):
    for t in (256, 128):            # cap at 256 (v7x VMEM budget)
        if T % t == 0:
            return t
    return T


def _dm_tile(DM):
    for t in (512, 256, 128):
        if DM % t == 0:
            return t
    return DM


def fused_mha(x_q, x_kv, kv_mask, ln_g, ln_b, p, n_heads, *, causal, normalize_kv):
    B, T, D = x_q.shape
    S = x_kv.shape[1]
    tq = _q_tile(T)
    has_mask = kv_mask is not None
    kern = functools.partial(_mha_kernel, n_heads, causal, normalize_kv, has_mask)

    def wspec(shape):   # constant-index params: single-buffered
        return pl.BlockSpec(shape, lambda b, i: (0, 0), pipeline_mode=pl.Buffered(1))

    in_specs = [
        pl.BlockSpec((None, tq, D), lambda b, i: (b, i, 0)),   # query tile
        pl.BlockSpec((None, S, D), lambda b, i: (b, 0, 0)),    # full K/V source (per batch)
    ]
    inputs = [x_q, x_kv]
    if has_mask:
        in_specs.append(pl.BlockSpec((None, 1, S), lambda b, i: (b, 0, 0)))  # int8 mask row
        inputs.append(kv_mask)
    in_specs += [
        wspec((1, D)), wspec((1, D)),                          # LN gamma/beta
        wspec((D, D)), wspec((1, D)),                          # Wq, bq
        wspec((D, 2 * D)), wspec((1, 2 * D)),                  # Wkv, bkv (fused)
        wspec((D, D)), wspec((1, D)),                          # Wo, bo
    ]
    inputs += [ln_g, ln_b, p["wq"], p["bq"], p["wkv"], p["bkv"], p["wo"], p["bo"]]

    return pl.pallas_call(
        kern,
        out_shape=jax.ShapeDtypeStruct((B, T, D), x_q.dtype),
        grid=(B, T // tq),
        in_specs=in_specs,
        out_specs=pl.BlockSpec((None, tq, D), lambda b, i: (b, i, 0)),
        scratch_shapes=[
            pltpu.VMEM((S, D), jnp.bfloat16),   # per-batch K cache
            pltpu.VMEM((S, D), jnp.bfloat16),   # per-batch V cache
            pltpu.VMEM((tq, D), jnp.float32),   # per-tile head-context buffer
        ],
        compiler_params=pltpu.CompilerParams(
            dimension_semantics=("parallel", "arbitrary"),
            vmem_limit_bytes=VMEM_LIMIT_BYTES),
    )(*inputs)


def fused_mlp(x, ln_g, ln_b, p):
    B, T, D = x.shape
    DM = p["w1"].shape[1]
    tq = _q_tile(T)
    tdm = _dm_tile(DM)

    def cspec(shape):   # constant-index params: single-buffered
        return pl.BlockSpec(shape, lambda b, i, k: (0, 0), pipeline_mode=pl.Buffered(1))

    return pl.pallas_call(
        _mlp_kernel,
        out_shape=jax.ShapeDtypeStruct((B, T, D), x.dtype),
        grid=(B, T // tq, DM // tdm),
        in_specs=[
            pl.BlockSpec((None, tq, D), lambda b, i, k: (b, i, 0)),   # x tile
            cspec((1, D)), cspec((1, D)),                             # LN gamma/beta
            pl.BlockSpec((D, tdm), lambda b, i, k: (0, k)),           # W1 chunk
            pl.BlockSpec((1, tdm), lambda b, i, k: (0, k)),           # b1 chunk
            pl.BlockSpec((tdm, D), lambda b, i, k: (k, 0)),           # W2 chunk
            cspec((1, D)),                                            # b2
        ],
        out_specs=pl.BlockSpec((None, tq, D), lambda b, i, k: (b, i, 0)),
        scratch_shapes=[pltpu.VMEM((tq, D), jnp.float32),             # LN(x) cache
                        pltpu.VMEM((tq, D), jnp.float32)],            # output accumulator
        compiler_params=pltpu.CompilerParams(
            dimension_semantics=("parallel", "parallel", "arbitrary"),
            vmem_limit_bytes=VMEM_LIMIT_BYTES),
    )(x, ln_g, ln_b, p["w1"], p["b1"], p["w2"], p["b2"])


@functools.partial(jax.jit, static_argnames=("n_heads",))
def decoder_block(x, mem, mem_mask, params, n_heads):
    """x: (B,T,D), mem: (B,S,D), mem_mask: (B,S) bool (True = attend) or None."""
    # self attention: LN(x) -> causal MHA -> + LN(x)   (no mask input; causal in-kernel)
    z = fused_mha(x, x, None, params["ln1_g"], params["ln1_b"],
                  params["self_attn"], n_heads, causal=True, normalize_kv=True)

    # cross attention: LN(z) -> MHA over mem (masked) -> + LN(z)
    kvm = None if mem_mask is None else mem_mask.astype(jnp.int8)[:, None, :]
    c = fused_mha(z, mem, kvm, params["ln2_g"], params["ln2_b"],
                  params["cross_attn"], n_heads, causal=False, normalize_kv=False)

    # MLP: LN(c) -> Linear/ReLU/Linear -> + LN(c)
    return fused_mlp(c, params["ln3_g"], params["ln3_b"], params["mlp"])


# ------------------------------ parameter utils -------------------------------
def _init_params(key, d_model, dim_mlp):
    ks = jax.random.split(key, 6)
    w = lambda k, shape: jax.random.normal(k, shape, jnp.float32) * 0.05

    def attn_params(k):
        kk = jax.random.split(k, 8)
        return {
            "wq": w(kk[0], (d_model, d_model)), "bq": w(kk[1], (1, d_model)),
            "wk": w(kk[2], (d_model, d_model)), "bk": w(kk[3], (1, d_model)),
            "wv": w(kk[4], (d_model, d_model)), "bv": w(kk[5], (1, d_model)),
            "wo": w(kk[6], (d_model, d_model)), "bo": w(kk[7], (1, d_model)),
        }

    return {
        "ln1_g": jnp.ones((1, d_model), jnp.float32), "ln1_b": jnp.zeros((1, d_model), jnp.float32),
        "ln2_g": jnp.ones((1, d_model), jnp.float32), "ln2_b": jnp.zeros((1, d_model), jnp.float32),
        "ln3_g": jnp.ones((1, d_model), jnp.float32), "ln3_b": jnp.zeros((1, d_model), jnp.float32),
        "self_attn": attn_params(ks[0]),
        "cross_attn": attn_params(ks[1]),
        "mlp": {
            "w1": w(ks[2], (d_model, dim_mlp)), "b1": w(ks[3], (1, dim_mlp)),
            "w2": w(ks[4], (dim_mlp, d_model)), "b2": w(ks[5], (1, d_model)),
        },
    }


def _prepare_kernel_params(p):
    """Fuse K/V weights and cast matmul weights to bf16 for the kernels."""
    def attn(a):
        return {
            "wq": a["wq"].astype(jnp.bfloat16), "bq": a["bq"],
            "wkv": jnp.concatenate([a["wk"], a["wv"]], axis=1).astype(jnp.bfloat16),
            "bkv": jnp.concatenate([a["bk"], a["bv"]], axis=1),
            "wo": a["wo"].astype(jnp.bfloat16), "bo": a["bo"],
        }

    return {
        "ln1_g": p["ln1_g"], "ln1_b": p["ln1_b"],
        "ln2_g": p["ln2_g"], "ln2_b": p["ln2_b"],
        "ln3_g": p["ln3_g"], "ln3_b": p["ln3_b"],
        "self_attn": attn(p["self_attn"]),
        "cross_attn": attn(p["cross_attn"]),
        "mlp": {"w1": p["mlp"]["w1"].astype(jnp.bfloat16), "b1": p["mlp"]["b1"],
                "w2": p["mlp"]["w2"].astype(jnp.bfloat16), "b2": p["mlp"]["b2"]},
    }


# ----------------------------- pure-JAX reference -----------------------------
def _bf16_mm(a, w):
    return jnp.dot(a.astype(jnp.bfloat16), w.astype(jnp.bfloat16),
                   preferred_element_type=jnp.float32)


def _ln_ref(x, g, b):
    mu = x.mean(-1, keepdims=True)
    var = ((x - mu) ** 2).mean(-1, keepdims=True)
    return (x - mu) * jax.lax.rsqrt(var + EPS) * g.reshape(-1) + b.reshape(-1)


def _mha_ref(q_in, kv_in, mask, p, n_heads):
    B, T, D = q_in.shape
    S = kv_in.shape[1]
    dh = D // n_heads
    q = _bf16_mm(q_in, p["wq"]) + p["bq"]
    k = _bf16_mm(kv_in, p["wk"]) + p["bk"]
    v = _bf16_mm(kv_in, p["wv"]) + p["bv"]
    q = q.reshape(B, T, n_heads, dh)
    k = k.reshape(B, S, n_heads, dh)
    v = v.reshape(B, S, n_heads, dh)
    s = jnp.einsum("bthd,bshd->bhts", q.astype(jnp.bfloat16), k.astype(jnp.bfloat16),
                   preferred_element_type=jnp.float32) / math.sqrt(dh)
    s = s + jnp.where(mask[:, None] > 0, 0.0, NEG_INF)
    a = jax.nn.softmax(s, axis=-1)
    ctx = jnp.einsum("bhts,bshd->bthd", a.astype(jnp.bfloat16), v.astype(jnp.bfloat16),
                     preferred_element_type=jnp.float32).reshape(B, T, D)
    return q_in + _bf16_mm(ctx, p["wo"]) + p["bo"]


def _ref_block(x, mem, mem_mask, params, n_heads):
    B, T, D = x.shape
    S = mem.shape[1]
    xn = _ln_ref(x, params["ln1_g"], params["ln1_b"])
    causal = jnp.broadcast_to(jnp.tril(jnp.ones((T, T), jnp.float32))[None], (B, T, T))
    z = _mha_ref(xn, xn, causal, params["self_attn"], n_heads)
    zn = _ln_ref(z, params["ln2_g"], params["ln2_b"])
    if mem_mask is None:
        cmask = jnp.ones((B, T, S), jnp.float32)
    else:
        cmask = jnp.broadcast_to(mem_mask.astype(jnp.float32)[:, None, :], (B, T, S))
    c = _mha_ref(zn, mem, cmask, params["cross_attn"], n_heads)
    cn = _ln_ref(c, params["ln3_g"], params["ln3_b"])
    h = jnp.maximum(_bf16_mm(cn, params["mlp"]["w1"]) + params["mlp"]["b1"], 0.0)
    return cn + _bf16_mm(h, params["mlp"]["w2"]) + params["mlp"]["b2"]


# ------------------------------------ main ------------------------------------
if __name__ == "__main__":
    B, T, S, D, H, DM = 2, 8, 8, 32, 4, 64   # batch, dec seq, enc seq, d_model, heads, mlp dim
    key = jax.random.PRNGKey(0)
    kx, km, kp = jax.random.split(key, 3)

    x = jax.random.normal(kx, (B, T, D), jnp.float32)
    mem = jax.random.normal(km, (B, S, D), jnp.float32)
    # True = element participates; keep >=1 True per row (precondition of the mask).
    mem_mask = jnp.array([[True] * S, [True] * 5 + [False] * (S - 5)], dtype=bool)

    params = _init_params(kp, D, DM)
    kernel_params = _prepare_kernel_params(params)

    out = decoder_block(x, mem, mem_mask, kernel_params, n_heads=H)
    out = jax.block_until_ready(out)

    ref = _ref_block(x, mem, mem_mask, params, n_heads=H)
    assert out.shape == (B, T, D)
    max_err = jnp.max(jnp.abs(out - ref))
    assert jnp.allclose(out, ref, atol=5e-3, rtol=5e-3), f"mismatch vs reference: {max_err}"

    print("KERNEL_OK")
</pallas_src>

<mosaic_0001>
module attributes {stable_mosaic.version = 11 : i64} {
  func.func @_mha_kernel(%arg0: i32, %arg1: i32, %arg2: memref<1x8x32xf32, #tpu.memory_space<vmem>>, %arg3: memref<1x8x32xf32, #tpu.memory_space<vmem>>, %arg4: memref<1x1x8xi8, #tpu.memory_space<vmem>>, %arg5: memref<1x32xf32, #tpu.memory_space<vmem>>, %arg6: memref<1x32xf32, #tpu.memory_space<vmem>>, %arg7: memref<32x32xbf16, #tpu.memory_space<vmem>>, %arg8: memref<1x32xf32, #tpu.memory_space<vmem>>, %arg9: memref<32x64xbf16, #tpu.memory_space<vmem>>, %arg10: memref<1x64xf32, #tpu.memory_space<vmem>>, %arg11: memref<32x32xbf16, #tpu.memory_space<vmem>>, %arg12: memref<1x32xf32, #tpu.memory_space<vmem>>, %arg13: memref<1x8x32xf32, #tpu.memory_space<vmem>>, %arg14: memref<8x32xbf16, #tpu.memory_space<vmem>>, %arg15: memref<8x32xbf16, #tpu.memory_space<vmem>>, %arg16: memref<8x32xf32, #tpu.memory_space<vmem>>) attributes {dimension_semantics = [#tpu.dimension_semantics<parallel>, #tpu.dimension_semantics<arbitrary>], iteration_bounds = array<i64: 2, 1>, scalar_prefetch = 0 : i64, scratch_operands = 3 : i64, tpu.core_type = #tpu.core_type<tc>, window_params = [{transform_indices = @transform_0, window_bounds = array<i64: 1, 8, 32>}, {transform_indices = @transform_1, window_bounds = array<i64: 1, 8, 32>}, {transform_indices = @transform_2, window_bounds = array<i64: 1, 1, 8>}, {pipeline_mode = #tpu.pipeline_mode<synchronous>, transform_indices = @transform_3, window_bounds = array<i64: 1, 32>}, {pipeline_mode = #tpu.pipeline_mode<synchronous>, transform_indices = @transform_4, window_bounds = array<i64: 1, 32>}, {pipeline_mode = #tpu.pipeline_mode<synchronous>, transform_indices = @transform_5, window_bounds = array<i64: 32, 32>}, {pipeline_mode = #tpu.pipeline_mode<synchronous>, transform_indices = @transform_6, window_bounds = array<i64: 1, 32>}, {pipeline_mode = #tpu.pipeline_mode<synchronous>, transform_indices = @transform_7, window_bounds = array<i64: 32, 64>}, {pipeline_mode = #tpu.pipeline_mode<synchronous>, transform_indices = @transform_8, window_bounds = array<i64: 1, 64>}, {pipeline_mode = #tpu.pipeline_mode<synchronous>, transform_indices = @transform_9, window_bounds = array<i64: 32, 32>}, {pipeline_mode = #tpu.pipeline_mode<synchronous>, transform_indices = @transform_10, window_bounds = array<i64: 1, 32>}, {transform_indices = @transform_11, window_bounds = array<i64: 1, 8, 32>}]} {
    %c0_i32 = arith.constant 0 : i32
    %0 = arith.cmpi eq, %arg1, %c0_i32 : i32
    %1 = arith.extui %0 : i1 to i32
    %c0_i32_0 = arith.constant 0 : i32
    %2 = arith.cmpi ne, %1, %c0_i32_0 : i32
    scf.if %2 {
      %c0_73 = arith.constant 0 : index
      %c0_74 = arith.constant 0 : index
      %c0_75 = arith.constant 0 : index
      %139 = vector.load %arg3[%c0_73, %c0_74, %c0_75] : memref<1x8x32xf32, #tpu.memory_space<vmem>>, vector<1x8x32xf32>
      %140 = vector.shape_cast %139 : vector<1x8x32xf32> to vector<8x32xf32>
      %141 = arith.truncf %140 : vector<8x32xf32> to vector<8x32xbf16>
      %c0_76 = arith.constant 0 : index
      %c0_77 = arith.constant 0 : index
      %142 = vector.load %arg9[%c0_76, %c0_77] : memref<32x64xbf16, #tpu.memory_space<vmem>>, vector<32x64xbf16>
      %c0_78 = arith.constant 0 : index
      %c0_79 = arith.constant 0 : index
      %143 = vector.load %arg10[%c0_78, %c0_79] : memref<1x64xf32, #tpu.memory_space<vmem>>, vector<1x64xf32>
      %144 = vector.extract_strided_slice %142 {offsets = [0, 0], sizes = [32, 32], strides = [1, 1]} : vector<32x64xbf16> to vector<32x32xbf16>
      %cst_80 = arith.constant dense<0.000000e+00> : vector<8x32xf32>
      %145 = tpu.matmul %141, %144, %cst_80 {dimension_numbers = #tpu.dot_dimension_numbers<[1], [0], [0], [1], [0, 0, 1, 1], [], []>} : vector<8x32xbf16>, vector<32x32xbf16>, vector<8x32xf32> -> vector<8x32xf32>
      %146 = vector.extract_strided_slice %143 {offsets = [0, 0], sizes = [1, 32], strides = [1, 1]} : vector<1x64xf32> to vector<1x32xf32>
      %147 = vector.broadcast %146 : vector<1x32xf32> to vector<8x32xf32>
      %148 = arith.addf %145, %147 : vector<8x32xf32>
      %149 = arith.truncf %148 : vector<8x32xf32> to vector<8x32xbf16>
      %c0_81 = arith.constant 0 : index
      %c0_82 = arith.constant 0 : index
      %150 = vector.load %arg14[%c0_81, %c0_82] : memref<8x32xbf16, #tpu.memory_space<vmem>>, vector<8x32xbf16>
      tpu.vector_store %arg14[%c0_81, %c0_82], %149 {strides = array<i32>} : memref<8x32xbf16, #tpu.memory_space<vmem>>, vector<8x32xbf16>,
      %151 = vector.extract_strided_slice %142 {offsets = [0, 32], sizes = [32, 32], strides = [1, 1]} : vector<32x64xbf16> to vector<32x32xbf16>
      %cst_83 = arith.constant dense<0.000000e+00> : vector<8x32xf32>
      %152 = tpu.matmul %141, %151, %cst_83 {dimension_numbers = #tpu.dot_dimension_numbers<[1], [0], [0], [1], [0, 0, 1, 1], [], []>} : vector<8x32xbf16>, vector<32x32xbf16>, vector<8x32xf32> -> vector<8x32xf32>
      %153 = vector.extract_strided_slice %143 {offsets = [0, 32], sizes = [1, 32], strides = [1, 1]} : vector<1x64xf32> to vector<1x32xf32>
      %154 = vector.broadcast %153 : vector<1x32xf32> to vector<8x32xf32>
      %155 = arith.addf %152, %154 : vector<8x32xf32>
      %156 = arith.truncf %155 : vector<8x32xf32> to vector<8x32xbf16>
      %c0_84 = arith.constant 0 : index
      %c0_85 = arith.constant 0 : index
      %157 = vector.load %arg15[%c0_84, %c0_85] : memref<8x32xbf16, #tpu.memory_space<vmem>>, vector<8x32xbf16>
      tpu.vector_store %arg15[%c0_84, %c0_85], %156 {strides = array<i32>} : memref<8x32xbf16, #tpu.memory_space<vmem>>, vector<8x32xbf16>,
    } else {
    }
    %c0 = arith.constant 0 : index
    %c0_1 = arith.constant 0 : index
    %c0_2 = arith.constant 0 : index
    %3 = vector.load %arg2[%c0, %c0_1, %c0_2] : memref<1x8x32xf32, #tpu.memory_space<vmem>>, vector<1x8x32xf32>
    %4 = vector.shape_cast %3 : vector<1x8x32xf32> to vector<8x32xf32>
    %c0_3 = arith.constant 0 : index
    %c0_4 = arith.constant 0 : index
    %5 = vector.load %arg5[%c0_3, %c0_4] : memref<1x32xf32, #tpu.memory_space<vmem>>, vector<1x32xf32>
    %c0_5 = arith.constant 0 : index
    %c0_6 = arith.constant 0 : index
    %6 = vector.load %arg6[%c0_5, %c0_6] : memref<1x32xf32, #tpu.memory_space<vmem>>, vector<1x32xf32>
    %cst = arith.constant dense<0.000000e+00> : vector<8xf32>
    %7 = vector.multi_reduction <add>, %4, %cst [1] : vector<8x32xf32> to vector<8xf32>
    %8 = vector.shape_cast %7 : vector<8xf32> to vector<8x1xf32>
    %cst_7 = arith.constant 3.200000e+01 : f32
    %9 = vector.broadcast %cst_7 : f32 to vector<8x1xf32>
    %10 = arith.divf %8, %9 : vector<8x1xf32>
    %11 = vector.broadcast %10 : vector<8x1xf32> to vector<8x32xf32>
    %12 = arith.subf %4, %11 : vector<8x32xf32>
    %13 = arith.mulf %12, %12 : vector<8x32xf32>
    %cst_8 = arith.constant dense<0.000000e+00> : vector<8xf32>
    %14 = vector.multi_reduction <add>, %13, %cst_8 [1] : vector<8x32xf32> to vector<8xf32>
    %15 = vector.shape_cast %14 : vector<8xf32> to vector<8x1xf32>
    %cst_9 = arith.constant 3.200000e+01 : f32
    %16 = vector.broadcast %cst_9 : f32 to vector<8x1xf32>
    %17 = arith.divf %15, %16 : vector<8x1xf32>
    %18 = vector.broadcast %10 : vector<8x1xf32> to vector<8x32xf32>
    %19 = arith.subf %4, %18 : vector<8x32xf32>
    %cst_10 = arith.constant 9.99999974E-6 : f32
    %20 = vector.broadcast %cst_10 : f32 to vector<8x1xf32>
    %21 = arith.addf %17, %20 : vector<8x1xf32>
    %22 = math.rsqrt %21 : vector<8x1xf32>
    %23 = vector.broadcast %22 : vector<8x1xf32> to vector<8x32xf32>
    %24 = arith.mulf %19, %23 : vector<8x32xf32>
    %25 = vector.broadcast %5 : vector<1x32xf32> to vector<8x32xf32>
    %26 = arith.mulf %24, %25 : vector<8x32xf32>
    %27 = vector.broadcast %6 : vector<1x32xf32> to vector<8x32xf32>
    %28 = arith.addf %26, %27 : vector<8x32xf32>
    %29 = arith.truncf %28 : vector<8x32xf32> to vector<8x32xbf16>
    %c0_11 = arith.constant 0 : index
    %c0_12 = arith.constant 0 : index
    %30 = vector.load %arg7[%c0_11, %c0_12] : memref<32x32xbf16, #tpu.memory_space<vmem>>, vector<32x32xbf16>
    %cst_13 = arith.constant dense<0.000000e+00> : vector<8x32xf32>
    %31 = tpu.matmul %29, %30, %cst_13 {dimension_numbers = #tpu.dot_dimension_numbers<[1], [0], [0], [1], [0, 0, 1, 1], [], []>} : vector<8x32xbf16>, vector<32x32xbf16>, vector<8x32xf32> -> vector<8x32xf32>
    %c0_14 = arith.constant 0 : index
    %c0_15 = arith.constant 0 : index
    %32 = vector.load %arg8[%c0_14, %c0_15] : memref<1x32xf32, #tpu.memory_space<vmem>>, vector<1x32xf32>
    %33 = vector.broadcast %32 : vector<1x32xf32> to vector<8x32xf32>
    %34 = arith.addf %31, %33 : vector<8x32xf32>
    %35 = arith.truncf %34 : vector<8x32xf32> to vector<8x32xbf16>
    %c0_16 = arith.constant 0 : index
    %c0_17 = arith.constant 0 : index
    %c0_18 = arith.constant 0 : index
    %36 = vector.load %arg4[%c0_16, %c0_17, %c0_18] : memref<1x1x8xi8, #tpu.memory_space<vmem>>, vector<1x1x8xi8>
    %37 = vector.shape_cast %36 : vector<1x1x8xi8> to vector<1x8xi8>
    %38 = arith.extsi %37 : vector<1x8xi8> to vector<1x8xi32>
    %c0_i32_19 = arith.constant 0 : i32
    %39 = vector.broadcast %c0_i32_19 : i32 to vector<1x8xi32>
    %40 = arith.cmpi ne, %38, %39 : vector<1x8xi32>
    %cst_20 = arith.constant 0.000000e+00 : f32
    %cst_21 = arith.constant -1.000000e+30 : f32
    %41 = vector.broadcast %cst_20 : f32 to vector<1x8xf32>
    %42 = vector.broadcast %cst_21 : f32 to vector<1x8xf32>
    %43 = arith.select %40, %41, %42 : vector<1x8xi1>, vector<1x8xf32>
    %44 = vector.extract_strided_slice %35 {offsets = [0, 0], sizes = [8, 8], strides = [1, 1]} : vector<8x32xbf16> to vector<8x8xbf16>
    %c0_22 = arith.constant 0 : index
    %c0_23 = arith.constant 0 : index
    %45 = vector.load %arg14[%c0_22, %c0_23] : memref<8x32xbf16, #tpu.memory_space<vmem>>, vector<8x8xbf16>
    %cst_24 = arith.constant dense<0.000000e+00> : vector<8x8xf32>
    %46 = tpu.matmul %44, %45, %cst_24 {dimension_numbers = #tpu.dot_dimension_numbers<[1], [1], [0], [0], [0, 0, 1, 0], [], []>} : vector<8x8xbf16>, vector<8x8xbf16>, vector<8x8xf32> -> vector<8x8xf32>
    %cst_25 = arith.constant 0.353553385 : f32
    %47 = vector.broadcast %cst_25 : f32 to vector<8x8xf32>
    %48 = arith.mulf %46, %47 : vector<8x8xf32>
    %49 = vector.broadcast %43 : vector<1x8xf32> to vector<8x8xf32>
    %50 = arith.addf %48, %49 : vector<8x8xf32>
    %cst_26 = arith.constant dense<0xFF800000> : vector<8xf32>
    %51 = vector.multi_reduction <maximumf>, %50, %cst_26 [1] : vector<8x8xf32> to vector<8xf32>
    %52 = vector.shape_cast %51 : vector<8xf32> to vector<8x1xf32>
    %53 = vector.broadcast %52 : vector<8x1xf32> to vector<8x8xf32>
    %54 = arith.subf %50, %53 : vector<8x8xf32>
    %55 = math.exp %54 : vector<8x8xf32>
    %cst_27 = arith.constant dense<0.000000e+00> : vector<8xf32>
    %56 = vector.multi_reduction <add>, %55, %cst_27 [1] : vector<8x8xf32> to vector<8xf32>
    %57 = vector.shape_cast %56 : vector<8xf32> to vector<8x1xf32>
    %58 = tpu.reciprocal %57 {approx = true} : vector<8x1xf32> -> vector<8x1xf32>
    %59 = vector.broadcast %58 : vector<8x1xf32> to vector<8x8xf32>
    %60 = arith.mulf %55, %59 : vector<8x8xf32>
    %61 = arith.truncf %60 : vector<8x8xf32> to vector<8x8xbf16>
    %c0_28 = arith.constant 0 : index
    %c0_29 = arith.constant 0 : index
    %62 = vector.load %arg15[%c0_28, %c0_29] : memref<8x32xbf16, #tpu.memory_space<vmem>>, vector<8x8xbf16>
    %cst_30 = arith.constant dense<0.000000e+00> : vector<8x8xf32>
    %63 = tpu.matmul %61, %62, %cst_30 {dimension_numbers = #tpu.dot_dimension_numbers<[1], [0], [0], [1], [0, 0, 1, 1], [], []>} : vector<8x8xbf16>, vector<8x8xbf16>, vector<8x8xf32> -> vector<8x8xf32>
    %c0_31 = arith.constant 0 : index
    %c0_32 = arith.constant 0 : index
    %64 = vector.load %arg16[%c0_31, %c0_32] : memref<8x32xf32, #tpu.memory_space<vmem>>, vector<8x8xf32>
    tpu.vector_store %arg16[%c0_31, %c0_32], %63 {strides = array<i32>} : memref<8x32xf32, #tpu.memory_space<vmem>>, vector<8x8xf32>,
    %65 = vector.extract_strided_slice %35 {offsets = [0, 8], sizes = [8, 8], strides = [1, 1]} : vector<8x32xbf16> to vector<8x8xbf16>
    %c0_33 = arith.constant 0 : index
    %c8 = arith.constant 8 : index
    %66 = vector.load %arg14[%c0_33, %c8] : memref<8x32xbf16, #tpu.memory_space<vmem>>, vector<8x8xbf16>
    %cst_34 = arith.constant dense<0.000000e+00> : vector<8x8xf32>
    %67 = tpu.matmul %65, %66, %cst_34 {dimension_numbers = #tpu.dot_dimension_numbers<[1], [1], [0], [0], [0, 0, 1, 0], [], []>} : vector<8x8xbf16>, vector<8x8xbf16>, vector<8x8xf32> -> vector<8x8xf32>
    %cst_35 = arith.constant 0.353553385 : f32
    %68 = vector.broadcast %cst_35 : f32 to vector<8x8xf32>
    %69 = arith.mulf %67, %68 : vector<8x8xf32>
    %70 = vector.broadcast %43 : vector<1x8xf32> to vector<8x8xf32>
    %71 = arith.addf %69, %70 : vector<8x8xf32>
    %cst_36 = arith.constant dense<0xFF800000> : vector<8xf32>
    %72 = vector.multi_reduction <maximumf>, %71, %cst_36 [1] : vector<8x8xf32> to vector<8xf32>
    %73 = vector.shape_cast %72 : vector<8xf32> to vector<8x1xf32>
    %74 = vector.broadcast %73 : vector<8x1xf32> to vector<8x8xf32>
    %75 = arith.subf %71, %74 : vector<8x8xf32>
    %76 = math.exp %75 : vector<8x8xf32>
    %cst_37 = arith.constant dense<0.000000e+00> : vector<8xf32>
    %77 = vector.multi_reduction <add>, %76, %cst_37 [1] : vector<8x8xf32> to vector<8xf32>
    %78 = vector.shape_cast %77 : vector<8xf32> to vector<8x1xf32>
    %79 = tpu.reciprocal %78 {approx = true} : vector<8x1xf32> -> vector<8x1xf32>
    %80 = vector.broadcast %79 : vector<8x1xf32> to vector<8x8xf32>
    %81 = arith.mulf %76, %80 : vector<8x8xf32>
    %82 = arith.truncf %81 : vector<8x8xf32> to vector<8x8xbf16>
    %c0_38 = arith.constant 0 : index
    %c8_39 = arith.constant 8 : index
    %83 = vector.load %arg15[%c0_38, %c8_39] : memref<8x32xbf16, #tpu.memory_space<vmem>>, vector<8x8xbf16>
    %cst_40 = arith.constant dense<0.000000e+00> : vector<8x8xf32>
    %84 = tpu.matmul %82, %83, %cst_40 {dimension_numbers = #tpu.dot_dimension_numbers<[1], [0], [0], [1], [0, 0, 1, 1], [], []>} : vector<8x8xbf16>, vector<8x8xbf16>, vector<8x8xf32> -> vector<8x8xf32>
    %c0_41 = arith.constant 0 : index
    %c8_42 = arith.constant 8 : index
    %85 = vector.load %arg16[%c0_41, %c8_42] : memref<8x32xf32, #tpu.memory_space<vmem>>, vector<8x8xf32>
    tpu.vector_store %arg16[%c0_41, %c8_42], %84 {strides = array<i32>} : memref<8x32xf32, #tpu.memory_space<vmem>>, vector<8x8xf32>,
    %86 = vector.extract_strided_slice %35 {offsets = [0, 16], sizes = [8, 8], strides = [1, 1]} : vector<8x32xbf16> to vector<8x8xbf16>
    %c0_43 = arith.constant 0 : index
    %c16 = arith.constant 16 : index
    %87 = vector.load %arg14[%c0_43, %c16] : memref<8x32xbf16, #tpu.memory_space<vmem>>, vector<8x8xbf16>
    %cst_44 = arith.constant dense<0.000000e+00> : vector<8x8xf32>
    %88 = tpu.matmul %86, %87, %cst_44 {dimension_numbers = #tpu.dot_dimension_numbers<[1], [1], [0], [0], [0, 0, 1, 0], [], []>} : vector<8x8xbf16>, vector<8x8xbf16>, vector<8x8xf32> -> vector<8x8xf32>
    %cst_45 = arith.constant 0.353553385 : f32
    %89 = vector.broadcast %cst_45 : f32 to vector<8x8xf32>
    %90 = arith.mulf %88, %89 : vector<8x8xf32>
    %91 = vector.broadcast %43 : vector<1x8xf32> to vector<8x8xf32>
    %92 = arith.addf %90, %91 : vector<8x8xf32>
    %cst_46 = arith.constant dense<0xFF800000> : vector<8xf32>
    %93 = vector.multi_reduction <maximumf>, %92, %cst_46 [1] : vector<8x8xf32> to vector<8xf32>
    %94 = vector.shape_cast %93 : vector<8xf32> to vector<8x1xf32>
    %95 = vector.broadcast %94 : vector<8x1xf32> to vector<8x8xf32>
    %96 = arith.subf %92, %95 : vector<8x8xf32>
    %97 = math.exp %96 : vector<8x8xf32>
    %cst_47 = arith.constant dense<0.000000e+00> : vector<8xf32>
    %98 = vector.multi_reduction <add>, %97, %cst_47 [1] : vector<8x8xf32> to vector<8xf32>
    %99 = vector.shape_cast %98 : vector<8xf32> to vector<8x1xf32>
    %100 = tpu.reciprocal %99 {approx = true} : vector<8x1xf32> -> vector<8x1xf32>
    %101 = vector.broadcast %100 : vector<8x1xf32> to vector<8x8xf32>
    %102 = arith.mulf %97, %101 : vector<8x8xf32>
    %103 = arith.truncf %102 : vector<8x8xf32> to vector<8x8xbf16>
    %c0_48 = arith.constant 0 : index
    %c16_49 = arith.constant 16 : index
    %104 = vector.load %arg15[%c0_48, %c16_49] : memref<8x32xbf16, #tpu.memory_space<vmem>>, vector<8x8xbf16>
    %cst_50 = arith.constant dense<0.000000e+00> : vector<8x8xf32>
    %105 = tpu.matmul %103, %104, %cst_50 {dimension_numbers = #tpu.dot_dimension_numbers<[1], [0], [0], [1], [0, 0, 1, 1], [], []>} : vector<8x8xbf16>, vector<8x8xbf16>, vector<8x8xf32> -> vector<8x8xf32>
    %c0_51 = arith.constant 0 : index
    %c16_52 = arith.constant 16 : index
    %106 = vector.load %arg16[%c0_51, %c16_52] : memref<8x32xf32, #tpu.memory_space<vmem>>, vector<8x8xf32>
    tpu.vector_store %arg16[%c0_51, %c16_52], %105 {strides = array<i32>} : memref<8x32xf32, #tpu.memory_space<vmem>>, vector<8x8xf32>,
    %107 = vector.extract_strided_slice %35 {offsets = [0, 24], sizes = [8, 8], strides = [1, 1]} : vector<8x32xbf16> to vector<8x8xbf16>
    %c0_53 = arith.constant 0 : index
    %c24 = arith.constant 24 : index
    %108 = vector.load %arg14[%c0_53, %c24] : memref<8x32xbf16, #tpu.memory_space<vmem>>, vector<8x8xbf16>
    %cst_54 = arith.constant dense<0.000000e+00> : vector<8x8xf32>
    %109 = tpu.matmul %107, %108, %cst_54 {dimension_numbers = #tpu.dot_dimension_numbers<[1], [1], [0], [0], [0, 0, 1, 0], [], []>} : vector<8x8xbf16>, vector<8x8xbf16>, vector<8x8xf32> -> vector<8x8xf32>
    %cst_55 = arith.constant 0.353553385 : f32
    %110 = vector.broadcast %cst_55 : f32 to vector<8x8xf32>
    %111 = arith.mulf %109, %110 : vector<8x8xf32>
    %112 = vector.broadcast %43 : vector<1x8xf32> to vector<8x8xf32>
    %113 = arith.addf %111, %112 : vector<8x8xf32>
    %cst_56 = arith.constant dense<0xFF800000> : vector<8xf32>
    %114 = vector.multi_reduction <maximumf>, %113, %cst_56 [1] : vector<8x8xf32> to vector<8xf32>
    %115 = vector.shape_cast %114 : vector<8xf32> to vector<8x1xf32>
    %116 = vector.broadcast %115 : vector<8x1xf32> to vector<8x8xf32>
    %117 = arith.subf %113, %116 : vector<8x8xf32>
    %118 = math.exp %117 : vector<8x8xf32>
    %cst_57 = arith.constant dense<0.000000e+00> : vector<8xf32>
    %119 = vector.multi_reduction <add>, %118, %cst_57 [1] : vector<8x8xf32> to vector<8xf32>
    %120 = vector.shape_cast %119 : vector<8xf32> to vector<8x1xf32>
    %121 = tpu.reciprocal %120 {approx = true} : vector<8x1xf32> -> vector<8x1xf32>
    %122 = vector.broadcast %121 : vector<8x1xf32> to vector<8x8xf32>
    %123 = arith.mulf %118, %122 : vector<8x8xf32>
    %124 = arith.truncf %123 : vector<8x8xf32> to vector<8x8xbf16>
    %c0_58 = arith.constant 0 : index
    %c24_59 = arith.constant 24 : index
    %125 = vector.load %arg15[%c0_58, %c24_59] : memref<8x32xbf16, #tpu.memory_space<vmem>>, vector<8x8xbf16>
    %cst_60 = arith.constant dense<0.000000e+00> : vector<8x8xf32>
    %126 = tpu.matmul %124, %125, %cst_60 {dimension_numbers = #tpu.dot_dimension_numbers<[1], [0], [0], [1], [0, 0, 1, 1], [], []>} : vector<8x8xbf16>, vector<8x8xbf16>, vector<8x8xf32> -> vector<8x8xf32>
    %c0_61 = arith.constant 0 : index
    %c24_62 = arith.constant 24 : index
    %127 = vector.load %arg16[%c0_61, %c24_62] : memref<8x32xf32, #tpu.memory_space<vmem>>, vector<8x8xf32>
    tpu.vector_store %arg16[%c0_61, %c24_62], %126 {strides = array<i32>} : memref<8x32xf32, #tpu.memory_space<vmem>>, vector<8x8xf32>,
    %c0_63 = arith.constant 0 : index
    %c0_64 = arith.constant 0 : index
    %128 = vector.load %arg16[%c0_63, %c0_64] : memref<8x32xf32, #tpu.memory_space<vmem>>, vector<8x32xf32>
    %129 = arith.truncf %128 : vector<8x32xf32> to vector<8x32xbf16>
    %c0_65 = arith.constant 0 : index
    %c0_66 = arith.constant 0 : index
    %130 = vector.load %arg11[%c0_65, %c0_66] : memref<32x32xbf16, #tpu.memory_space<vmem>>, vector<32x32xbf16>
    %cst_67 = arith.constant dense<0.000000e+00> : vector<8x32xf32>
    %131 = tpu.matmul %129, %130, %cst_67 {dimension_numbers = #tpu.dot_dimension_numbers<[1], [0], [0], [1], [0, 0, 1, 1], [], []>} : vector<8x32xbf16>, vector<32x32xbf16>, vector<8x32xf32> -> vector<8x32xf32>
    %132 = arith.addf %28, %131 : vector<8x32xf32>
    %c0_68 = arith.constant 0 : index
    %c0_69 = arith.constant 0 : index
    %133 = vector.load %arg12[%c0_68, %c0_69] : memref<1x32xf32, #tpu.memory_space<vmem>>, vector<1x32xf32>
    %134 = vector.broadcast %133 : vector<1x32xf32> to vector<8x32xf32>
    %135 = arith.addf %132, %134 : vector<8x32xf32>
    %c0_70 = arith.constant 0 : index
    %c0_71 = arith.constant 0 : index
    %c0_72 = arith.constant 0 : index
    %136 = vector.load %arg13[%c0_70, %c0_71, %c0_72] : memref<1x8x32xf32, #tpu.memory_space<vmem>>, vector<1x8x32xf32>
    %137 = vector.shape_cast %136 : vector<1x8x32xf32> to vector<8x32xf32>
    %138 = vector.shape_cast %135 : vector<8x32xf32> to vector<1x8x32xf32>
    tpu.vector_store %arg13[%c0_70, %c0_71, %c0_72], %138 {strides = array<i32>} : memref<1x8x32xf32, #tpu.memory_space<vmem>>, vector<1x8x32xf32>,
    return
  }
  func.func @transform_0(%arg0: i32, %arg1: i32) -> (i32, i32, i32) {
    %c0_i32 = arith.constant 0 : i32
    %c0_i32_0 = arith.constant 0 : i32
    return %arg0, %arg1, %c0_i32 : i32, i32, i32
  }
  func.func @transform_1(%arg0: i32, %arg1: i32) -> (i32, i32, i32) {
    %c0_i32 = arith.constant 0 : i32
    %c0_i32_0 = arith.constant 0 : i32
    %c0_i32_1 = arith.constant 0 : i32
    return %arg0, %c0_i32, %c0_i32_0 : i32, i32, i32
  }
  func.func @transform_2(%arg0: i32, %arg1: i32) -> (i32, i32, i32) {
    %c0_i32 = arith.constant 0 : i32
    %c0_i32_0 = arith.constant 0 : i32
    %c0_i32_1 = arith.constant 0 : i32
    return %arg0, %c0_i32, %c0_i32_0 : i32, i32, i32
  }
  func.func @transform_3(%arg0: i32, %arg1: i32) -> (i32, i32) {
    %c0_i32 = arith.constant 0 : i32
    %c0_i32_0 = arith.constant 0 : i32
    %c0_i32_1 = arith.constant 0 : i32
    return %c0_i32, %c0_i32_0 : i32, i32
  }
  func.func @transform_4(%arg0: i32, %arg1: i32) -> (i32, i32) {
    %c0_i32 = arith.constant 0 : i32
    %c0_i32_0 = arith.constant 0 : i32
    %c0_i32_1 = arith.constant 0 : i32
    return %c0_i32, %c0_i32_0 : i32, i32
  }
  func.func @transform_5(%arg0: i32, %arg1: i32) -> (i32, i32) {
    %c0_i32 = arith.constant 0 : i32
    %c0_i32_0 = arith.constant 0 : i32
    %c0_i32_1 = arith.constant 0 : i32
    return %c0_i32, %c0_i32_0 : i32, i32
  }
  func.func @transform_6(%arg0: i32, %arg1: i32) -> (i32, i32) {
    %c0_i32 = arith.constant 0 : i32
    %c0_i32_0 = arith.constant 0 : i32
    %c0_i32_1 = arith.constant 0 : i32
    return %c0_i32, %c0_i32_0 : i32, i32
  }
  func.func @transform_7(%arg0: i32, %arg1: i32) -> (i32, i32) {
    %c0_i32 = arith.constant 0 : i32
    %c0_i32_0 = arith.constant 0 : i32
    %c0_i32_1 = arith.constant 0 : i32
    return %c0_i32, %c0_i32_0 : i32, i32
  }
  func.func @transform_8(%arg0: i32, %arg1: i32) -> (i32, i32) {
    %c0_i32 = arith.constant 0 : i32
    %c0_i32_0 = arith.constant 0 : i32
    %c0_i32_1 = arith.constant 0 : i32
    return %c0_i32, %c0_i32_0 : i32, i32
  }
  func.func @transform_9(%arg0: i32, %arg1: i32) -> (i32, i32) {
    %c0_i32 = arith.constant 0 : i32
    %c0_i32_0 = arith.constant 0 : i32
    %c0_i32_1 = arith.constant 0 : i32
    return %c0_i32, %c0_i32_0 : i32, i32
  }
  func.func @transform_10(%arg0: i32, %arg1: i32) -> (i32, i32) {
    %c0_i32 = arith.constant 0 : i32
    %c0_i32_0 = arith.constant 0 : i32
    %c0_i32_1 = arith.constant 0 : i32
    return %c0_i32, %c0_i32_0 : i32, i32
  }
  func.func @transform_11(%arg0: i32, %arg1: i32) -> (i32, i32, i32) {
    %c0_i32 = arith.constant 0 : i32
    %c0_i32_0 = arith.constant 0 : i32
    return %arg0, %arg1, %c0_i32 : i32, i32, i32
  }
}

module attributes {stable_mosaic.version = 11 : i64} {
  func.func @_mha_kernel(%arg0: i32, %arg1: i32, %arg2: memref<1x8x32xf32, #tpu.memory_space<vmem>>, %arg3: memref<1x8x32xf32, #tpu.memory_space<vmem>>, %arg4: memref<1x32xf32, #tpu.memory_space<vmem>>, %arg5: memref<1x32xf32, #tpu.memory_space<vmem>>, %arg6: memref<32x32xbf16, #tpu.memory_space<vmem>>, %arg7: memref<1x32xf32, #tpu.memory_space<vmem>>, %arg8: memref<32x64xbf16, #tpu.memory_space<vmem>>, %arg9: memref<1x64xf32, #tpu.memory_space<vmem>>, %arg10: memref<32x32xbf16, #tpu.memory_space<vmem>>, %arg11: memref<1x32xf32, #tpu.memory_space<vmem>>, %arg12: memref<1x8x32xf32, #tpu.memory_space<vmem>>, %arg13: memref<8x32xbf16, #tpu.memory_space<vmem>>, %arg14: memref<8x32xbf16, #tpu.memory_space<vmem>>, %arg15: memref<8x32xf32, #tpu.memory_space<vmem>>) attributes {dimension_semantics = [#tpu.dimension_semantics<parallel>, #tpu.dimension_semantics<arbitrary>], iteration_bounds = array<i64: 2, 1>, scalar_prefetch = 0 : i64, scratch_operands = 3 : i64, tpu.core_type = #tpu.core_type<tc>, window_params = [{transform_indices = @transform_0, window_bounds = array<i64: 1, 8, 32>}, {transform_indices = @transform_1, window_bounds = array<i64: 1, 8, 32>}, {pipeline_mode = #tpu.pipeline_mode<synchronous>, transform_indices = @transform_2, window_bounds = array<i64: 1, 32>}, {pipeline_mode = #tpu.pipeline_mode<synchronous>, transform_indices = @transform_3, window_bounds = array<i64: 1, 32>}, {pipeline_mode = #tpu.pipeline_mode<synchronous>, transform_indices = @transform_4, window_bounds = array<i64: 32, 32>}, {pipeline_mode = #tpu.pipeline_mode<synchronous>, transform_indices = @transform_5, window_bounds = array<i64: 1, 32>}, {pipeline_mode = #tpu.pipeline_mode<synchronous>, transform_indices = @transform_6, window_bounds = array<i64: 32, 64>}, {pipeline_mode = #tpu.pipeline_mode<synchronous>, transform_indices = @transform_7, window_bounds = array<i64: 1, 64>}, {pipeline_mode = #tpu.pipeline_mode<synchronous>, transform_indices = @transform_8, window_bounds = array<i64: 32, 32>}, {pipeline_mode = #tpu.pipeline_mode<synchronous>, transform_indices = @transform_9, window_bounds = array<i64: 1, 32>}, {transform_indices = @transform_10, window_bounds = array<i64: 1, 8, 32>}]} {
    %c0_i32 = arith.constant 0 : i32
    %0 = arith.cmpi eq, %arg1, %c0_i32 : i32
    %1 = arith.extui %0 : i1 to i32
    %c0_i32_0 = arith.constant 0 : i32
    %2 = arith.cmpi ne, %1, %c0_i32_0 : i32
    scf.if %2 {
      %c0_51 = arith.constant 0 : index
      %c0_52 = arith.constant 0 : index
      %c0_53 = arith.constant 0 : index
      %97 = vector.load %arg3[%c0_51, %c0_52, %c0_53] : memref<1x8x32xf32, #tpu.memory_space<vmem>>, vector<1x8x32xf32>
      %98 = vector.shape_cast %97 : vector<1x8x32xf32> to vector<8x32xf32>
      %c0_54 = arith.constant 0 : index
      %c0_55 = arith.constant 0 : index
      %99 = vector.load %arg4[%c0_54, %c0_55] : memref<1x32xf32, #tpu.memory_space<vmem>>, vector<1x32xf32>
      %c0_56 = arith.constant 0 : index
      %c0_57 = arith.constant 0 : index
      %100 = vector.load %arg5[%c0_56, %c0_57] : memref<1x32xf32, #tpu.memory_space<vmem>>, vector<1x32xf32>
      %cst_58 = arith.constant dense<0.000000e+00> : vector<8xf32>
      %101 = vector.multi_reduction <add>, %98, %cst_58 [1] : vector<8x32xf32> to vector<8xf32>
      %102 = vector.shape_cast %101 : vector<8xf32> to vector<8x1xf32>
      %cst_59 = arith.constant 3.200000e+01 : f32
      %103 = vector.broadcast %cst_59 : f32 to vector<8x1xf32>
      %104 = arith.divf %102, %103 : vector<8x1xf32>
      %105 = vector.broadcast %104 : vector<8x1xf32> to vector<8x32xf32>
      %106 = arith.subf %98, %105 : vector<8x32xf32>
      %107 = arith.mulf %106, %106 : vector<8x32xf32>
      %cst_60 = arith.constant dense<0.000000e+00> : vector<8xf32>
      %108 = vector.multi_reduction <add>, %107, %cst_60 [1] : vector<8x32xf32> to vector<8xf32>
      %109 = vector.shape_cast %108 : vector<8xf32> to vector<8x1xf32>
      %cst_61 = arith.constant 3.200000e+01 : f32
      %110 = vector.broadcast %cst_61 : f32 to vector<8x1xf32>
      %111 = arith.divf %109, %110 : vector<8x1xf32>
      %112 = vector.broadcast %104 : vector<8x1xf32> to vector<8x32xf32>
      %113 = arith.subf %98, %112 : vector<8x32xf32>
      %cst_62 = arith.constant 9.99999974E-6 : f32
      %114 = vector.broadcast %cst_62 : f32 to vector<8x1xf32>
      %115 = arith.addf %111, %114 : vector<8x1xf32>
      %116 = math.rsqrt %115 : vector<8x1xf32>
      %117 = vector.broadcast %116 : vector<8x1xf32> to vector<8x32xf32>
      %118 = arith.mulf %113, %117 : vector<8x32xf32>
      %119 = vector.broadcast %99 : vector<1x32xf32> to vector<8x32xf32>
      %120 = arith.mulf %118, %119 : vector<8x32xf32>
      %121 = vector.broadcast %100 : vector<1x32xf32> to vector<8x32xf32>
      %122 = arith.addf %120, %121 : vector<8x32xf32>
      %123 = arith.truncf %122 : vector<8x32xf32> to vector<8x32xbf16>
      %c0_63 = arith.constant 0 : index
      %c0_64 = arith.constant 0 : index
      %124 = vector.load %arg8[%c0_63, %c0_64] : memref<32x64xbf16, #tpu.memory_space<vmem>>, vector<32x64xbf16>
      %c0_65 = arith.constant 0 : index
      %c0_66 = arith.constant 0 : index
      %125 = vector.load %arg9[%c0_65, %c0_66] : memref<1x64xf32, #tpu.memory_space<vmem>>, vector<1x64xf32>
      %126 = vector.extract_strided_slice %124 {offsets = [0, 0], sizes = [32, 32], strides = [1, 1]} : vector<32x64xbf16> to vector<32x32xbf16>
      %cst_67 = arith.constant dense<0.000000e+00> : vector<8x32xf32>
      %127 = tpu.matmul %123, %126, %cst_67 {dimension_numbers = #tpu.dot_dimension_numbers<[1], [0], [0], [1], [0, 0, 1, 1], [], []>} : vector<8x32xbf16>, vector<32x32xbf16>, vector<8x32xf32> -> vector<8x32xf32>
      %128 = vector.extract_strided_slice %125 {offsets = [0, 0], sizes = [1, 32], strides = [1, 1]} : vector<1x64xf32> to vector<1x32xf32>
      %129 = vector.broadcast %128 : vector<1x32xf32> to vector<8x32xf32>
      %130 = arith.addf %127, %129 : vector<8x32xf32>
      %131 = arith.truncf %130 : vector<8x32xf32> to vector<8x32xbf16>
      %c0_68 = arith.constant 0 : index
      %c0_69 = arith.constant 0 : index
      %132 = vector.load %arg13[%c0_68, %c0_69] : memref<8x32xbf16, #tpu.memory_space<vmem>>, vector<8x32xbf16>
      tpu.vector_store %arg13[%c0_68, %c0_69], %131 {strides = array<i32>} : memref<8x32xbf16, #tpu.memory_space<vmem>>, vector<8x32xbf16>,
      %133 = vector.extract_strided_slice %124 {offsets = [0, 32], sizes = [32, 32], strides = [1, 1]} : vector<32x64xbf16> to vector<32x32xbf16>
      %cst_70 = arith.constant dense<0.000000e+00> : vector<8x32xf32>
      %134 = tpu.matmul %123, %133, %cst_70 {dimension_numbers = #tpu.dot_dimension_numbers<[1], [0], [0], [1], [0, 0, 1, 1], [], []>} : vector<8x32xbf16>, vector<32x32xbf16>, vector<8x32xf32> -> vector<8x32xf32>
      %135 = vector.extract_strided_slice %125 {offsets = [0, 32], sizes = [1, 32], strides = [1, 1]} : vector<1x64xf32> to vector<1x32xf32>
      %136 = vector.broadcast %135 : vector<1x32xf32> to vector<8x32xf32>
      %137 = arith.addf %134, %136 : vector<8x32xf32>
      %138 = arith.truncf %137 : vector<8x32xf32> to vector<8x32xbf16>
      %c0_71 = arith.constant 0 : index
      %c0_72 = arith.constant 0 : index
      %139 = vector.load %arg14[%c0_71, %c0_72] : memref<8x32xbf16, #tpu.memory_space<vmem>>, vector<8x32xbf16>
      tpu.vector_store %arg14[%c0_71, %c0_72], %138 {strides = array<i32>} : memref<8x32xbf16, #tpu.memory_space<vmem>>, vector<8x32xbf16>,
    } else {
    }
    %c0 = arith.constant 0 : index
    %c0_1 = arith.constant 0 : index
    %c0_2 = arith.constant 0 : index
    %3 = vector.load %arg2[%c0, %c0_1, %c0_2] : memref<1x8x32xf32, #tpu.memory_space<vmem>>, vector<1x8x32xf32>
    %4 = vector.shape_cast %3 : vector<1x8x32xf32> to vector<8x32xf32>
    %c0_3 = arith.constant 0 : index
    %c0_4 = arith.constant 0 : index
    %5 = vector.load %arg4[%c0_3, %c0_4] : memref<1x32xf32, #tpu.memory_space<vmem>>, vector<1x32xf32>
    %c0_5 = arith.constant 0 : index
    %c0_6 = arith.constant 0 : index
    %6 = vector.load %arg5[%c0_5, %c0_6] : memref<1x32xf32, #tpu.memory_space<vmem>>, vector<1x32xf32>
    %cst = arith.constant dense<0.000000e+00> : vector<8xf32>
    %7 = vector.multi_reduction <add>, %4, %cst [1] : vector<8x32xf32> to vector<8xf32>
    %8 = vector.shape_cast %7 : vector<8xf32> to vector<8x1xf32>
    %cst_7 = arith.constant 3.200000e+01 : f32
    %9 = vector.broadcast %cst_7 : f32 to vector<8x1xf32>
    %10 = arith.divf %8, %9 : vector<8x1xf32>
    %11 = vector.broadcast %10 : vector<8x1xf32> to vector<8x32xf32>
    %12 = arith.subf %4, %11 : vector<8x32xf32>
    %13 = arith.mulf %12, %12 : vector<8x32xf32>
    %cst_8 = arith.constant dense<0.000000e+00> : vector<8xf32>
    %14 = vector.multi_reduction <add>, %13, %cst_8 [1] : vector<8x32xf32> to vector<8xf32>
    %15 = vector.shape_cast %14 : vector<8xf32> to vector<8x1xf32>
    %cst_9 = arith.constant 3.200000e+01 : f32
    %16 = vector.broadcast %cst_9 : f32 to vector<8x1xf32>
    %17 = arith.divf %15, %16 : vector<8x1xf32>
    %18 = vector.broadcast %10 : vector<8x1xf32> to vector<8x32xf32>
    %19 = arith.subf %4, %18 : vector<8x32xf32>
    %cst_10 = arith.constant 9.99999974E-6 : f32
    %20 = vector.broadcast %cst_10 : f32 to vector<8x1xf32>
    %21 = arith.addf %17, %20 : vector<8x1xf32>
    %22 = math.rsqrt %21 : vector<8x1xf32>
    %23 = vector.broadcast %22 : vector<8x1xf32> to vector<8x32xf32>
    %24 = arith.mulf %19, %23 : vector<8x32xf32>
    %25 = vector.broadcast %5 : vector<1x32xf32> to vector<8x32xf32>
    %26 = arith.mulf %24, %25 : vector<8x32xf32>
    %27 = vector.broadcast %6 : vector<1x32xf32> to vector<8x32xf32>
    %28 = arith.addf %26, %27 : vector<8x32xf32>
    %29 = arith.truncf %28 : vector<8x32xf32> to vector<8x32xbf16>
    %c0_11 = arith.constant 0 : index
    %c0_12 = arith.constant 0 : index
    %30 = vector.load %arg6[%c0_11, %c0_12] : memref<32x32xbf16, #tpu.memory_space<vmem>>, vector<32x32xbf16>
    %cst_13 = arith.constant dense<0.000000e+00> : vector<8x32xf32>
    %31 = tpu.matmul %29, %30, %cst_13 {dimension_numbers = #tpu.dot_dimension_numbers<[1], [0], [0], [1], [0, 0, 1, 1], [], []>} : vector<8x32xbf16>, vector<32x32xbf16>, vector<8x32xf32> -> vector<8x32xf32>
    %c0_14 = arith.constant 0 : index
    %c0_15 = arith.constant 0 : index
    %32 = vector.load %arg7[%c0_14, %c0_15] : memref<1x32xf32, #tpu.memory_space<vmem>>, vector<1x32xf32>
    %33 = vector.broadcast %32 : vector<1x32xf32> to vector<8x32xf32>
    %34 = arith.addf %31, %33 : vector<8x32xf32>
    %35 = arith.truncf %34 : vector<8x32xf32> to vector<8x32xbf16>
    %c1_i32 = arith.constant 1 : i32
    %36 = arith.addi %arg1, %c1_i32 : i32
    %c8_i32 = arith.constant 8 : i32
    %37 = arith.muli %arg1, %c8_i32 : i32
    %38 = tpu.iota {dimensions = array<i32: 0>} : vector<8x8xi32>
    %39 = vector.broadcast %37 : i32 to vector<8x8xi32>
    %40 = arith.addi %39, %38 : vector<8x8xi32>
    %41 = tpu.iota {dimensions = array<i32: 1>} : vector<8x8xi32>
    %42 = vector.extract_strided_slice %35 {offsets = [0, 0], sizes = [8, 8], strides = [1, 1]} : vector<8x32xbf16> to vector<8x8xbf16>
    %cst_16 = arith.constant -1.000000e+30 : f32
    %43 = vector.broadcast %cst_16 : f32 to vector<8x1xf32>
    %cst_17 = arith.constant 0.000000e+00 : f32
    %44 = vector.broadcast %cst_17 : f32 to vector<8x1xf32>
    %cst_18 = arith.constant 0.000000e+00 : f32
    %45 = vector.broadcast %cst_18 : f32 to vector<8x8xf32>
    %c0_i32_19 = arith.constant 0 : i32
    %46 = arith.subi %36, %c0_i32_19 : i32
    %47 = arith.addi %c0_i32_19, %46 : i32
    %c1_i32_20 = arith.constant 1 : i32
    %48:3 = scf.for %arg16 = %c0_i32_19 to %47 step %c1_i32_20 iter_args(%arg17 = %43, %arg18 = %44, %arg19 = %45) -> (vector<8x1xf32>, vector<8x1xf32>, vector<8x8xf32>)  : i32 {
      %c8_i32_51 = arith.constant 8 : i32
      %97 = arith.muli %arg16, %c8_i32_51 : i32
      %98 = tpu.assume_multiple %97, 8 : i32
      %99 = arith.index_cast %98 : i32 to index
      %c0_52 = arith.constant 0 : index
      %100 = vector.load %arg13[%99, %c0_52] : memref<8x32xbf16, #tpu.memory_space<vmem>>, vector<8x8xbf16>
      %101 = arith.index_cast %98 : i32 to index
      %c0_53 = arith.constant 0 : index
      %102 = vector.load %arg14[%101, %c0_53] : memref<8x32xbf16, #tpu.memory_space<vmem>>, vector<8x8xbf16>
      %cst_54 = arith.constant dense<0.000000e+00> : vector<8x8xf32>
      %103 = tpu.matmul %42, %100, %cst_54 {dimension_numbers = #tpu.dot_dimension_numbers<[1], [1], [0], [0], [0, 0, 1, 0], [], []>} : vector<8x8xbf16>, vector<8x8xbf16>, vector<8x8xf32> -> vector<8x8xf32>
      %cst_55 = arith.constant 0.353553385 : f32
      %104 = vector.broadcast %cst_55 : f32 to vector<8x8xf32>
      %105 = arith.mulf %103, %104 : vector<8x8xf32>
      %c8_i32_56 = arith.constant 8 : i32
      %106 = arith.muli %arg16, %c8_i32_56 : i32
      %107 = vector.broadcast %106 : i32 to vector<8x8xi32>
      %108 = arith.addi %107, %41 : vector<8x8xi32>
      %109 = arith.cmpi sle, %108, %40 : vector<8x8xi32>
      %cst_57 = arith.constant -1.000000e+30 : f32
      %110 = vector.broadcast %cst_57 : f32 to vector<8x8xf32>
      %111 = arith.select %109, %105, %110 : vector<8x8xi1>, vector<8x8xf32>
      %cst_58 = arith.constant dense<0xFF800000> : vector<8xf32>
      %112 = vector.multi_reduction <maximumf>, %111, %cst_58 [1] : vector<8x8xf32> to vector<8xf32>
      %113 = vector.shape_cast %112 : vector<8xf32> to vector<8x1xf32>
      %114 = arith.maximumf %arg17, %113 : vector<8x1xf32>
      %115 = arith.subf %arg17, %114 : vector<8x1xf32>
      %116 = math.exp %115 : vector<8x1xf32>
      %117 = vector.broadcast %114 : vector<8x1xf32> to vector<8x8xf32>
      %118 = arith.subf %111, %117 : vector<8x8xf32>
      %119 = math.exp %118 : vector<8x8xf32>
      %120 = arith.mulf %116, %arg18 : vector<8x1xf32>
      %cst_59 = arith.constant dense<0.000000e+00> : vector<8xf32>
      %121 = vector.multi_reduction <add>, %119, %cst_59 [1] : vector<8x8xf32> to vector<8xf32>
      %122 = vector.shape_cast %121 : vector<8xf32> to vector<8x1xf32>
      %123 = arith.addf %120, %122 : vector<8x1xf32>
      %124 = vector.broadcast %116 : vector<8x1xf32> to vector<8x8xf32>
      %125 = arith.mulf %124, %arg19 : vector<8x8xf32>
      %126 = arith.truncf %119 : vector<8x8xf32> to vector<8x8xbf16>
      %cst_60 = arith.constant dense<0.000000e+00> : vector<8x8xf32>
      %127 = tpu.matmul %126, %102, %cst_60 {dimension_numbers = #tpu.dot_dimension_numbers<[1], [0], [0], [1], [0, 0, 1, 1], [], []>} : vector<8x8xbf16>, vector<8x8xbf16>, vector<8x8xf32> -> vector<8x8xf32>
      %128 = arith.addf %125, %127 : vector<8x8xf32>
      scf.yield %114, %123, %128 : vector<8x1xf32>, vector<8x1xf32>, vector<8x8xf32>
    }
    %49 = tpu.reciprocal %48#1 {approx = true} : vector<8x1xf32> -> vector<8x1xf32>
    %50 = vector.broadcast %49 : vector<8x1xf32> to vector<8x8xf32>
    %51 = arith.mulf %48#2, %50 : vector<8x8xf32>
    %c0_21 = arith.constant 0 : index
    %c0_22 = arith.constant 0 : index
    %52 = vector.load %arg15[%c0_21, %c0_22] : memref<8x32xf32, #tpu.memory_space<vmem>>, vector<8x8xf32>
    tpu.vector_store %arg15[%c0_21, %c0_22], %51 {strides = array<i32>} : memref<8x32xf32, #tpu.memory_space<vmem>>, vector<8x8xf32>,
    %53 = vector.extract_strided_slice %35 {offsets = [0, 8], sizes = [8, 8], strides = [1, 1]} : vector<8x32xbf16> to vector<8x8xbf16>
    %cst_23 = arith.constant -1.000000e+30 : f32
    %54 = vector.broadcast %cst_23 : f32 to vector<8x1xf32>
    %cst_24 = arith.constant 0.000000e+00 : f32
    %55 = vector.broadcast %cst_24 : f32 to vector<8x1xf32>
    %cst_25 = arith.constant 0.000000e+00 : f32
    %56 = vector.broadcast %cst_25 : f32 to vector<8x8xf32>
    %c0_i32_26 = arith.constant 0 : i32
    %57 = arith.subi %36, %c0_i32_26 : i32
    %58 = arith.addi %c0_i32_26, %57 : i32
    %c1_i32_27 = arith.constant 1 : i32
    %59:3 = scf.for %arg16 = %c0_i32_26 to %58 step %c1_i32_27 iter_args(%arg17 = %54, %arg18 = %55, %arg19 = %56) -> (vector<8x1xf32>, vector<8x1xf32>, vector<8x8xf32>)  : i32 {
      %c8_i32_51 = arith.constant 8 : i32
      %97 = arith.muli %arg16, %c8_i32_51 : i32
      %98 = tpu.assume_multiple %97, 8 : i32
      %99 = arith.index_cast %98 : i32 to index
      %c8_52 = arith.constant 8 : index
      %100 = vector.load %arg13[%99, %c8_52] : memref<8x32xbf16, #tpu.memory_space<vmem>>, vector<8x8xbf16>
      %101 = arith.index_cast %98 : i32 to index
      %c8_53 = arith.constant 8 : index
      %102 = vector.load %arg14[%101, %c8_53] : memref<8x32xbf16, #tpu.memory_space<vmem>>, vector<8x8xbf16>
      %cst_54 = arith.constant dense<0.000000e+00> : vector<8x8xf32>
      %103 = tpu.matmul %53, %100, %cst_54 {dimension_numbers = #tpu.dot_dimension_numbers<[1], [1], [0], [0], [0, 0, 1, 0], [], []>} : vector<8x8xbf16>, vector<8x8xbf16>, vector<8x8xf32> -> vector<8x8xf32>
      %cst_55 = arith.constant 0.353553385 : f32
      %104 = vector.broadcast %cst_55 : f32 to vector<8x8xf32>
      %105 = arith.mulf %103, %104 : vector<8x8xf32>
      %c8_i32_56 = arith.constant 8 : i32
      %106 = arith.muli %arg16, %c8_i32_56 : i32
      %107 = vector.broadcast %106 : i32 to vector<8x8xi32>
      %108 = arith.addi %107, %41 : vector<8x8xi32>
      %109 = arith.cmpi sle, %108, %40 : vector<8x8xi32>
      %cst_57 = arith.constant -1.000000e+30 : f32
      %110 = vector.broadcast %cst_57 : f32 to vector<8x8xf32>
      %111 = arith.select %109, %105, %110 : vector<8x8xi1>, vector<8x8xf32>
      %cst_58 = arith.constant dense<0xFF800000> : vector<8xf32>
      %112 = vector.multi_reduction <maximumf>, %111, %cst_58 [1] : vector<8x8xf32> to vector<8xf32>
      %113 = vector.shape_cast %112 : vector<8xf32> to vector<8x1xf32>
      %114 = arith.maximumf %arg17, %113 : vector<8x1xf32>
      %115 = arith.subf %arg17, %114 : vector<8x1xf32>
      %116 = math.exp %115 : vector<8x1xf32>
      %117 = vector.broadcast %114 : vector<8x1xf32> to vector<8x8xf32>
      %118 = arith.subf %111, %117 : vector<8x8xf32>
      %119 = math.exp %118 : vector<8x8xf32>
      %120 = arith.mulf %116, %arg18 : vector<8x1xf32>
      %cst_59 = arith.constant dense<0.000000e+00> : vector<8xf32>
      %121 = vector.multi_reduction <add>, %119, %cst_59 [1] : vector<8x8xf32> to vector<8xf32>
      %122 = vector.shape_cast %121 : vector<8xf32> to vector<8x1xf32>
      %123 = arith.addf %120, %122 : vector<8x1xf32>
      %124 = vector.broadcast %116 : vector<8x1xf32> to vector<8x8xf32>
      %125 = arith.mulf %124, %arg19 : vector<8x8xf32>
      %126 = arith.truncf %119 : vector<8x8xf32> to vector<8x8xbf16>
      %cst_60 = arith.constant dense<0.000000e+00> : vector<8x8xf32>
      %127 = tpu.matmul %126, %102, %cst_60 {dimension_numbers = #tpu.dot_dimension_numbers<[1], [0], [0], [1], [0, 0, 1, 1], [], []>} : vector<8x8xbf16>, vector<8x8xbf16>, vector<8x8xf32> -> vector<8x8xf32>
      %128 = arith.addf %125, %127 : vector<8x8xf32>
      scf.yield %114, %123, %128 : vector<8x1xf32>, vector<8x1xf32>, vector<8x8xf32>
    }
    %60 = tpu.reciprocal %59#1 {approx = true} : vector<8x1xf32> -> vector<8x1xf32>
    %61 = vector.broadcast %60 : vector<8x1xf32> to vector<8x8xf32>
    %62 = arith.mulf %59#2, %61 : vector<8x8xf32>
    %c0_28 = arith.constant 0 : index
    %c8 = arith.constant 8 : index
    %63 = vector.load %arg15[%c0_28, %c8] : memref<8x32xf32, #tpu.memory_space<vmem>>, vector<8x8xf32>
    tpu.vector_store %arg15[%c0_28, %c8], %62 {strides = array<i32>} : memref<8x32xf32, #tpu.memory_space<vmem>>, vector<8x8xf32>,
    %64 = vector.extract_strided_slice %35 {offsets = [0, 16], sizes = [8, 8], strides = [1, 1]} : vector<8x32xbf16> to vector<8x8xbf16>
    %cst_29 = arith.constant -1.000000e+30 : f32
    %65 = vector.broadcast %cst_29 : f32 to vector<8x1xf32>
    %cst_30 = arith.constant 0.000000e+00 : f32
    %66 = vector.broadcast %cst_30 : f32 to vector<8x1xf32>
    %cst_31 = arith.constant 0.000000e+00 : f32
    %67 = vector.broadcast %cst_31 : f32 to vector<8x8xf32>
    %c0_i32_32 = arith.constant 0 : i32
    %68 = arith.subi %36, %c0_i32_32 : i32
    %69 = arith.addi %c0_i32_32, %68 : i32
    %c1_i32_33 = arith.constant 1 : i32
    %70:3 = scf.for %arg16 = %c0_i32_32 to %69 step %c1_i32_33 iter_args(%arg17 = %65, %arg18 = %66, %arg19 = %67) -> (vector<8x1xf32>, vector<8x1xf32>, vector<8x8xf32>)  : i32 {
      %c8_i32_51 = arith.constant 8 : i32
      %97 = arith.muli %arg16, %c8_i32_51 : i32
      %98 = tpu.assume_multiple %97, 8 : i32
      %99 = arith.index_cast %98 : i32 to index
      %c16_52 = arith.constant 16 : index
      %100 = vector.load %arg13[%99, %c16_52] : memref<8x32xbf16, #tpu.memory_space<vmem>>, vector<8x8xbf16>
      %101 = arith.index_cast %98 : i32 to index
      %c16_53 = arith.constant 16 : index
      %102 = vector.load %arg14[%101, %c16_53] : memref<8x32xbf16, #tpu.memory_space<vmem>>, vector<8x8xbf16>
      %cst_54 = arith.constant dense<0.000000e+00> : vector<8x8xf32>
      %103 = tpu.matmul %64, %100, %cst_54 {dimension_numbers = #tpu.dot_dimension_numbers<[1], [1], [0], [0], [0, 0, 1, 0], [], []>} : vector<8x8xbf16>, vector<8x8xbf16>, vector<8x8xf32> -> vector<8x8xf32>
      %cst_55 = arith.constant 0.353553385 : f32
      %104 = vector.broadcast %cst_55 : f32 to vector<8x8xf32>
      %105 = arith.mulf %103, %104 : vector<8x8xf32>
      %c8_i32_56 = arith.constant 8 : i32
      %106 = arith.muli %arg16, %c8_i32_56 : i32
      %107 = vector.broadcast %106 : i32 to vector<8x8xi32>
      %108 = arith.addi %107, %41 : vector<8x8xi32>
      %109 = arith.cmpi sle, %108, %40 : vector<8x8xi32>
      %cst_57 = arith.constant -1.000000e+30 : f32
      %110 = vector.broadcast %cst_57 : f32 to vector<8x8xf32>
      %111 = arith.select %109, %105, %110 : vector<8x8xi1>, vector<8x8xf32>
      %cst_58 = arith.constant dense<0xFF800000> : vector<8xf32>
      %112 = vector.multi_reduction <maximumf>, %111, %cst_58 [1] : vector<8x8xf32> to vector<8xf32>
      %113 = vector.shape_cast %112 : vector<8xf32> to vector<8x1xf32>
      %114 = arith.maximumf %arg17, %113 : vector<8x1xf32>
      %115 = arith.subf %arg17, %114 : vector<8x1xf32>
      %116 = math.exp %115 : vector<8x1xf32>
      %117 = vector.broadcast %114 : vector<8x1xf32> to vector<8x8xf32>
      %118 = arith.subf %111, %117 : vector<8x8xf32>
      %119 = math.exp %118 : vector<8x8xf32>
      %120 = arith.mulf %116, %arg18 : vector<8x1xf32>
      %cst_59 = arith.constant dense<0.000000e+00> : vector<8xf32>
      %121 = vector.multi_reduction <add>, %119, %cst_59 [1] : vector<8x8xf32> to vector<8xf32>
      %122 = vector.shape_cast %121 : vector<8xf32> to vector<8x1xf32>
      %123 = arith.addf %120, %122 : vector<8x1xf32>
      %124 = vector.broadcast %116 : vector<8x1xf32> to vector<8x8xf32>
      %125 = arith.mulf %124, %arg19 : vector<8x8xf32>
      %126 = arith.truncf %119 : vector<8x8xf32> to vector<8x8xbf16>
      %cst_60 = arith.constant dense<0.000000e+00> : vector<8x8xf32>
      %127 = tpu.matmul %126, %102, %cst_60 {dimension_numbers = #tpu.dot_dimension_numbers<[1], [0], [0], [1], [0, 0, 1, 1], [], []>} : vector<8x8xbf16>, vector<8x8xbf16>, vector<8x8xf32> -> vector<8x8xf32>
      %128 = arith.addf %125, %127 : vector<8x8xf32>
      scf.yield %114, %123, %128 : vector<8x1xf32>, vector<8x1xf32>, vector<8x8xf32>
    }
    %71 = tpu.reciprocal %70#1 {approx = true} : vector<8x1xf32> -> vector<8x1xf32>
    %72 = vector.broadcast %71 : vector<8x1xf32> to vector<8x8xf32>
    %73 = arith.mulf %70#2, %72 : vector<8x8xf32>
    %c0_34 = arith.constant 0 : index
    %c16 = arith.constant 16 : index
    %74 = vector.load %arg15[%c0_34, %c16] : memref<8x32xf32, #tpu.memory_space<vmem>>, vector<8x8xf32>
    tpu.vector_store %arg15[%c0_34, %c16], %73 {strides = array<i32>} : memref<8x32xf32, #tpu.memory_space<vmem>>, vector<8x8xf32>,
    %75 = vector.extract_strided_slice %35 {offsets = [0, 24], sizes = [8, 8], strides = [1, 1]} : vector<8x32xbf16> to vector<8x8xbf16>
    %cst_35 = arith.constant -1.000000e+30 : f32
    %76 = vector.broadcast %cst_35 : f32 to vector<8x1xf32>
    %cst_36 = arith.constant 0.000000e+00 : f32
    %77 = vector.broadcast %cst_36 : f32 to vector<8x1xf32>
    %cst_37 = arith.constant 0.000000e+00 : f32
    %78 = vector.broadcast %cst_37 : f32 to vector<8x8xf32>
    %c0_i32_38 = arith.constant 0 : i32
    %79 = arith.subi %36, %c0_i32_38 : i32
    %80 = arith.addi %c0_i32_38, %79 : i32
    %c1_i32_39 = arith.constant 1 : i32
    %81:3 = scf.for %arg16 = %c0_i32_38 to %80 step %c1_i32_39 iter_args(%arg17 = %76, %arg18 = %77, %arg19 = %78) -> (vector<8x1xf32>, vector<8x1xf32>, vector<8x8xf32>)  : i32 {
      %c8_i32_51 = arith.constant 8 : i32
      %97 = arith.muli %arg16, %c8_i32_51 : i32
      %98 = tpu.assume_multiple %97, 8 : i32
      %99 = arith.index_cast %98 : i32 to index
      %c24_52 = arith.constant 24 : index
      %100 = vector.load %arg13[%99, %c24_52] : memref<8x32xbf16, #tpu.memory_space<vmem>>, vector<8x8xbf16>
      %101 = arith.index_cast %98 : i32 to index
      %c24_53 = arith.constant 24 : index
      %102 = vector.load %arg14[%101, %c24_53] : memref<8x32xbf16, #tpu.memory_space<vmem>>, vector<8x8xbf16>
      %cst_54 = arith.constant dense<0.000000e+00> : vector<8x8xf32>
      %103 = tpu.matmul %75, %100, %cst_54 {dimension_numbers = #tpu.dot_dimension_numbers<[1], [1], [0], [0], [0, 0, 1, 0], [], []>} : vector<8x8xbf16>, vector<8x8xbf16>, vector<8x8xf32> -> vector<8x8xf32>
      %cst_55 = arith.constant 0.353553385 : f32
      %104 = vector.broadcast %cst_55 : f32 to vector<8x8xf32>
      %105 = arith.mulf %103, %104 : vector<8x8xf32>
      %c8_i32_56 = arith.constant 8 : i32
      %106 = arith.muli %arg16, %c8_i32_56 : i32
      %107 = vector.broadcast %106 : i32 to vector<8x8xi32>
      %108 = arith.addi %107, %41 : vector<8x8xi32>
      %109 = arith.cmpi sle, %108, %40 : vector<8x8xi32>
      %cst_57 = arith.constant -1.000000e+30 : f32
      %110 = vector.broadcast %cst_57 : f32 to vector<8x8xf32>
      %111 = arith.select %109, %105, %110 : vector<8x8xi1>, vector<8x8xf32>
      %cst_58 = arith.constant dense<0xFF800000> : vector<8xf32>
      %112 = vector.multi_reduction <maximumf>, %111, %cst_58 [1] : vector<8x8xf32> to vector<8xf32>
      %113 = vector.shape_cast %112 : vector<8xf32> to vector<8x1xf32>
      %114 = arith.maximumf %arg17, %113 : vector<8x1xf32>
      %115 = arith.subf %arg17, %114 : vector<8x1xf32>
      %116 = math.exp %115 : vector<8x1xf32>
      %117 = vector.broadcast %114 : vector<8x1xf32> to vector<8x8xf32>
      %118 = arith.subf %111, %117 : vector<8x8xf32>
      %119 = math.exp %118 : vector<8x8xf32>
      %120 = arith.mulf %116, %arg18 : vector<8x1xf32>
      %cst_59 = arith.constant dense<0.000000e+00> : vector<8xf32>
      %121 = vector.multi_reduction <add>, %119, %cst_59 [1] : vector<8x8xf32> to vector<8xf32>
      %122 = vector.shape_cast %121 : vector<8xf32> to vector<8x1xf32>
      %123 = arith.addf %120, %122 : vector<8x1xf32>
      %124 = vector.broadcast %116 : vector<8x1xf32> to vector<8x8xf32>
      %125 = arith.mulf %124, %arg19 : vector<8x8xf32>
      %126 = arith.truncf %119 : vector<8x8xf32> to vector<8x8xbf16>
      %cst_60 = arith.constant dense<0.000000e+00> : vector<8x8xf32>
      %127 = tpu.matmul %126, %102, %cst_60 {dimension_numbers = #tpu.dot_dimension_numbers<[1], [0], [0], [1], [0, 0, 1, 1], [], []>} : vector<8x8xbf16>, vector<8x8xbf16>, vector<8x8xf32> -> vector<8x8xf32>
      %128 = arith.addf %125, %127 : vector<8x8xf32>
      scf.yield %114, %123, %128 : vector<8x1xf32>, vector<8x1xf32>, vector<8x8xf32>
    }
    %82 = tpu.reciprocal %81#1 {approx = true} : vector<8x1xf32> -> vector<8x1xf32>
    %83 = vector.broadcast %82 : vector<8x1xf32> to vector<8x8xf32>
    %84 = arith.mulf %81#2, %83 : vector<8x8xf32>
    %c0_40 = arith.constant 0 : index
    %c24 = arith.constant 24 : index
    %85 = vector.load %arg15[%c0_40, %c24] : memref<8x32xf32, #tpu.memory_space<vmem>>, vector<8x8xf32>
    tpu.vector_store %arg15[%c0_40, %c24], %84 {strides = array<i32>} : memref<8x32xf32, #tpu.memory_space<vmem>>, vector<8x8xf32>,
    %c0_41 = arith.constant 0 : index
    %c0_42 = arith.constant 0 : index
    %86 = vector.load %arg15[%c0_41, %c0_42] : memref<8x32xf32, #tpu.memory_space<vmem>>, vector<8x32xf32>
    %87 = arith.truncf %86 : vector<8x32xf32> to vector<8x32xbf16>
    %c0_43 = arith.constant 0 : index
    %c0_44 = arith.constant 0 : index
    %88 = vector.load %arg10[%c0_43, %c0_44] : memref<32x32xbf16, #tpu.memory_space<vmem>>, vector<32x32xbf16>
    %cst_45 = arith.constant dense<0.000000e+00> : vector<8x32xf32>
    %89 = tpu.matmul %87, %88, %cst_45 {dimension_numbers = #tpu.dot_dimension_numbers<[1], [0], [0], [1], [0, 0, 1, 1], [], []>} : vector<8x32xbf16>, vector<32x32xbf16>, vector<8x32xf32> -> vector<8x32xf32>
    %90 = arith.addf %28, %89 : vector<8x32xf32>
    %c0_46 = arith.constant 0 : index
    %c0_47 = arith.constant 0 : index
    %91 = vector.load %arg11[%c0_46, %c0_47] : memref<1x32xf32, #tpu.memory_space<vmem>>, vector<1x32xf32>
    %92 = vector.broadcast %91 : vector<1x32xf32> to vector<8x32xf32>
    %93 = arith.addf %90, %92 : vector<8x32xf32>
    %c0_48 = arith.constant 0 : index
    %c0_49 = arith.constant 0 : index
    %c0_50 = arith.constant 0 : index
    %94 = vector.load %arg12[%c0_48, %c0_49, %c0_50] : memref<1x8x32xf32, #tpu.memory_space<vmem>>, vector<1x8x32xf32>
    %95 = vector.shape_cast %94 : vector<1x8x32xf32> to vector<8x32xf32>
    %96 = vector.shape_cast %93 : vector<8x32xf32> to vector<1x8x32xf32>
    tpu.vector_store %arg12[%c0_48, %c0_49, %c0_50], %96 {strides = array<i32>} : memref<1x8x32xf32, #tpu.memory_space<vmem>>, vector<1x8x32xf32>,
    return
  }
  func.func @transform_0(%arg0: i32, %arg1: i32) -> (i32, i32, i32) {
    %c0_i32 = arith.constant 0 : i32
    %c0_i32_0 = arith.constant 0 : i32
    return %arg0, %arg1, %c0_i32 : i32, i32, i32
  }
  func.func @transform_1(%arg0: i32, %arg1: i32) -> (i32, i32, i32) {
    %c0_i32 = arith.constant 0 : i32
    %c0_i32_0 = arith.constant 0 : i32
    %c0_i32_1 = arith.constant 0 : i32
    return %arg0, %c0_i32, %c0_i32_0 : i32, i32, i32
  }
  func.func @transform_2(%arg0: i32, %arg1: i32) -> (i32, i32) {
    %c0_i32 = arith.constant 0 : i32
    %c0_i32_0 = arith.constant 0 : i32
    %c0_i32_1 = arith.constant 0 : i32
    return %c0_i32, %c0_i32_0 : i32, i32
  }
  func.func @transform_3(%arg0: i32, %arg1: i32) -> (i32, i32) {
    %c0_i32 = arith.constant 0 : i32
    %c0_i32_0 = arith.constant 0 : i32
    %c0_i32_1 = arith.constant 0 : i32
    return %c0_i32, %c0_i32_0 : i32, i32
  }
  func.func @transform_4(%arg0: i32, %arg1: i32) -> (i32, i32) {
    %c0_i32 = arith.constant 0 : i32
    %c0_i32_0 = arith.constant 0 : i32
    %c0_i32_1 = arith.constant 0 : i32
    return %c0_i32, %c0_i32_0 : i32, i32
  }
  func.func @transform_5(%arg0: i32, %arg1: i32) -> (i32, i32) {
    %c0_i32 = arith.constant 0 : i32
    %c0_i32_0 = arith.constant 0 : i32
    %c0_i32_1 = arith.constant 0 : i32
    return %c0_i32, %c0_i32_0 : i32, i32
  }
  func.func @transform_6(%arg0: i32, %arg1: i32) -> (i32, i32) {
    %c0_i32 = arith.constant 0 : i32
    %c0_i32_0 = arith.constant 0 : i32
    %c0_i32_1 = arith.constant 0 : i32
    return %c0_i32, %c0_i32_0 : i32, i32
  }
  func.func @transform_7(%arg0: i32, %arg1: i32) -> (i32, i32) {
    %c0_i32 = arith.constant 0 : i32
    %c0_i32_0 = arith.constant 0 : i32
    %c0_i32_1 = arith.constant 0 : i32
    return %c0_i32, %c0_i32_0 : i32, i32
  }
  func.func @transform_8(%arg0: i32, %arg1: i32) -> (i32, i32) {
    %c0_i32 = arith.constant 0 : i32
    %c0_i32_0 = arith.constant 0 : i32
    %c0_i32_1 = arith.constant 0 : i32
    return %c0_i32, %c0_i32_0 : i32, i32
  }
  func.func @transform_9(%arg0: i32, %arg1: i32) -> (i32, i32) {
    %c0_i32 = arith.constant 0 : i32
    %c0_i32_0 = arith.constant 0 : i32
    %c0_i32_1 = arith.constant 0 : i32
    return %c0_i32, %c0_i32_0 : i32, i32
  }
  func.func @transform_10(%arg0: i32, %arg1: i32) -> (i32, i32, i32) {
    %c0_i32 = arith.constant 0 : i32
    %c0_i32_0 = arith.constant 0 : i32
    return %arg0, %arg1, %c0_i32 : i32, i32, i32
  }
}

module attributes {stable_mosaic.version = 11 : i64} {
  func.func @_mlp_kernel(%arg0: i32, %arg1: i32, %arg2: i32, %arg3: memref<1x8x32xf32, #tpu.memory_space<vmem>>, %arg4: memref<1x32xf32, #tpu.memory_space<vmem>>, %arg5: memref<1x32xf32, #tpu.memory_space<vmem>>, %arg6: memref<32x64xbf16, #tpu.memory_space<vmem>>, %arg7: memref<1x64xf32, #tpu.memory_space<vmem>>, %arg8: memref<64x32xbf16, #tpu.memory_space<vmem>>, %arg9: memref<1x32xf32, #tpu.memory_space<vmem>>, %arg10: memref<1x8x32xf32, #tpu.memory_space<vmem>>, %arg11: memref<8x32xf32, #tpu.memory_space<vmem>>, %arg12: memref<8x32xf32, #tpu.memory_space<vmem>>) attributes {dimension_semantics = [#tpu.dimension_semantics<parallel>, #tpu.dimension_semantics<parallel>, #tpu.dimension_semantics<arbitrary>], iteration_bounds = array<i64: 2, 1, 1>, scalar_prefetch = 0 : i64, scratch_operands = 2 : i64, tpu.core_type = #tpu.core_type<tc>, window_params = [{transform_indices = @transform_0, window_bounds = array<i64: 1, 8, 32>}, {pipeline_mode = #tpu.pipeline_mode<synchronous>, transform_indices = @transform_1, window_bounds = array<i64: 1, 32>}, {pipeline_mode = #tpu.pipeline_mode<synchronous>, transform_indices = @transform_2, window_bounds = array<i64: 1, 32>}, {transform_indices = @transform_3, window_bounds = array<i64: 32, 64>}, {transform_indices = @transform_4, window_bounds = array<i64: 1, 64>}, {transform_indices = @transform_5, window_bounds = array<i64: 64, 32>}, {pipeline_mode = #tpu.pipeline_mode<synchronous>, transform_indices = @transform_6, window_bounds = array<i64: 1, 32>}, {transform_indices = @transform_7, window_bounds = array<i64: 1, 8, 32>}]} {
    %c0_i32 = arith.constant 0 : i32
    %0 = arith.cmpi eq, %arg2, %c0_i32 : i32
    %1 = arith.extui %0 : i1 to i32
    %c0_i32_0 = arith.constant 0 : i32
    %2 = arith.cmpi ne, %1, %c0_i32_0 : i32
    scf.if %2 {
      %c0_16 = arith.constant 0 : index
      %c0_17 = arith.constant 0 : index
      %c0_18 = arith.constant 0 : index
      %21 = vector.load %arg3[%c0_16, %c0_17, %c0_18] : memref<1x8x32xf32, #tpu.memory_space<vmem>>, vector<1x8x32xf32>
      %22 = vector.shape_cast %21 : vector<1x8x32xf32> to vector<8x32xf32>
      %c0_19 = arith.constant 0 : index
      %c0_20 = arith.constant 0 : index
      %23 = vector.load %arg4[%c0_19, %c0_20] : memref<1x32xf32, #tpu.memory_space<vmem>>, vector<1x32xf32>
      %c0_21 = arith.constant 0 : index
      %c0_22 = arith.constant 0 : index
      %24 = vector.load %arg5[%c0_21, %c0_22] : memref<1x32xf32, #tpu.memory_space<vmem>>, vector<1x32xf32>
      %cst_23 = arith.constant dense<0.000000e+00> : vector<8xf32>
      %25 = vector.multi_reduction <add>, %22, %cst_23 [1] : vector<8x32xf32> to vector<8xf32>
      %26 = vector.shape_cast %25 : vector<8xf32> to vector<8x1xf32>
      %cst_24 = arith.constant 3.200000e+01 : f32
      %27 = vector.broadcast %cst_24 : f32 to vector<8x1xf32>
      %28 = arith.divf %26, %27 : vector<8x1xf32>
      %29 = vector.broadcast %28 : vector<8x1xf32> to vector<8x32xf32>
      %30 = arith.subf %22, %29 : vector<8x32xf32>
      %31 = arith.mulf %30, %30 : vector<8x32xf32>
      %cst_25 = arith.constant dense<0.000000e+00> : vector<8xf32>
      %32 = vector.multi_reduction <add>, %31, %cst_25 [1] : vector<8x32xf32> to vector<8xf32>
      %33 = vector.shape_cast %32 : vector<8xf32> to vector<8x1xf32>
      %cst_26 = arith.constant 3.200000e+01 : f32
      %34 = vector.broadcast %cst_26 : f32 to vector<8x1xf32>
      %35 = arith.divf %33, %34 : vector<8x1xf32>
      %36 = vector.broadcast %28 : vector<8x1xf32> to vector<8x32xf32>
      %37 = arith.subf %22, %36 : vector<8x32xf32>
      %cst_27 = arith.constant 9.99999974E-6 : f32
      %38 = vector.broadcast %cst_27 : f32 to vector<8x1xf32>
      %39 = arith.addf %35, %38 : vector<8x1xf32>
      %40 = math.rsqrt %39 : vector<8x1xf32>
      %41 = vector.broadcast %40 : vector<8x1xf32> to vector<8x32xf32>
      %42 = arith.mulf %37, %41 : vector<8x32xf32>
      %43 = vector.broadcast %23 : vector<1x32xf32> to vector<8x32xf32>
      %44 = arith.mulf %42, %43 : vector<8x32xf32>
      %45 = vector.broadcast %24 : vector<1x32xf32> to vector<8x32xf32>
      %46 = arith.addf %44, %45 : vector<8x32xf32>
      %c0_28 = arith.constant 0 : index
      %c0_29 = arith.constant 0 : index
      %47 = vector.load %arg11[%c0_28, %c0_29] : memref<8x32xf32, #tpu.memory_space<vmem>>, vector<8x32xf32>
      tpu.vector_store %arg11[%c0_28, %c0_29], %46 {strides = array<i32>} : memref<8x32xf32, #tpu.memory_space<vmem>>, vector<8x32xf32>,
      %cst_30 = arith.constant 0.000000e+00 : f32
      %48 = vector.broadcast %cst_30 : f32 to vector<8x32xf32>
      %c0_31 = arith.constant 0 : index
      %c0_32 = arith.constant 0 : index
      %49 = vector.load %arg12[%c0_31, %c0_32] : memref<8x32xf32, #tpu.memory_space<vmem>>, vector<8x32xf32>
      tpu.vector_store %arg12[%c0_31, %c0_32], %48 {strides = array<i32>} : memref<8x32xf32, #tpu.memory_space<vmem>>, vector<8x32xf32>,
    } else {
    }
    %c0 = arith.constant 0 : index
    %c0_1 = arith.constant 0 : index
    %3 = vector.load %arg11[%c0, %c0_1] : memref<8x32xf32, #tpu.memory_space<vmem>>, vector<8x32xf32>
    %4 = arith.truncf %3 : vector<8x32xf32> to vector<8x32xbf16>
    %c0_2 = arith.constant 0 : index
    %c0_3 = arith.constant 0 : index
    %5 = vector.load %arg6[%c0_2, %c0_3] : memref<32x64xbf16, #tpu.memory_space<vmem>>, vector<32x64xbf16>
    %cst = arith.constant dense<0.000000e+00> : vector<8x64xf32>
    %6 = tpu.matmul %4, %5, %cst {dimension_numbers = #tpu.dot_dimension_numbers<[1], [0], [0], [1], [0, 0, 1, 1], [], []>} : vector<8x32xbf16>, vector<32x64xbf16>, vector<8x64xf32> -> vector<8x64xf32>
    %c0_4 = arith.constant 0 : index
    %c0_5 = arith.constant 0 : index
    %7 = vector.load %arg7[%c0_4, %c0_5] : memref<1x64xf32, #tpu.memory_space<vmem>>, vector<1x64xf32>
    %8 = vector.broadcast %7 : vector<1x64xf32> to vector<8x64xf32>
    %9 = arith.addf %6, %8 : vector<8x64xf32>
    %cst_6 = arith.constant 0.000000e+00 : f32
    %10 = vector.broadcast %cst_6 : f32 to vector<8x64xf32>
    %11 = arith.maximumf %9, %10 : vector<8x64xf32>
    %c0_7 = arith.constant 0 : index
    %c0_8 = arith.constant 0 : index
    %12 = vector.load %arg12[%c0_7, %c0_8] : memref<8x32xf32, #tpu.memory_space<vmem>>, vector<8x32xf32>
    %13 = arith.truncf %11 : vector<8x64xf32> to vector<8x64xbf16>
    %c0_9 = arith.constant 0 : index
    %c0_10 = arith.constant 0 : index
    %14 = vector.load %arg8[%c0_9, %c0_10] : memref<64x32xbf16, #tpu.memory_space<vmem>>, vector<64x32xbf16>
    %cst_11 = arith.constant dense<0.000000e+00> : vector<8x32xf32>
    %15 = tpu.matmul %13, %14, %cst_11 {dimension_numbers = #tpu.dot_dimension_numbers<[1], [0], [0], [1], [0, 0, 1, 1], [], []>} : vector<8x64xbf16>, vector<64x32xbf16>, vector<8x32xf32> -> vector<8x32xf32>
    %16 = arith.addf %12, %15 : vector<8x32xf32>
    %c0_12 = arith.constant 0 : index
    %c0_13 = arith.constant 0 : index
    %17 = vector.load %arg12[%c0_12, %c0_13] : memref<8x32xf32, #tpu.memory_space<vmem>>, vector<8x32xf32>
    tpu.vector_store %arg12[%c0_12, %c0_13], %16 {strides = array<i32>} : memref<8x32xf32, #tpu.memory_space<vmem>>, vector<8x32xf32>,
    %c0_i32_14 = arith.constant 0 : i32
    %18 = arith.cmpi eq, %arg2, %c0_i32_14 : i32
    %19 = arith.extui %18 : i1 to i32
    %c0_i32_15 = arith.constant 0 : i32
    %20 = arith.cmpi ne, %19, %c0_i32_15 : i32
    scf.if %20 {
      %c0_16 = arith.constant 0 : index
      %c0_17 = arith.constant 0 : index
      %21 = vector.load %arg11[%c0_16, %c0_17] : memref<8x32xf32, #tpu.memory_space<vmem>>, vector<8x32xf32>
      %c0_18 = arith.constant 0 : index
      %c0_19 = arith.constant 0 : index
      %22 = vector.load %arg12[%c0_18, %c0_19] : memref<8x32xf32, #tpu.memory_space<vmem>>, vector<8x32xf32>
      %23 = arith.addf %21, %22 : vector<8x32xf32>
      %c0_20 = arith.constant 0 : index
      %c0_21 = arith.constant 0 : index
      %24 = vector.load %arg9[%c0_20, %c0_21] : memref<1x32xf32, #tpu.memory_space<vmem>>, vector<1x32xf32>
      %25 = vector.broadcast %24 : vector<1x32xf32> to vector<8x32xf32>
      %26 = arith.addf %23, %25 : vector<8x32xf32>
      %c0_22 = arith.constant 0 : index
      %c0_23 = arith.constant 0 : index
      %c0_24 = arith.constant 0 : index
      %27 = vector.load %arg10[%c0_22, %c0_23, %c0_24] : memref<1x8x32xf32, #tpu.memory_space<vmem>>, vector<1x8x32xf32>
      %28 = vector.shape_cast %27 : vector<1x8x32xf32> to vector<8x32xf32>
      %29 = vector.shape_cast %26 : vector<8x32xf32> to vector<1x8x32xf32>
      tpu.vector_store %arg10[%c0_22, %c0_23, %c0_24], %29 {strides = array<i32>} : memref<1x8x32xf32, #tpu.memory_space<vmem>>, vector<1x8x32xf32>,
    } else {
    }
    return
  }
  func.func @transform_0(%arg0: i32, %arg1: i32, %arg2: i32) -> (i32, i32, i32) {
    %c0_i32 = arith.constant 0 : i32
    %c0_i32_0 = arith.constant 0 : i32
    return %arg0, %arg1, %c0_i32 : i32, i32, i32
  }
  func.func @transform_1(%arg0: i32, %arg1: i32, %arg2: i32) -> (i32, i32) {
    %c0_i32 = arith.constant 0 : i32
    %c0_i32_0 = arith.constant 0 : i32
    %c0_i32_1 = arith.constant 0 : i32
    return %c0_i32, %c0_i32_0 : i32, i32
  }
  func.func @transform_2(%arg0: i32, %arg1: i32, %arg2: i32) -> (i32, i32) {
    %c0_i32 = arith.constant 0 : i32
    %c0_i32_0 = arith.constant 0 : i32
    %c0_i32_1 = arith.constant 0 : i32
    return %c0_i32, %c0_i32_0 : i32, i32
  }
  func.func @transform_3(%arg0: i32, %arg1: i32, %arg2: i32) -> (i32, i32) {
    %c0_i32 = arith.constant 0 : i32
    %c0_i32_0 = arith.constant 0 : i32
    return %c0_i32, %arg2 : i32, i32
  }
  func.func @transform_4(%arg0: i32, %arg1: i32, %arg2: i32) -> (i32, i32) {
    %c0_i32 = arith.constant 0 : i32
    %c0_i32_0 = arith.constant 0 : i32
    return %c0_i32, %arg2 : i32, i32
  }
  func.func @transform_5(%arg0: i32, %arg1: i32, %arg2: i32) -> (i32, i32) {
    %c0_i32 = arith.constant 0 : i32
    %c0_i32_0 = arith.constant 0 : i32
    return %arg2, %c0_i32 : i32, i32
  }
  func.func @transform_6(%arg0: i32, %arg1: i32, %arg2: i32) -> (i32, i32) {
    %c0_i32 = arith.constant 0 : i32
    %c0_i32_0 = arith.constant 0 : i32
    %c0_i32_1 = arith.constant 0 : i32
    return %c0_i32, %c0_i32_0 : i32, i32
  }
  func.func @transform_7(%arg0: i32, %arg1: i32, %arg2: i32) -> (i32, i32, i32) {
    %c0_i32 = arith.constant 0 : i32
    %c0_i32_0 = arith.constant 0 : i32
    return %arg0, %arg1, %c0_i32 : i32, i32, i32
  }
}

</mosaic_0001>

<bundles_post_ra>
// kernel: decoder_block.5
= control target key start
LH: loop header
LB: loop body
LE: loop exit
PB: predicated region body
PF: predicated region fallthrough
CT: control target
= control target key end

     0   :  { %s1670_s0 = inlined_call_operand.hbm [shape: f32[2,8,32], index: 0, kind: input, shape index: {}]   ;;  %s1671_s1 = inlined_call_operand.hbm [shape: f32[1,32], index: 1, kind: input, shape index: {}]   ;;  %s1672_s2 = inlined_call_operand.hbm [shape: f32[1,32], index: 2, kind: input, shape index: {}]   ;;  %s1673_s3 = inlined_call_operand.hbm [shape: bf16[32,64], index: 3, kind: input, shape index: {}]   ;;  %s1674_s4 = inlined_call_operand.hbm [shape: f32[1,64], index: 4, kind: input, shape index: {}]   ;;  %s1675_s5 = inlined_call_operand.hbm [shape: bf16[64,32], index: 5, kind: input, shape index: {}]   ;;  %s1676_s6 = inlined_call_operand.hbm [shape: f32[1,32], index: 6, kind: input, shape index: {}]   ;;  %s1677_s7 = inlined_call_operand.hbm [shape: f32[2,8,32], index: 7, kind: output, shape index: {}]  }
   0x1   :  { %1683 = sst [smem:[#allocation22_spill]] %s1671_s1 }
   0x2   :  { %1684 = sst [smem:[#allocation23_spill]] %s1673_s3 }
   0x3   :  { %12 = vsyncpa [#allocation5], 0 }
   0x4   :  { %14 = vsyncpa [#allocation5 + $0x1], 0 }
   0x5   :  { %15 = vsyncpa [#allocation8], 0 }
   0x6   :  { %16 = vsyncpa [#allocation11], 0 }
   0x7   :  { %17 = vsyncpa [#allocation14], 0 }
   0x8   :  { %18 = vsyncpa [#allocation6], 0 }
   0x9   :  { %20 = vsyncpa [#allocation6 + $0x1], 0  ;;  %s1331_s24 = smov 0   ;;  %s1333_s25 = smov 0  }
   0xa   :  { %s1335_s26 = smov 0   ;;  %s1337_s27 = smov 0  }
   0xb   :  { %s1339_s28 = smov 0   ;;  %s1341_s29 = smov 0  }
   0xc LB: > { %s1681_s30 = sadd.s32 4294967295, %s1277_s29   ;;  %p787_p0 = scmp.ge.s32.totalorder %s1277_s29, 1  ;;  %s1277_s29 = sphi %s1341_s29, %s26_s29   ;;  %s1273_s28 = sphi %s1339_s28, %s1707_s28   ;;  %s1269_s27 = sphi %s1337_s27, %s1706_s27   ;;  %s1265_s26 = sphi %s1335_s26, %s1705_s26   ;;  %s1261_s25 = sphi %s1333_s25, %s1704_s25   ;;  %s1257_s24 = sphi %s1331_s24, %s1703_s24  }
   0xd   : > { %p1365_p1 = scmp.eq.s32.totalorder %s1681_s30, 0  ;;  %p247_p2 = scmp.lt.s32.totalorder %s1277_s29, 3 }
   0xe   : > { %s1279_s10 = smov [#allocation7]   ;;  %s1280_s12 = smov [#allocation10]  }
   0xf   : > { %s1685_s8 = scalar_select %p1365_p1, 1, 0 }
  0x10   : > { %p1370_p3 = pnand %p787_p0, %p247_p2  ;;  %s260_s11 = sshll.u32 %s1279_s10, 4  ;;  %s261_s11 = int_to_ptr.vmem [resolvable:$true] %s260_s11 }
  0x11   : > { %s283_s13 = sshll.u32 %s1280_s12, 4  ;;  %s1281_s15 = smov [#allocation13]   ;;  %s1383_s13 = int_to_ptr.vmem [resolvable:$true] %s283_s13 }
  0x12   : > { %s1686_s9 = scalar_select %p1370_p3, 1, 0 }
  0x13   : > { %p878_p5 = pneg %p1370_p3  ;;  %s1385_s16 = sshll.u32 %s1281_s15, 4  ;;  %s313_s16 = int_to_ptr.vmem [resolvable:$true] %s1385_s16 }
  0x14   : > { %s1688_s1 = sld [smem:[#allocation22_spill]] }
  0x15   : > { %p1379_p6 = pnand %p878_p5, %p1365_p1 }
  0x17   : > { %p1395_p8 = pneg %p1379_p6 }
  0x1a   : > { %s985_s19 = scalar_lea.hbm %s1688_s1, 16 }
  0x1b   : > { %p986_p7 = scmp.ne.s32.totalorder %s1688_s1, %s985_s19  ;;  %p992_p11 = scmp.lt.u32.totalorder %s985_s19, %s1688_s1 }
  0x1d   : > { %p988_p9 = pnand %p1395_p8, %p986_p7 }
  0x1f   : > { %p989_p10 = pneg %p988_p9 }
  0x21   : > { %p994_p12 = pnand %p992_p11, %p989_p10 }
  0x23   : > { %997 = shalt.err (!%p994_p12)
}
  0x24   : > { %s998_s12 = scalar_lea.vmem %s261_s11, 16  ;;  %s1005_s15 = scalar_lea.vmem %s261_s11, 32 }
  0x25   : > { %p999_p13 = scmp.ne.s32.totalorder %s261_s11, %s998_s12  ;;  %p1006_p5 = scmp.lt.s32.totalorder %s261_s11, %s261_s11 }
  0x26   : > { %p1007_p4 = scmp.lt.s32.totalorder %s1005_s15, %s998_s12 }
  0x27   : > { %p1001_p0 = pnand %p999_p13, %p1395_p8 }
  0x28   : > { %p1008_p3 = por %p1007_p4, %p1006_p5 }
  0x29   : > { %p1002_p2 = pneg %p1001_p0 }
  0x2b   : > { %p1009_p1 = pnand %p1008_p3, %p1002_p2 }
  0x2d   : > { %1012 = shalt.err (!%p1009_p1)
}
  0x2e   : > { %881 = dma.hbm_to_vmem [thread:$0]  (!%p1379_p6), %s1688_s1, 16, %s261_s11, [#allocation8]  }
  0x2f   : > { %s1690_s3 = sld [smem:[#allocation23_spill]] }
  0x35   : > { %s1013_s21 = scalar_lea.hbm %s1690_s3, 256 }
  0x36   : > { %p1014_p7 = scmp.ne.s32.totalorder %s1690_s3, %s1013_s21  ;;  %p1020_p1 = scmp.lt.u32.totalorder %s1013_s21, %s1690_s3 }
  0x38   : > { %p1016_p9 = pnand %p1014_p7, %p1395_p8 }
  0x3a   : > { %p1017_p4 = pneg %p1016_p9 }
  0x3c   : > { %p1022_p3 = pnand %p1020_p1, %p1017_p4 }
  0x3e   : > { %1025 = shalt.err (!%p1022_p3)
}
  0x3f   : > { %s1026_s11 = scalar_lea.vmem %s1383_s13, 256  ;;  %p1034_p13 = scmp.lt.s32.totalorder %s1383_s13, %s1383_s13 }
  0x40   : > { %p1027_p10 = scmp.ne.s32.totalorder %s1383_s13, %s1026_s11  ;;  %p1035_p0 = scmp.lt.s32.totalorder %s1026_s11, %s1026_s11 }
  0x42   : > { %p1029_p11 = pnand %p1027_p10, %p1395_p8  ;;  %p1036_p2 = por %p1035_p0, %p1034_p13 }
  0x44   : > { %p1030_p12 = pneg %p1029_p11 }
  0x46   : > { %p1037_p5 = pnand %p1036_p2, %p1030_p12 }
  0x48   : > { %1040 = shalt.err (!%p1037_p5)
}
  0x49   : > { %s1282_s17 = smov 64   ;;  %s1283_s18 = smov 4  }
  0x4a   : > { %887 = dma.hbm_to_vmem [thread:$0]  (!%p1379_p6), %s1690_s3, 256, %s1383_s13, [#allocation11], %s1282_s17, %s1282_s17, %s1283_s18  }
  0x4b   : > { %s1041_s10 = scalar_lea.hbm %s1675_s5, 512 }
  0x4c   : > { %p1042_p7 = scmp.ne.s32.totalorder %s1675_s5, %s1041_s10  ;;  %p1048_p1 = scmp.lt.u32.totalorder %s1041_s10, %s1675_s5 }
  0x4e   : > { %p1044_p9 = pnand %p1042_p7, %p1395_p8 }
  0x50   : > { %p1045_p4 = pneg %p1044_p9 }
  0x52   : > { %p1050_p3 = pnand %p1048_p1, %p1045_p4 }
  0x54   : > { %1053 = shalt.err (!%p1050_p3)
}
  0x55   : > { %s1054_s19 = scalar_lea.vmem %s313_s16, 512  ;;  %p1062_p13 = scmp.lt.s32.totalorder %s313_s16, %s313_s16 }
  0x56   : > { %p1055_p10 = scmp.ne.s32.totalorder %s313_s16, %s1054_s19  ;;  %p1063_p0 = scmp.lt.s32.totalorder %s1054_s19, %s1054_s19 }
  0x58   : > { %p1057_p11 = pnand %p1055_p10, %p1395_p8  ;;  %p1064_p2 = por %p1063_p0, %p1062_p13 }
  0x5a   : > { %p1058_p12 = pneg %p1057_p11 }
  0x5c   : > { %p1065_p5 = pnand %p1064_p2, %p1058_p12 }
  0x5e   : > { %1068 = shalt.err (!%p1065_p5)
}
  0x5f   : > { %893 = dma.hbm_to_vmem [thread:$0]  (!%p1379_p6), %s1675_s5, 512, %s313_s16, [#allocation14], %s1282_s17, %s1282_s17, %s1283_s18  }
  0x60   : > { %s1284_s30 = smov [#allocation9]   ;;  %s1285_s23 = smov [#allocation12]  }
  0x61   : > { %s271_s21 = sshll.u32 %s1284_s30, 4  ;;  %s299_s10 = sshll.u32 %s1285_s23, 4  ;;  %s272_s21 = int_to_ptr.vmem [resolvable:$true] %s271_s21  ;;  %s300_s10 = int_to_ptr.vmem [resolvable:$true] %s299_s10 }
  0x62   : > { %s1069_s11 = scalar_lea.hbm %s1672_s2, 16 }
  0x63   : > { %p1070_p7 = scmp.ne.s32.totalorder %s1672_s2, %s1069_s11  ;;  %p1076_p1 = scmp.lt.u32.totalorder %s1069_s11, %s1672_s2 }
  0x65   : > { %p1072_p9 = pnand %p1070_p7, %p1395_p8 }
  0x67   : > { %p1073_p4 = pneg %p1072_p9 }
  0x69   : > { %p1078_p3 = pnand %p1076_p1, %p1073_p4 }
  0x6b   : > { %1081 = shalt.err (!%p1078_p3)
}
  0x6c   : > { %s1082_s16 = scalar_lea.vmem %s272_s21, 16  ;;  %s1089_s17 = scalar_lea.vmem %s272_s21, 32 }
  0x6d   : > { %p1083_p10 = scmp.ne.s32.totalorder %s272_s21, %s1082_s16  ;;  %p1090_p13 = scmp.lt.s32.totalorder %s272_s21, %s272_s21 }
  0x6e   : > { %p1091_p0 = scmp.lt.s32.totalorder %s1089_s17, %s1082_s16 }
  0x6f   : > { %p1085_p11 = pnand %p1083_p10, %p1395_p8 }
  0x70   : > { %p1092_p2 = por %p1091_p0, %p1090_p13 }
  0x71   : > { %p1086_p12 = pneg %p1085_p11 }
  0x73   : > { %p1093_p5 = pnand %p1092_p2, %p1086_p12 }
  0x75   : > { %1096 = shalt.err (!%p1093_p5)
}
  0x76   : > { %884 = dma.hbm_to_vmem [thread:$0]  (!%p1379_p6), %s1672_s2, 16, %s272_s21, [#allocation8]  }
  0x77   : > { %s1097_s30 = scalar_lea.hbm %s1674_s4, 16 }
  0x78   : > { %p1098_p7 = scmp.ne.s32.totalorder %s1674_s4, %s1097_s30  ;;  %p1104_p1 = scmp.lt.u32.totalorder %s1097_s30, %s1674_s4 }
  0x7a   : > { %p1100_p9 = pnand %p1098_p7, %p1395_p8 }
  0x7c   : > { %p1101_p4 = pneg %p1100_p9 }
  0x7e   : > { %p1106_p3 = pnand %p1104_p1, %p1101_p4 }
  0x80   : > { %1109 = shalt.err (!%p1106_p3)
}
  0x81   : > { %s1110_s19 = scalar_lea.vmem %s300_s10, 16  ;;  %s1117_s21 = scalar_lea.vmem %s300_s10, 32 }
  0x82   : > { %p1111_p10 = scmp.ne.s32.totalorder %s300_s10, %s1110_s19  ;;  %p1118_p13 = scmp.lt.s32.totalorder %s300_s10, %s300_s10 }
  0x83   : > { %p1119_p0 = scmp.lt.s32.totalorder %s1117_s21, %s1110_s19 }
  0x84   : > { %p1113_p11 = pnand %p1111_p10, %p1395_p8 }
  0x85   : > { %p1120_p2 = por %p1119_p0, %p1118_p13 }
  0x86   : > { %p1114_p12 = pneg %p1113_p11 }
  0x88   : > { %p1121_p5 = pnand %p1120_p2, %p1114_p12 }
  0x8a   : > { %1124 = shalt.err (!%p1121_p5)
}
  0x8b   : > { %890 = dma.hbm_to_vmem [thread:$0]  (!%p1379_p6), %s1674_s4, 16, %s300_s10, [#allocation11]  }
  0x8c   : > { %s1286_s17 = smov [#allocation15]   ;;  %s1125_s20 = scalar_lea.hbm %s1676_s6, 16 }
  0x8d   : > { %s326_s1 = sshll.u32 %s1286_s17, 4  ;;  %p1126_p7 = scmp.ne.s32.totalorder %s1676_s6, %s1125_s20  ;;  %s327_s1 = int_to_ptr.vmem [resolvable:$true] %s326_s1 }
  0x8e   : > { %p1132_p1 = scmp.lt.u32.totalorder %s1125_s20, %s1676_s6 }
  0x8f   : > { %p1128_p9 = pnand %p1126_p7, %p1395_p8 }
  0x91   : > { %p1129_p4 = pneg %p1128_p9 }
  0x93   : > { %p1134_p3 = pnand %p1132_p1, %p1129_p4 }
  0x95   : > { %1137 = shalt.err (!%p1134_p3)
}
  0x96   : > { %s1138_s10 = scalar_lea.vmem %s327_s1, 16  ;;  %s1145_s11 = scalar_lea.vmem %s327_s1, 32 }
  0x97   : > { %p1139_p10 = scmp.ne.s32.totalorder %s327_s1, %s1138_s10  ;;  %p1146_p13 = scmp.lt.s32.totalorder %s327_s1, %s327_s1 }
  0x98   : > { %p1147_p0 = scmp.lt.s32.totalorder %s1145_s11, %s1138_s10 }
  0x99   : > { %p1141_p11 = pnand %p1139_p10, %p1395_p8 }
  0x9a   : > { %p1148_p2 = por %p1147_p0, %p1146_p13 }
  0x9b   : > { %p1142_p12 = pneg %p1141_p11 }
  0x9d   : > { %p1149_p5 = pnand %p1148_p2, %p1142_p12 }
  0x9f   : > { %1152 = shalt.err (!%p1149_p5)
}
  0xa0   : > { %896 = dma.hbm_to_vmem [thread:$0]  (!%p1379_p6), %s1676_s6, 16, %s327_s1, [#allocation14]  }
  0xa1   : > { %s786_s22 = sadd.s32 4294967294, %s1277_s29   ;;  %s45_s13 = sadd.s32 1, %s1273_s28 }
  0xa2   : > { %p47_p8 = scmp.ge.s32.totalorder %s45_s13, 2  ;;  %s54_s14 = sadd.s32 1, %s1265_s26 }
  0xa3   : > { %p61_p7 = scmp.ne.s32.totalorder %s1265_s26, %s1261_s25  ;;  %p62_p9 = scmp.eq.s32.totalorder %s1277_s29, 0 }
  0xa4   : > { %s1709_s13 = smov (%p47_p8, %s45_s13), 0  ;;  %p67_p1 = scmp.ne.s32.totalorder %s1261_s25, %s1257_s24 }
  0xa5   : > { %p1515_p4 = por %p62_p9, %p61_p7  ;;  %s49_s17 = ssub.s32 %s1273_s28, %s1709_s13 }
  0xa6   : > { %s1692_s1 = sadd.s32 4294967295, %s1277_s29   ;;  %p52_p3 = scmp.eq.s32.totalorder %s49_s17, 0 }
  0xa7   : > { %p234_p6 = scmp.eq.s32.totalorder %s1692_s1, 1  ;;  %p1693_p10 = scmp.ne.s32.totalorder %s1685_s8, 0 }
  0xa8   : > { %p240_p13 = scmp.eq.s32.totalorder %s786_s22, 1  ;;  %p911_p2 = scmp.lt.s32.totalorder %s1277_s29, 2 }
  0xa9   : > { %p1527_p11 = por %p1693_p10, %p67_p1  ;;  %p1531_p12 = por %p234_p6, %p61_p7 }
  0xaa   : > { %s1536_s20 = scalar_select %p52_p3, %s1265_s26, %s54_s14  }
  0xab   : > { %s1695_s3 = scalar_select %p1531_p12, 1, 0 }
  0xac   : > { %p1538_p0 = por %p240_p13, %p67_p1  ;;  %s337_s23 = sand.u32 1, %s1265_s26  }
  0xad   : > { %s796_s12 = sshll.u32 %s1273_s28, 7  ;;  %s795_s15 = sshll.u32 %s337_s23, 3 }
  0xae   : > { %s1696_s30 = scalar_select %p1538_p0, 1, 0 }
  0xaf   : > { %s1548_s19 = scalar_lea.hbm %s1670_s0, %s796_s12  ;;  %s341_s21 = scalar_lea.vmem [#allocation4], %s795_s15 }
  0xb0   : > { %s349_s22 = sshll.u32 %s341_s21, 4  ;;  %p1552_p5 = pnand %p911_p2, %p1515_p4  ;;  %s1556_s22 = int_to_ptr.vmem [resolvable:$true] %s349_s22 }
  0xb1   : > { %s338_s17 = scalar_lea.sflag [#allocation5], %s337_s23  ;;  %s1153_s1 = scalar_lea.hbm %s1548_s19, 128 }
  0xb2   : > { %p1154_p8 = scmp.ne.s32.totalorder %s1548_s19, %s1153_s1  ;;  %p1155_p7 = pneg %p1552_p5 }
  0xb3   : > { %s1158_s16 = scalar_lea.hbm %s1670_s0, 256  ;;  %p1159_p4 = scmp.lt.u32.totalorder %s1548_s19, %s1670_s0 }
  0xb4   : > { %p1156_p9 = pnand %p1155_p7, %p1154_p8  ;;  %p1160_p6 = scmp.lt.u32.totalorder %s1158_s16, %s1153_s1 }
  0xb5   : > { %p1162_p10 = scmp.lt.u32.totalorder %s1153_s1, %s1548_s19 }
  0xb6   : > { %p1157_p1 = pneg %p1156_p9  ;;  %p1161_p3 = por %p1160_p6, %p1159_p4 }
  0xb8   : > { %p1163_p13 = por %p1162_p10, %p1161_p3 }
  0xba   : > { %p1164_p2 = pnand %p1163_p13, %p1157_p1 }
  0xbc   : > { %1167 = shalt.err (!%p1164_p2)
}
  0xbd   : > { %s1168_s23 = scalar_lea.vmem %s1556_s22, 128  ;;  %s1287_s21 = smov [#allocation4]  }
  0xbe   : > { %p1169_p8 = scmp.ne.s32.totalorder %s1556_s22, %s1168_s23  ;;  %s1173_s12 = sshll.u32 %s1287_s21, 4  ;;  %s1174_s12 = int_to_ptr.vmem [resolvable:$false] %s1173_s12 }
  0xbf   : > { %s1175_s15 = scalar_lea.vmem %s1174_s12, 256  ;;  %p1176_p12 = scmp.lt.s32.totalorder %s1556_s22, %s1174_s12 }
  0xc0   : > { %p1171_p9 = pnand %p1169_p8, %p1155_p7  ;;  %p1177_p4 = scmp.lt.s32.totalorder %s1175_s15, %s1168_s23 }
  0xc2   : > { %p1172_p0 = pneg %p1171_p9  ;;  %p1178_p6 = por %p1177_p4, %p1176_p12 }
  0xc4   : > { %p1179_p3 = pnand %p1178_p6, %p1172_p0 }
  0xc6   : > { %1182 = shalt.err (!%p1179_p3)
}
  0xc7   : > { %900 = dma.hbm_to_vmem [thread:$0]  (!%p1552_p5), %s1548_s19, 128, %s1556_s22, %s338_s17  }
  0xc8   : > { %p1698_p1 = scmp.ne.s32.totalorder %s1686_s9, 0 }
  0xc9   : > { %s1586_s1 = sand.u32 (!%p1698_p1), 1, %s1261_s25  }
  0xca   : > { %358 = sbr.rel (%p1698_p1) target bundleno = 999 (0x3e7), region = 48  ;;  %s798_s16 = sshll.u32 (!%p1698_p1), %s1586_s1, 3 }
  0xcb   : > { %s361_s10 = scalar_lea.sflag (!%p1698_p1), [#allocation5], %s1586_s1  ;;  %s364_s11 = scalar_lea.vmem (!%p1698_p1), [#allocation4], %s798_s16 }
  0xd1   : > { %1236 = dma.done.wait (%p1527_p11), %s361_s10, 128  }
  0xd2   : > { %1238 = vsyncadd (%p1527_p11), %s361_s10, 4294967168  ;;  %p1699_p12 = scmp.ne.s32.totalorder %s1685_s8, 0 }
  0xd4   : > { %1240 = dma.done.wait (%p1699_p12), [#allocation8], 32  }
  0xd5   : > { %1242 = vsyncadd (%p1699_p12), [#allocation8], 4294967264 }
  0xd6   : > { %1244 = dma.done.wait (%p1699_p12), [#allocation11], 272  }
  0xd7   : > { %1246 = vsyncadd (%p1699_p12), [#allocation11], 4294967024 }
  0xd8   : > { %1248 = dma.done.wait (%p1699_p12), [#allocation14], 528  }
  0xd9   : > { %1250 = vsyncadd (%p1699_p12), [#allocation14], 4294966768  ;;  %vm428_vm0 = vcmask 261120   ;;  %v425_v0 = vld [vmem:[%s364_s11] sm:$0xff]  ;;  %v977_v7 = vld [vmem:[#allocation10] sm:$0xff]   ;;  %v1288_v8 = vmov 0.0  }
  0xda   : > { %v429_v1 = vsel %vm428_vm0, %v425_v0, 0.0  ;;  %830 = vmatprep.subr.bf16.mxu0 %v1288_v8  ;;  %458 = vst.msk [vmem:[#allocation3] sm:$0xff] %vm428_vm0, %v1288_v8  ;;  %vm1289_vm1 = vmmov 0   ;;  %v978_v9 = vld [vmem:[#allocation10 + $0x8] sm:$0xff]   ;;  %838 = vmatprep.subr.bf16.mxu1 %v1288_v8  ;;  %v979_v10 = vld [vmem:[#allocation13] sm:$0xff]   ;;  %v980_v11 = vld [vmem:[#allocation13 + $0x8] sm:$0xff]  }
  0xdb   : > { %430 = vadd.xlane.f32.xlu0 %v429_v1  ;;  %834 = vmatprep.mubr.msk.bf16.mxu0 %vm1289_vm1, %v1288_v8  ;;  %v806_v16 = vld [vmem:[#allocation7] ss:$0 sm:$0xff]  ;;  %v807_v18 = vld [vmem:[#allocation9] ss:$0 sm:$0xff]  ;;  %v981_v23 = vld [vmem:[#allocation13 + $0x10] sm:$0xff]   ;;  %vm563_vm2 = vcmask 523264  }
  0xdc   : > { %831 = vmatpush3.bf16.msra.mxu0 %v977_v7  ;;  %846 = vmatprep.mubr.msk.bf16.mxu1 %vm1289_vm1, %v1288_v8  ;;  %v982_v24 = vld [vmem:[#allocation13 + $0x18] sm:$0xff]   ;;  %v817_v40 = vld [vmem:[#allocation15] ss:$0 sm:$0xff]  ;;  %s819_s8 = sshll.u32 %s1269_s27, 7  ;;  %s418_s9 = scalar_lea.vmem [#allocation16], %s798_s16 }
  0xdd   : > { %832 = vmatprep.subr.bf16.mxu0 %v1288_v8  ;;  %839 = vmatpush3.bf16.msra.mxu1 %v979_v10  ;;  %v808_v25 = vld [vmem:[#allocation12] ss:$0 sm:$0xff]  ;;  %s639_s18 = sshll.u32 %s418_s9, 4  ;;  %s1620_s14 = scalar_lea.hbm %s1677_s7, %s819_s8  ;;  %s1622_s18 = int_to_ptr.vmem [resolvable:$true] %s639_s18 }
  0xde   : > { %840 = vmatprep.subr.bf16.mxu1 %v1288_v8  ;;  %s625_s17 = scalar_lea.sflag [#allocation6], %s1586_s1  ;;  %s1183_s23 = scalar_lea.vmem %s1622_s18, 128 }
  0xdf   : > { %p1184_p11 = scmp.ne.s32.totalorder %s1622_s18, %s1183_s23  ;;  %p1700_p0 = scmp.ne.s32.totalorder %s1695_s3, 0 }
  0xe0   : > { %833 = vmatpush3.bf16.msra.mxu0 %v978_v9  ;;  %s1290_s27 = smov [#allocation16]  }
  0xe1   : > { %841 = vmatpush3.bf16.msra.mxu1 %v980_v11  ;;  %v529_v33 = vld [vmem:[#allocation3] sm:$0xff]  ;;  %p1185_p5 = pnand %p1184_p11, %p1700_p0  ;;  %s1187_s21 = sshll.u32 %s1290_s27, 4  ;;  %s1188_s21 = int_to_ptr.vmem [resolvable:$false] %s1187_s21 }
  0xe2   : > { %842 = vmatprep.subr.bf16.mxu1 %v1288_v8  ;;  %s1189_s12 = scalar_lea.vmem %s1188_s21, 256  ;;  %p1190_p10 = scmp.lt.s32.totalorder %s1622_s18, %s1188_s21 }
  0xe3   : > { %p1186_p7 = pneg %p1185_p5  ;;  %p1191_p13 = scmp.lt.s32.totalorder %s1189_s12, %s1183_s23 }
  0xe5   : > { %843 = vmatpush3.bf16.msra.mxu1 %v981_v23  ;;  %p1192_p2 = por %p1191_p13, %p1190_p10 }
  0xe6   : > { %844 = vmatprep.subr.bf16.mxu1 %v1288_v8 }
  0xe7   : > { %p1193_p8 = pnand %p1192_p2, %p1186_p7 }
  0xe9   : > { %845 = vmatpush3.bf16.msra.mxu1 %v982_v24 }
 0x168   : > { %v431_v2 = vpop.xlane.xlu0 %430 }
 0x169   : > { %v433_v3 = vmul.f32 0.03125, %v431_v2 }
 0x16b   : > { %v434_v4 = vsub.f32 %v425_v0, %v433_v3 }
 0x16d   : > { %v435_v5 = vmul.f32 %v434_v4, %v434_v4 }
 0x16f   : > { %v436_v6 = vsel %vm428_vm0, %v435_v5, 0.0 }
 0x170   : > { %437 = vadd.xlane.f32.xlu0 %v436_v6 }
 0x1fd   : > { %v438_v12 = vpop.xlane.xlu0 %437 }
 0x1fe   : > { %v439_v13 = vmul.f32 0.03125, %v438_v12 }
 0x200   : > { %v440_v14 = vadd.f32 1e-05, %v439_v13 }
 0x202   : > { %983 = vrsqrt.f32 %v440_v14 }
 0x20c   : > { %v984_v15 = vpop.eup %983 }
 0x20d   : > { %v442_v17 = vmul.f32 %v984_v15, %v434_v4 }
 0x20f   : > { %v449_v19 = vmul.f32 %v806_v16, %v442_v17 }
 0x211   : > { %v456_v20 = vadd.f32 %v807_v18, %v449_v19 }
 0x213   : > { %457 = vst.msk [vmem:[#allocation2] sm:$0xff] %vm428_vm0, %v456_v20 }
 0x21a   : > { %v459_v21 = vld [vmem:[#allocation2] sm:$0xff] }
 0x21b   : > { %v460_v22 = vpack.c.bf16 %v459_v21, %v459_v21 }
 0x21d   : > { %835 = vmatmul.mubr.msk.bf16.vlgmr.msra.gmra.mrb[0].mxu0 %vm428_vm0, %v460_v22 }
 0x2f0   : > { %v522_v26 = vpop.f32.mrb[0].mxu0 }
 0x2f1   : > { %v523_v27 = vadd.f32 %v808_v25, %v522_v26  ;;  %v836_v28 = vpop.f32.mrb[1].mxu0 }
 0x2f2   : > { %v525_v29 = vpop.f32.mrb[2].mxu0 }
 0x2f3   : > { %v528_v30 = vmax.f32 %v523_v27, 0.0  ;;  %v837_v31 = vpop.f32.mrb[3].mxu0 }
 0x2f5   : > { %v530_v32 = vpack.c.bf16 %v528_v30, %v528_v30 }
 0x2f7   : > { %847 = vmatmul.mubr.msk.bf16.vlgmr.msra.gmra.mrb[0].mxu1 %vm563_vm2, %v530_v32 }
 0x3ca   : > { %v601_v34 = vpop.f32.mrb[0].mxu1 }
 0x3cb   : > { %v607_v35 = vadd.f32 %v601_v34, %v529_v33  ;;  %v848_v36 = vpop.f32.mrb[1].mxu1 }
 0x3cc   : > { %v604_v37 = vpop.f32.mrb[2].mxu1 }
 0x3cd   : > { %608 = vst.msk [vmem:[#allocation3] sm:$0xff] %vm428_vm0, %v607_v35  ;;  %v849_v38 = vpop.f32.mrb[3].mxu1 }
 0x3d4   : > { %v613_v39 = vld [vmem:[#allocation3] sm:$0xff] }
 0x3d5   : > { %v614_v41 = vadd.f32 %v613_v39, %v459_v21 }
 0x3d7   : > { %v622_v42 = vadd.f32 %v817_v40, %v614_v41 }
 0x3d9   : > { %623 = vst.msk [vmem:[%s418_s9] sm:$0xff] %vm428_vm0, %v622_v42 }
 0x3da   : > { %1196 = shalt.err (!%p1193_p8)
}
 0x3db   : > { %s1197_s15 = scalar_lea.hbm %s1620_s14, 128  ;;  %s1201_s10 = scalar_lea.hbm %s1677_s7, 256 }
 0x3dc   : > { %p1198_p9 = scmp.ne.s32.totalorder %s1620_s14, %s1197_s15  ;;  %p1202_p3 = scmp.lt.u32.totalorder %s1620_s14, %s1677_s7 }
 0x3dd   : > { %p1203_p1 = scmp.lt.u32.totalorder %s1201_s10, %s1197_s15  ;;  %p1205_p11 = scmp.lt.u32.totalorder %s1197_s15, %s1620_s14 }
 0x3de   : > { %p1199_p4 = pnand %p1198_p9, %p1700_p0 }
 0x3df   : > { %p1204_p12 = por %p1203_p1, %p1202_p3 }
 0x3e0   : > { %p1200_p6 = pneg %p1199_p4 }
 0x3e1   : > { %p1206_p5 = por %p1205_p11, %p1204_p12 }
 0x3e3   : > { %p1207_p7 = pnand %p1206_p5, %p1200_p6 }
 0x3e5   : > { %1210 = shalt.err (!%p1207_p7)
}
 0x3e6   : > { %876 = dma.vmem_to_hbm [thread:$0]  (%p1700_p0), %s1622_s18, 128, %s1620_s14, %s625_s17  }
 0x3e7 PF: > { %s651_s9 = sand.u32 1, %s1257_s24   ;;  %p1701_p10 = scmp.ne.s32.totalorder %s1696_s30, 0 }
 0x3e8   : > { %p1702_p13 = scmp.ge.s32.totalorder %s1277_s29, 2  ;;  %s652_s19 = scalar_lea.sflag [#allocation6], %s651_s9 }
 0x3ea   : > { %p902_p2 = pnand %p1702_p13, %p1701_p10 }
 0x3ec   : > { %1252 = dma.done.wait (!%p902_p2), %s652_s19, 128  }
 0x3ed   : > { %1254 = vsyncadd (!%p902_p2), %s652_s19, 4294967168  ;;  %s26_s29 = sadd.s32 1, %s1277_s29   ;;  %s1703_s24 = smov %s1261_s25 }
 0x3ee   : > { %p23_p8 = scmp.ge.s32.totalorder %s26_s29, 4   ;;  %s1704_s25 = smov %s1265_s26 }
 0x3ef   : > { %s1705_s26 = smov %s1536_s20  ;;  %s1706_s27 = smov %s1273_s28 }
 0x3f0   : > { %s1707_s28 = smov %s1709_s13  ;;  %25 = sbr.rel (!%p23_p8) target bundleno = 12 (0xc), region = 128 }
 0x3f7   :  { %657 = vsyncpa [#allocation5], 1 }
 0x3f8   :  { %659 = vsyncpa [#allocation5 + $0x1], 1 }
 0x3f9   :  { %660 = vsyncpa [#allocation8], 1 }
 0x3fa   :  { %661 = vsyncpa [#allocation11], 1 }
 0x3fb   :  { %662 = vsyncpa [#allocation14], 1 }
 0x3fc   :  { %663 = vsyncpa [#allocation6], 1 }
 0x3fd   :  { %665 = vsyncpa [#allocation6 + $0x1], 1 }

// kernel: decoder_block.4
= control target key start
LH: loop header
LB: loop body
LE: loop exit
PB: predicated region body
PF: predicated region fallthrough
CT: control target
= control target key end

     0   :  { %s3025_s0 = inlined_call_operand.hbm [shape: f32[2,8,32], index: 0, kind: input, shape index: {}]   ;;  %s3026_s1 = inlined_call_operand.hbm [shape: f32[2,8,32], index: 1, kind: input, shape index: {}]   ;;  %s3027_s2 = inlined_call_operand.hbm [shape: s8[2,1,8], index: 2, kind: input, shape index: {}]   ;;  %s3028_s3 = inlined_call_operand.hbm [shape: f32[1,32], index: 3, kind: input, shape index: {}]   ;;  %s3029_s4 = inlined_call_operand.hbm [shape: f32[1,32], index: 4, kind: input, shape index: {}]   ;;  %s3030_s5 = inlined_call_operand.hbm [shape: bf16[32,32], index: 5, kind: input, shape index: {}]   ;;  %s3031_s6 = inlined_call_operand.hbm [shape: f32[1,32], index: 6, kind: input, shape index: {}]   ;;  %s3032_s7 = inlined_call_operand.hbm [shape: bf16[32,64], index: 7, kind: input, shape index: {}]   ;;  %s3033_s8 = inlined_call_operand.hbm [shape: f32[1,64], index: 8, kind: input, shape index: {}]   ;;  %s3034_s9 = inlined_call_operand.hbm [shape: bf16[32,32], index: 9, kind: input, shape index: {}]   ;;  %s3035_s10 = inlined_call_operand.hbm [shape: f32[1,32], index: 10, kind: input, shape index: {}]   ;;  %s3036_s11 = inlined_call_operand.hbm [shape: f32[2,8,32], index: 11, kind: output, shape index: {}]  }
   0x1   :  { %3058 = sst [smem:[#allocation38_spill]] %s3026_s1 }
   0x2   :  { %3059 = sst [smem:[#allocation39_spill]] %s3028_s3 }
   0x3   :  { %3060 = sst [smem:[#allocation40_spill]] %s3030_s5 }
   0x4   :  { %3061 = sst [smem:[#allocation41_spill]] %s3032_s7 }
   0x5   :  { %3062 = sst [smem:[#allocation42_spill]] %s3034_s9 }
   0x6   :  { %3063 = sst [smem:[#allocation43_spill]] %s3036_s11 }
   0x7   :  { %16 = vsyncpa [#allocation6], 0 }
   0x8   :  { %18 = vsyncpa [#allocation6 + $0x1], 0 }
   0x9   :  { %19 = vsyncpa [#allocation9], 0 }
   0xa   :  { %21 = vsyncpa [#allocation9 + $0x1], 0 }
   0xb   :  { %22 = vsyncpa [#allocation12], 0 }
   0xc   :  { %23 = vsyncpa [#allocation15], 0 }
   0xd   :  { %24 = vsyncpa [#allocation18], 0 }
   0xe   :  { %25 = vsyncpa [#allocation21], 0 }
   0xf   :  { %26 = vsyncpa [#allocation7], 0 }
  0x10   :  { %28 = vsyncpa [#allocation7 + $0x1], 0  ;;  %s2468_s17 = smov 0   ;;  %s2470_s18 = smov 0  }
  0x11   :  { %s2472_s19 = smov 0   ;;  %s2474_s20 = smov 0  }
  0x12   :  { %s2476_s21 = smov 0   ;;  %s2478_s22 = smov 0  }
  0x13 LB: > { %3064 = sst [smem:[#allocation31_spill]] %s2370_s19  ;;  %s2499_s23 = sadd.s32 4294967295, %s2382_s22   ;;  %s2382_s22 = sphi %s2478_s22, %s34_s22   ;;  %s2378_s21 = sphi %s2476_s21, %s3118_s21   ;;  %s2374_s20 = sphi %s2474_s20, %s3117_s20   ;;  %s2370_s19 = sphi %s2472_s19, %s3113_s19   ;;  %s2366_s18 = sphi %s2470_s18, %s3116_s18   ;;  %s2362_s17 = sphi %s2468_s17, %s3115_s17  }
  0x14   : > { %3065 = sst [smem:[#allocation32_spill]] %s2374_s20  ;;  %p1603_p0 = scmp.ge.s32.totalorder %s2382_s22, 1 }
  0x15   : > { %3066 = sst [smem:[#allocation33_spill]] %s2382_s22  ;;  %p3038_p1 = scmp.eq.s32.totalorder %s2499_s23, 0 }
  0x16   : > { %p327_p2 = scmp.lt.s32.totalorder %s2382_s22, 3  ;;  %s2384_s25 = smov [#allocation11]  }
  0x17   : > { %s340_s26 = sshll.u32 %s2384_s25, 4  ;;  %s2385_s27 = smov [#allocation14]   ;;  %s341_s26 = int_to_ptr.vmem [resolvable:$true] %s340_s26 }
  0x18   : > { %p2504_p3 = pnand %p1603_p0, %p327_p2  ;;  %s361_s28 = sshll.u32 %s2385_s27, 4  ;;  %s2517_s28 = int_to_ptr.vmem [resolvable:$true] %s361_s28 }
  0x19   : > { %s2386_s30 = smov [#allocation17]   ;;  %s3070_s3 = sld [smem:[#allocation39_spill]] }
  0x1a   : > { %s3067_s24 = scalar_select %p2504_p3, 1, 0 }
  0x1b   : > { %p1811_p5 = pneg %p2504_p3  ;;  %s2519_s12 = sshll.u32 %s2386_s30, 4  ;;  %s386_s12 = int_to_ptr.vmem [resolvable:$true] %s2519_s12 }
  0x1c   : > { %3068 = sst [smem:[#allocation34_spill]] %s3067_s24 }
  0x1d   : > { %p2513_p6 = pnand %p1811_p5, %p3038_p1 }
  0x1f   : > { %s3069_s29 = scalar_select %p2513_p6, 1, 0 }
  0x20   : > { %s1966_s15 = scalar_lea.hbm %s3070_s3, 16  ;;  %p2529_p8 = pneg %p2513_p6 }
  0x21   : > { %p1967_p7 = scmp.ne.s32.totalorder %s3070_s3, %s1966_s15  ;;  %p1973_p11 = scmp.lt.u32.totalorder %s1966_s15, %s3070_s3 }
  0x22   : > { %s3071_s27 = scalar_select %p2529_p8, 1, 0 }
  0x23   : > { %p1969_p9 = pnand %p2529_p8, %p1967_p7 }
  0x25   : > { %p1970_p10 = pneg %p1969_p9 }
  0x27   : > { %p1975_p12 = pnand %p1973_p11, %p1970_p10 }
  0x29   : > { %1978 = shalt.err (!%p1975_p12)
}
  0x2a   : > { %s1979_s13 = scalar_lea.vmem %s341_s26, 16  ;;  %s1986_s14 = scalar_lea.vmem %s341_s26, 32 }
  0x2b   : > { %p1980_p13 = scmp.ne.s32.totalorder %s341_s26, %s1979_s13  ;;  %p1987_p5 = scmp.lt.s32.totalorder %s341_s26, %s341_s26 }
  0x2c   : > { %p1988_p4 = scmp.lt.s32.totalorder %s1986_s14, %s1979_s13 }
  0x2d   : > { %p1982_p0 = pnand %p1980_p13, %p2529_p8 }
  0x2e   : > { %p1989_p1 = por %p1988_p4, %p1987_p5 }
  0x2f   : > { %p1983_p2 = pneg %p1982_p0 }
  0x31   : > { %p1990_p3 = pnand %p1989_p1, %p1983_p2 }
  0x33   : > { %1993 = shalt.err (!%p1990_p3)
}
  0x34   : > { %1814 = dma.hbm_to_vmem [thread:$0]  (!%p2513_p6), %s3070_s3, 16, %s341_s26, [#allocation12]  }
  0x35   : > { %s3072_s5 = sld [smem:[#allocation40_spill]] }
  0x3b   : > { %s1994_s30 = scalar_lea.hbm %s3072_s5, 256 }
  0x3c   : > { %p1995_p7 = scmp.ne.s32.totalorder %s3072_s5, %s1994_s30  ;;  %p2001_p1 = scmp.lt.u32.totalorder %s1994_s30, %s3072_s5 }
  0x3e   : > { %p1997_p9 = pnand %p1995_p7, %p2529_p8 }
  0x40   : > { %p1998_p4 = pneg %p1997_p9 }
  0x42   : > { %p2003_p3 = pnand %p2001_p1, %p1998_p4 }
  0x44   : > { %2006 = shalt.err (!%p2003_p3)
}
  0x45   : > { %s2007_s26 = scalar_lea.vmem %s2517_s28, 256  ;;  %p2015_p13 = scmp.lt.s32.totalorder %s2517_s28, %s2517_s28 }
  0x46   : > { %p2008_p10 = scmp.ne.s32.totalorder %s2517_s28, %s2007_s26  ;;  %p2016_p0 = scmp.lt.s32.totalorder %s2007_s26, %s2007_s26 }
  0x48   : > { %p2010_p11 = pnand %p2008_p10, %p2529_p8  ;;  %p2017_p2 = por %p2016_p0, %p2015_p13 }
  0x4a   : > { %p2011_p12 = pneg %p2010_p11 }
  0x4c   : > { %p2018_p5 = pnand %p2017_p2, %p2011_p12 }
  0x4e   : > { %2021 = shalt.err (!%p2018_p5)
}
  0x4f   : > { %s2387_s20 = smov 64   ;;  %s2388_s24 = smov 4  }
  0x50   : > { %1820 = dma.hbm_to_vmem [thread:$0]  (!%p2513_p6), %s3072_s5, 256, %s2517_s28, [#allocation15], %s2387_s20, %s2387_s20, %s2388_s24  }
  0x51   : > { %s3073_s7 = sld [smem:[#allocation41_spill]] }
  0x57   : > { %s2022_s30 = scalar_lea.hbm %s3073_s7, 256 }
  0x58   : > { %p2023_p7 = scmp.ne.s32.totalorder %s3073_s7, %s2022_s30  ;;  %p2029_p1 = scmp.lt.u32.totalorder %s2022_s30, %s3073_s7 }
  0x5a   : > { %p2025_p9 = pnand %p2023_p7, %p2529_p8 }
  0x5c   : > { %p2026_p4 = pneg %p2025_p9 }
  0x5e   : > { %p2031_p3 = pnand %p2029_p1, %p2026_p4 }
  0x60   : > { %2034 = shalt.err (!%p2031_p3)
}
  0x61   : > { %s2035_s16 = scalar_lea.vmem %s386_s12, 256  ;;  %p2043_p13 = scmp.lt.s32.totalorder %s386_s12, %s386_s12 }
  0x62   : > { %p2036_p10 = scmp.ne.s32.totalorder %s386_s12, %s2035_s16  ;;  %p2044_p0 = scmp.lt.s32.totalorder %s2035_s16, %s2035_s16 }
  0x64   : > { %p2038_p11 = pnand %p2036_p10, %p2529_p8  ;;  %p2045_p2 = por %p2044_p0, %p2043_p13 }
  0x66   : > { %p2039_p12 = pneg %p2038_p11 }
  0x68   : > { %p2046_p5 = pnand %p2045_p2, %p2039_p12 }
  0x6a   : > { %2049 = shalt.err (!%p2046_p5)
}
  0x6b   : > { %1826 = dma.hbm_to_vmem [thread:$0]  (!%p2513_p6), %s3073_s7, 256, %s386_s12, [#allocation18], %s2387_s20, %s2387_s20, %s2388_s24  }
  0x6c   : > { %s2389_s25 = smov [#allocation20]   ;;  %s3074_s9 = sld [smem:[#allocation42_spill]] }
  0x6d   : > { %s409_s11 = sshll.u32 %s2389_s25, 4  ;;  %s410_s11 = int_to_ptr.vmem [resolvable:$true] %s409_s11 }
  0x72   : > { %s2050_s13 = scalar_lea.hbm %s3074_s9, 256 }
  0x73   : > { %p2051_p7 = scmp.ne.s32.totalorder %s3074_s9, %s2050_s13  ;;  %p2057_p1 = scmp.lt.u32.totalorder %s2050_s13, %s3074_s9 }
  0x75   : > { %p2053_p9 = pnand %p2051_p7, %p2529_p8 }
  0x77   : > { %p2054_p4 = pneg %p2053_p9 }
  0x79   : > { %p2059_p3 = pnand %p2057_p1, %p2054_p4 }
  0x7b   : > { %2062 = shalt.err (!%p2059_p3)
}
  0x7c   : > { %s2063_s12 = scalar_lea.vmem %s410_s11, 256  ;;  %p2071_p13 = scmp.lt.s32.totalorder %s410_s11, %s410_s11 }
  0x7d   : > { %p2064_p10 = scmp.ne.s32.totalorder %s410_s11, %s2063_s12  ;;  %p2072_p0 = scmp.lt.s32.totalorder %s2063_s12, %s2063_s12 }
  0x7f   : > { %p2066_p11 = pnand %p2064_p10, %p2529_p8  ;;  %p2073_p2 = por %p2072_p0, %p2071_p13 }
  0x81   : > { %p2067_p12 = pneg %p2066_p11 }
  0x83   : > { %p2074_p5 = pnand %p2073_p2, %p2067_p12 }
  0x85   : > { %2077 = shalt.err (!%p2074_p5)
}
  0x86   : > { %1832 = dma.hbm_to_vmem [thread:$0]  (!%p2513_p6), %s3074_s9, 256, %s410_s11, [#allocation21], %s2387_s20, %s2387_s20, %s2388_s24  }
  0x87   : > { %s1602_s28 = sadd.s32 4294967294, %s2382_s22   ;;  %s46_s25 = sadd.s32 1, %s2378_s21 }
  0x88   : > { %p48_p7 = scmp.ge.s32.totalorder %s46_s25, 2  ;;  %s55_s15 = sadd.s32 1, %s2370_s19 }
  0x89   : > { %p62_p9 = scmp.ne.s32.totalorder %s2370_s19, %s2366_s18  ;;  %p63_p4 = scmp.eq.s32.totalorder %s2382_s22, 0 }
  0x8a   : > { %s3120_s25 = smov (%p48_p7, %s46_s25), 0  ;;  %p68_p3 = scmp.ne.s32.totalorder %s2366_s18, %s2362_s17 }
  0x8b   : > { %3075 = sst [smem:[#allocation35_spill]] %s3120_s25  ;;  %p2622_p1 = por %p63_p4, %p62_p9 }
  0x8c   : > { %s50_s20 = ssub.s32 %s2378_s21, %s3120_s25  ;;  %p314_p10 = scmp.eq.s32.totalorder %s2499_s23, 1 }
  0x8d   : > { %p53_p11 = scmp.eq.s32.totalorder %s50_s20, 0  ;;  %p3077_p12 = scmp.eq.s32.totalorder %s2499_s23, 0 }
  0x8e   : > { %p2637_p0 = por %p314_p10, %p62_p9  ;;  %p320_p2 = scmp.eq.s32.totalorder %s1602_s28, 1 }
  0x8f   : > { %p2633_p13 = por %p3077_p12, %p68_p3  ;;  %p1858_p7 = scmp.lt.s32.totalorder %s2382_s22, 2 }
  0x90   : > { %s3079_s11 = scalar_select %p2637_p0, 1, 0 }
  0x91   : > { %s3078_s24 = scalar_select %p2633_p13, 1, 0 }
  0x92   : > { %s2642_s13 = scalar_select %p53_p11, %s2370_s19, %s55_s15  }
  0x93   : > { %p2644_p5 = por %p320_p2, %p68_p3  ;;  %s2650_s26 = sand.u32 1, %s2370_s19  }
  0x94   : > { %3080 = sst [smem:[#allocation36_spill]] %s2642_s13  ;;  %s3043_s16 = sshll.u32 %s2378_s21, 7 }
  0x95   : > { %s3081_s14 = scalar_select %p2644_p5, 1, 0 }
  0x96   : > { %s3042_s12 = sshll.u32 %s2650_s26, 3  ;;  %p2656_p4 = pnand %p1858_p7, %p2622_p1 }
  0x97   : > { %3082 = sst [smem:[#allocation37_spill]] %s3081_s14  ;;  %s453_s3 = sand.u32 1, %s2382_s22  }
  0x98   : > { %s3083_s5 = scalar_select %p2656_p4, 1, 0 }
  0x99   : > { %s3084_s1 = sld [smem:[#allocation38_spill]]  ;;  %s457_s7 = scalar_lea.vmem [#allocation8], %s3042_s12 }
  0x9a   : > { %s464_s9 = sshll.u32 %s457_s7, 4  ;;  %s2672_s30 = scalar_lea.sflag [#allocation9], %s453_s3  ;;  %s2670_s9 = int_to_ptr.vmem [resolvable:$true] %s464_s9 }
  0x9b   : > { %p2678_p1 = pneg %p2656_p4 }
  0x9d   : > { %s3085_s13 = scalar_select %p2678_p1, 1, 0 }
  0x9f   : > { %s2666_s20 = scalar_lea.hbm %s3084_s1, %s3043_s16  ;;  %s2083_s12 = scalar_lea.hbm %s3084_s1, 256 }
  0xa0   : > { %s2078_s25 = scalar_lea.hbm %s2666_s20, 128  ;;  %p2084_p11 = scmp.lt.u32.totalorder %s2666_s20, %s3084_s1 }
  0xa1   : > { %p2079_p9 = scmp.ne.s32.totalorder %s2666_s20, %s2078_s25  ;;  %p2085_p12 = scmp.lt.u32.totalorder %s2083_s12, %s2078_s25 }
  0xa2   : > { %p2087_p7 = scmp.lt.u32.totalorder %s2078_s25, %s2666_s20 }
  0xa3   : > { %p2081_p3 = pnand %p2678_p1, %p2079_p9  ;;  %p2086_p2 = por %p2085_p12, %p2084_p11 }
  0xa5   : > { %p2082_p10 = pneg %p2081_p3  ;;  %p2088_p5 = por %p2087_p7, %p2086_p2 }
  0xa7   : > { %p2089_p0 = pnand %p2088_p5, %p2082_p10 }
  0xa9   : > { %2092 = shalt.err (!%p2089_p0)
}
  0xaa   : > { %s2093_s3 = scalar_lea.vmem %s2670_s9, 128  ;;  %s2390_s28 = smov [#allocation8]  }
  0xab   : > { %p2094_p9 = scmp.ne.s32.totalorder %s2670_s9, %s2093_s3  ;;  %s2098_s15 = sshll.u32 %s2390_s28, 4  ;;  %s2099_s15 = int_to_ptr.vmem [resolvable:$false] %s2098_s15 }
  0xac   : > { %s2100_s16 = scalar_lea.vmem %s2099_s15, 256  ;;  %p2101_p6 = scmp.lt.s32.totalorder %s2670_s9, %s2099_s15 }
  0xad   : > { %p2096_p3 = pnand %p2094_p9, %p2678_p1  ;;  %p2102_p8 = scmp.lt.s32.totalorder %s2100_s16, %s2093_s3 }
  0xaf   : > { %p2097_p13 = pneg %p2096_p3  ;;  %p2103_p11 = por %p2102_p8, %p2101_p6 }
  0xb1   : > { %p2104_p12 = pnand %p2103_p11, %p2097_p13 }
  0xb3   : > { %2107 = shalt.err (!%p2104_p12)
}
  0xb4   : > { %1842 = dma.hbm_to_vmem [thread:$0]  (!%p2656_p4), %s2666_s20, 128, %s2670_s9, %s2672_s30  }
  0xb5   : > { %s2391_s25 = smov [#allocation13]   ;;  %s2392_s7 = smov [#allocation16]  }
  0xb6   : > { %s351_s12 = sshll.u32 %s2391_s25, 4  ;;  %s375_s1 = sshll.u32 %s2392_s7, 4  ;;  %s352_s12 = int_to_ptr.vmem [resolvable:$true] %s351_s12  ;;  %s376_s1 = int_to_ptr.vmem [resolvable:$true] %s375_s1 }
  0xb7   : > { %s2108_s15 = scalar_lea.hbm %s3029_s4, 16  ;;  %p3086_p8 = scmp.ne.s32.totalorder %s3071_s27, 0 }
  0xb8   : > { %p2109_p6 = scmp.ne.s32.totalorder %s3029_s4, %s2108_s15  ;;  %p2115_p5 = scmp.lt.u32.totalorder %s2108_s15, %s3029_s4 }
  0xba   : > { %p2111_p13 = pnand %p2109_p6, %p3086_p8 }
  0xbc   : > { %p2112_p0 = pneg %p2111_p13 }
  0xbe   : > { %p2117_p10 = pnand %p2115_p5, %p2112_p0 }
  0xc0   : > { %2120 = shalt.err (!%p2117_p10)
}
  0xc1   : > { %s2121_s9 = scalar_lea.vmem %s352_s12, 16  ;;  %s2128_s19 = scalar_lea.vmem %s352_s12, 32 }
  0xc2   : > { %p2122_p2 = scmp.ne.s32.totalorder %s352_s12, %s2121_s9  ;;  %p2129_p3 = scmp.lt.s32.totalorder %s352_s12, %s352_s12 }
  0xc3   : > { %p2130_p11 = scmp.lt.s32.totalorder %s2128_s19, %s2121_s9 }
  0xc4   : > { %p2124_p7 = pnand %p2122_p2, %p3086_p8 }
  0xc5   : > { %p2131_p12 = por %p2130_p11, %p2129_p3 }
  0xc6   : > { %p2125_p9 = pneg %p2124_p7 }
  0xc8   : > { %p2132_p4 = pnand %p2131_p12, %p2125_p9 }
  0xca   : > { %2135 = shalt.err (!%p2132_p4)
}
  0xcb   : > { %p3087_p6 = scmp.ne.s32.totalorder %s3069_s29, 0  ;;  %s2136_s7 = scalar_lea.hbm %s3031_s6, 16 }
  0xcc   : > { %p2137_p13 = scmp.ne.s32.totalorder %s3031_s6, %s2136_s7  ;;  %p2143_p4 = scmp.lt.u32.totalorder %s2136_s7, %s3031_s6 }
  0xcd   : > { %1817 = dma.hbm_to_vmem [thread:$0]  (!%p3087_p6), %s3029_s4, 16, %s352_s12, [#allocation12]  }
  0xce   : > { %p2139_p0 = pnand %p2137_p13, %p3086_p8 }
  0xd0   : > { %p2140_p5 = pneg %p2139_p0 }
  0xd2   : > { %p2145_p10 = pnand %p2143_p4, %p2140_p5 }
  0xd4   : > { %2148 = shalt.err (!%p2145_p10)
}
  0xd5   : > { %s2149_s9 = scalar_lea.vmem %s376_s1, 16  ;;  %s2156_s12 = scalar_lea.vmem %s376_s1, 32 }
  0xd6   : > { %p2150_p2 = scmp.ne.s32.totalorder %s376_s1, %s2149_s9  ;;  %p2157_p3 = scmp.lt.s32.totalorder %s376_s1, %s376_s1 }
  0xd7   : > { %p2158_p11 = scmp.lt.s32.totalorder %s2156_s12, %s2149_s9 }
  0xd8   : > { %p2152_p7 = pnand %p2150_p2, %p3086_p8 }
  0xd9   : > { %p2159_p12 = por %p2158_p11, %p2157_p3 }
  0xda   : > { %p2153_p9 = pneg %p2152_p7 }
  0xdc   : > { %p2160_p1 = pnand %p2159_p12, %p2153_p9 }
  0xde   : > { %2163 = shalt.err (!%p2160_p1)
}
  0xdf   : > { %1823 = dma.hbm_to_vmem [thread:$0]  (!%p3087_p6), %s3031_s6, 16, %s376_s1, [#allocation15]  }
  0xe0   : > { %s2393_s25 = smov [#allocation19]   ;;  %s2394_s14 = smov [#allocation22]  }
  0xe1   : > { %s399_s22 = sshll.u32 %s2393_s25, 4  ;;  %s423_s7 = sshll.u32 %s2394_s14, 4  ;;  %s400_s22 = int_to_ptr.vmem [resolvable:$true] %s399_s22  ;;  %s424_s7 = int_to_ptr.vmem [resolvable:$true] %s423_s7 }
  0xe2   : > { %s2164_s3 = scalar_lea.hbm %s3033_s8, 16 }
  0xe3   : > { %p2165_p1 = scmp.ne.s32.totalorder %s3033_s8, %s2164_s3  ;;  %p2171_p5 = scmp.lt.u32.totalorder %s2164_s3, %s3033_s8 }
  0xe5   : > { %p2167_p13 = pnand %p2165_p1, %p3086_p8 }
  0xe7   : > { %p2168_p0 = pneg %p2167_p13 }
  0xe9   : > { %p2173_p4 = pnand %p2171_p5, %p2168_p0 }
  0xeb   : > { %2176 = shalt.err (!%p2173_p4)
}
  0xec   : > { %s2177_s1 = scalar_lea.vmem %s400_s22, 16  ;;  %s2184_s20 = scalar_lea.vmem %s400_s22, 32 }
  0xed   : > { %p2178_p10 = scmp.ne.s32.totalorder %s400_s22, %s2177_s1  ;;  %p2185_p9 = scmp.lt.s32.totalorder %s400_s22, %s400_s22 }
  0xee   : > { %p2186_p3 = scmp.lt.s32.totalorder %s2184_s20, %s2177_s1 }
  0xef   : > { %p2180_p2 = pnand %p2178_p10, %p3086_p8 }
  0xf0   : > { %p2187_p11 = por %p2186_p3, %p2185_p9 }
  0xf1   : > { %p2181_p7 = pneg %p2180_p2 }
  0xf3   : > { %p2188_p12 = pnand %p2187_p11, %p2181_p7 }
  0xf5   : > { %2191 = shalt.err (!%p2188_p12)
}
  0xf6   : > { %1829 = dma.hbm_to_vmem [thread:$0]  (!%p3087_p6), %s3033_s8, 16, %s400_s22, [#allocation18]  }
  0xf7   : > { %s2192_s3 = scalar_lea.hbm %s3035_s10, 16 }
  0xf8   : > { %p2193_p1 = scmp.ne.s32.totalorder %s3035_s10, %s2192_s3  ;;  %p2199_p5 = scmp.lt.u32.totalorder %s2192_s3, %s3035_s10 }
  0xfa   : > { %p2195_p13 = pnand %p2193_p1, %p3086_p8 }
  0xfc   : > { %p2196_p0 = pneg %p2195_p13 }
  0xfe   : > { %p2201_p4 = pnand %p2199_p5, %p2196_p0 }
 0x100   : > { %2204 = shalt.err (!%p2201_p4)
}
 0x101   : > { %s2205_s1 = scalar_lea.vmem %s424_s7, 16  ;;  %s2212_s22 = scalar_lea.vmem %s424_s7, 32 }
 0x102   : > { %p2206_p10 = scmp.ne.s32.totalorder %s424_s7, %s2205_s1  ;;  %p2213_p9 = scmp.lt.s32.totalorder %s424_s7, %s424_s7 }
 0x103   : > { %p2214_p3 = scmp.lt.s32.totalorder %s2212_s22, %s2205_s1 }
 0x104   : > { %p2208_p2 = pnand %p2206_p10, %p3086_p8 }
 0x105   : > { %p2215_p11 = por %p2214_p3, %p2213_p9 }
 0x106   : > { %p2209_p7 = pneg %p2208_p2 }
 0x108   : > { %p2216_p12 = pnand %p2215_p11, %p2209_p7 }
 0x10a   : > { %2219 = shalt.err (!%p2216_p12)
}
 0x10b   : > { %1835 = dma.hbm_to_vmem [thread:$0]  (!%p3087_p6), %s3035_s10, 16, %s424_s7, [#allocation21]  }
 0x10c   : > { %s3088_s27 = sshll.u32 %s2378_s21, 7  ;;  %s3089_s3 = sshll.u32 %s2650_s26, 3 }
 0x10d   : > { %s2779_s15 = scalar_lea.hbm %s3025_s0, %s3088_s27  ;;  %s438_s29 = scalar_lea.vmem [#allocation5], %s3089_s3 }
 0x10e   : > { %s446_s16 = sshll.u32 %s438_s29, 4  ;;  %s1617_s9 = sshll.u32 %s2378_s21, 4  ;;  %s2783_s16 = int_to_ptr.vmem [resolvable:$true] %s446_s16 }
 0x10f   : > { %s435_s12 = scalar_lea.sflag [#allocation6], %s2650_s26  ;;  %s2220_s19 = scalar_lea.hbm %s2779_s15, 128 }
 0x110   : > { %p2221_p8 = scmp.ne.s32.totalorder %s2779_s15, %s2220_s19  ;;  %p3090_p6 = scmp.ne.s32.totalorder %s3085_s13, 0 }
 0x111   : > { %s2225_s22 = scalar_lea.hbm %s3025_s0, 256  ;;  %p2226_p0 = scmp.lt.u32.totalorder %s2779_s15, %s3025_s0 }
 0x112   : > { %p2223_p1 = pnand %p2221_p8, %p3090_p6  ;;  %p2227_p5 = scmp.lt.u32.totalorder %s2225_s22, %s2220_s19 }
 0x113   : > { %p2229_p10 = scmp.lt.u32.totalorder %s2220_s19, %s2779_s15 }
 0x114   : > { %p2224_p13 = pneg %p2223_p1  ;;  %p2228_p4 = por %p2227_p5, %p2226_p0 }
 0x116   : > { %p2230_p2 = por %p2229_p10, %p2228_p4 }
 0x118   : > { %p2231_p7 = pnand %p2230_p2, %p2224_p13 }
 0x11a   : > { %2234 = shalt.err (!%p2231_p7)
}
 0x11b   : > { %s2235_s27 = scalar_lea.vmem %s2783_s16, 128  ;;  %s2395_s14 = smov [#allocation5]  }
 0x11c   : > { %p2236_p9 = scmp.ne.s32.totalorder %s2783_s16, %s2235_s27  ;;  %s2240_s28 = sshll.u32 %s2395_s14, 4  ;;  %s2241_s28 = int_to_ptr.vmem [resolvable:$false] %s2240_s28 }
 0x11d   : > { %s2242_s3 = scalar_lea.vmem %s2241_s28, 256  ;;  %p2243_p12 = scmp.lt.s32.totalorder %s2783_s16, %s2241_s28 }
 0x11e   : > { %p2238_p3 = pnand %p2236_p9, %p3090_p6  ;;  %p2244_p8 = scmp.lt.s32.totalorder %s2242_s3, %s2235_s27 }
 0x120   : > { %p2239_p11 = pneg %p2238_p3  ;;  %p2245_p1 = por %p2244_p8, %p2243_p12 }
 0x122   : > { %p2246_p0 = pnand %p2245_p1, %p2239_p11 }
 0x124   : > { %2249 = shalt.err (!%p2246_p0)
}
 0x125   : > { %p3091_p13 = scmp.ne.s32.totalorder %s3083_s5, 0  ;;  %s2813_s7 = scalar_lea.hbm %s3027_s2, %s1617_s9 }
 0x126   : > { %s474_s1 = scalar_lea.vmem [#allocation10], %s2650_s26  ;;  %s2250_s20 = scalar_lea.hbm %s2813_s7, 16 }
 0x127   : > { %1839 = dma.hbm_to_vmem [thread:$0]  (!%p3091_p13), %s2779_s15, 128, %s2783_s16, %s435_s12  }
 0x128   : > { %s481_s22 = sshll.u32 %s474_s1, 4  ;;  %p2251_p5 = scmp.ne.s32.totalorder %s2813_s7, %s2250_s20  ;;  %s482_s22 = int_to_ptr.vmem [resolvable:$true] %s481_s22 }
 0x129   : > { %s2255_s16 = scalar_lea.hbm %s3027_s2, 32  ;;  %p2256_p2 = scmp.lt.u32.totalorder %s2813_s7, %s3027_s2 }
 0x12a   : > { %p2253_p4 = pnand %p2251_p5, %p3090_p6  ;;  %p2257_p7 = scmp.lt.u32.totalorder %s2255_s16, %s2250_s20 }
 0x12b   : > { %p2259_p3 = scmp.lt.u32.totalorder %s2250_s20, %s2813_s7 }
 0x12c   : > { %p2254_p10 = pneg %p2253_p4  ;;  %p2258_p9 = por %p2257_p7, %p2256_p2 }
 0x12e   : > { %p2260_p11 = por %p2259_p3, %p2258_p9 }
 0x130   : > { %p2261_p12 = pnand %p2260_p11, %p2254_p10 }
 0x132   : > { %2264 = shalt.err (!%p2261_p12)
}
 0x133   : > { %s2265_s26 = scalar_lea.vmem %s482_s22, 16  ;;  %s2396_s9 = smov [#allocation10]  }
 0x134   : > { %p2266_p8 = scmp.ne.s32.totalorder %s482_s22, %s2265_s26  ;;  %s2270_s14 = sshll.u32 %s2396_s9, 4  ;;  %s2271_s14 = int_to_ptr.vmem [resolvable:$false] %s2270_s14 }
 0x135   : > { %s2272_s28 = scalar_lea.vmem %s2271_s14, 32  ;;  %p2273_p5 = scmp.lt.s32.totalorder %s482_s22, %s2271_s14 }
 0x136   : > { %p2268_p1 = pnand %p2266_p8, %p3090_p6  ;;  %p2274_p4 = scmp.lt.s32.totalorder %s2272_s28, %s2265_s26 }
 0x138   : > { %p2269_p0 = pneg %p2268_p1  ;;  %p2275_p13 = por %p2274_p4, %p2273_p5 }
 0x13a   : > { %p2276_p2 = pnand %p2275_p13, %p2269_p0 }
 0x13c   : > { %2279 = shalt.err (!%p2276_p2)
}
 0x13d   : > { %p3092_p7 = scmp.ne.s32.totalorder %s3083_s5, 0  ;;  %s3093_s3 = sld [smem:[#allocation34_spill]] }
 0x13f   : > { %1845 = dma.hbm_to_vmem [thread:$0]  (!%p3092_p7), %s2813_s7, 16, %s482_s22, %s2672_s30  }
 0x143   : > { %p3094_p10 = scmp.ne.s32.totalorder %s3093_s3, 0 }
 0x144   : > { %s2837_s13 = sand.u32 (!%p3094_p10), 1, %s2366_s18   ;;  %p3095_p6 = scmp.ne.s32.totalorder (!%p3094_p10), %s3078_s24, 0 }
 0x145   : > { %490 = sbr.rel (%p3094_p10) target bundleno = 2120 (0x848), region = 64  ;;  %s2840_s29 = sshll.u32 (!%p3094_p10), %s2837_s13, 3 }
 0x146   : > { %s493_s19 = scalar_lea.sflag (!%p3094_p10), [#allocation6], %s2837_s13  ;;  %s496_s1 = scalar_lea.vmem (!%p3094_p10), [#allocation5], %s2840_s29 }
 0x14c   : > { %2333 = dma.done.wait (%p3095_p6), %s493_s19, 128  }
 0x14d   : > { %2335 = vsyncadd (%p3095_p6), %s493_s19, 4294967168  ;;  %s501_s5 = sand.u32 1, %s2499_s23   ;;  %s505_s7 = scalar_lea.vmem [#allocation8], %s2840_s29 }
 0x14e   : > { %s502_s30 = scalar_lea.sflag [#allocation9], %s501_s5 }
 0x14f   : > { %2337 = dma.done.wait (%p3095_p6), %s502_s30, 144  }
 0x150   : > { %2339 = vsyncadd (%p3095_p6), %s502_s30, 4294967152  ;;  %s513_s22 = scalar_lea.vmem [#allocation10], %s2837_s13  ;;  %p3096_p13 = scmp.eq.s32.totalorder %s2499_s23, 0 }
 0x152   : > { %2341 = dma.done.wait (%p3096_p13), [#allocation12], 32   ;;  %p3097_p9 = pmov %p3096_p13 }
 0x154   : > { %2343 = vsyncadd (%p3097_p9), [#allocation12], 4294967264  ;;  %p3098_p3 = pmov %p3097_p9 }
 0x156   : > { %2345 = dma.done.wait (%p3098_p3), [#allocation15], 272   ;;  %p3099_p11 = pmov %p3098_p3 }
 0x157   : > { %p3100_p12 = pmov %p3098_p3 }
 0x158   : > { %2347 = vsyncadd (%p3099_p11), [#allocation15], 4294967024 }
 0x159   : > { %2349 = dma.done.wait (%p3100_p12), [#allocation18], 272   ;;  %p3101_p8 = pmov %p3098_p3 }
 0x15a   : > { %p3102_p1 = pmov %p3098_p3 }
 0x15b   : > { %2351 = vsyncadd (%p3101_p8), [#allocation18], 4294967024 }
 0x15c   : > { %2353 = dma.done.wait (%p3102_p1), [#allocation21], 272   ;;  %p3103_p0 = pmov %p3102_p1 }
 0x15d   : > { %vm623_vm0 = vcmask 261120   ;;  %v721_v0 = vld [vmem:[%s496_s1] sm:$0xff]  ;;  %v1936_v2 = vld [vmem:[#allocation17] sm:$0xff]   ;;  %v2397_v3 = vmov 0.0   ;;  %vm2398_vm1 = vmmov 0   ;;  %s2399_s23 = smov 96   ;;  %v874_v59 = vlaneseq }
 0x15e   : > { %2355 = vsyncadd (%p3103_p0), [#allocation21], 4294967024  ;;  %v725_v1 = vsel %vm623_vm0, %v721_v0, 0.0  ;;  %1691 = vmatprep.subr.bf16.mxu0 %v2397_v3  ;;  %1699 = vmatprep.subr.bf16.mxu1 %v2397_v3  ;;  %v1937_v9 = vld [vmem:[#allocation17 + $0x8] sm:$0xff]   ;;  %v598_v10 = vld [vmem:[%s505_s7] sm:$0xff]  ;;  %vm668_vm2 = vcmask 257024  }
 0x15f   : > { %726 = vadd.xlane.f32.xlu0 %v725_v1  ;;  %1692 = vmatpush3.bf16.msra.mxu0 %v1936_v2  ;;  %v599_v11 = vpack.c.bf16 %v598_v10, %v598_v10  ;;  %v1938_v12 = vld [vmem:[#allocation14] sm:$0xff]   ;;  %v1939_v13 = vld [vmem:[#allocation14 + $0x8] sm:$0xff]   ;;  %v1635_v19 = vld [vmem:[#allocation11] ss:$0 sm:$0xff]  ;;  %vm826_vm3 = vcmask 64512   ;;  %s2400_s24 = smov 120  }
 0x160   : > { %1693 = vmatprep.subr.bf16.mxu0 %v2397_v3  ;;  %1695 = vmatprep.mubr.msk.bf16.mxu0 %vm2398_vm1, %v2397_v3  ;;  %v1636_v22 = vld [vmem:[#allocation13] ss:$0 sm:$0xff]  ;;  %v2900_v26 = vld [vmem:[#allocation19] ss:$0 sm:$0xff]  ;;  %s2401_s20 = smov 112   ;;  %s2402_s25 = smov 104  }
 0x161   : > { %1703 = vmatprep.mubr.msk.bf16.mxu1 %vm2398_vm1, %v2397_v3  ;;  %670 = vrot.lane.b32.xlu1 %v1936_v2, %s2399_s23  ;;  %v1637_v37 = vld [vmem:[#allocation16] ss:$0 sm:$0xff]  ;;  %v821_v58 = vld [vmem:[%s513_s22] sm:$0x1]  ;;  %v875_v61 = vshrl.u32 %v874_v59, 7  ;;  %vm895_vm5 = vcmask 1043456  }
 0x162   : > { %v822_v60 = vunpack.c.0.s8 %v821_v58  ;;  %v2403_v63 = vmov -1e+30   ;;  %s2404_s15 = smov 8   ;;  %s2405_s16 = smov 16   ;;  %vm1065_vm6 = vcmask 130112   ;;  %vm1191_vm7 = vcmask 195712  }
 0x163   : > { %1694 = vmatpush3.bf16.msra.mxu0 %v1937_v9  ;;  %v876_v62 = vsub.s32 0, %v875_v61  ;;  %s2406_s12 = smov 24   ;;  %s3104_s27 = sld [smem:[#allocation32_spill]]  ;;  %vm1317_vm8 = vcmask 261312  }
 0x164   : > { %1707 = vmatprep.subr.bf16.mxu0 %v2397_v3  ;;  %vm823_vm4 = vcmp.ne.s32.totalorder %v822_v60, 0  ;;  %s592_s9 = scalar_lea.vmem [#allocation23], %s2840_s29  ;;  %s3105_s19 = sld [smem:[#allocation43_spill]] }
 0x165   : > { %672 = vrot.lane.b32.xlu1 %v1937_v9, %s2399_s23  ;;  %s1405_s14 = sshll.u32 %s592_s9, 4  ;;  %s1391_s29 = scalar_lea.sflag [#allocation7], %s2837_s13  ;;  %s2977_s14 = int_to_ptr.vmem [resolvable:$true] %s1405_s14 }
 0x166   : > { %1696 = vmatmul.mubr.msk.bf16.vlgmr.msra.gmra.mrb[0].mxu0 %vm623_vm0, %v599_v11  ;;  %s2280_s30 = scalar_lea.vmem %s2977_s14, 128  ;;  %p3107_p4 = scmp.ne.s32.totalorder %s3079_s11, 0 }
 0x167   : > { %1711 = vmatprep.mubr.msk.bf16.mxu0 %vm2398_vm1, %v2397_v3  ;;  %1708 = vmatpush3.bf16.msra.mxu0 %v1938_v12  ;;  %p2281_p5 = scmp.ne.s32.totalorder %s2977_s14, %s2280_s30  ;;  %s2407_s7 = smov [#allocation23]  }
 0x168   : > { %1709 = vmatprep.subr.bf16.mxu0 %v2397_v3  ;;  %s2284_s22 = sshll.u32 %s2407_s7, 4  ;;  %s2285_s22 = int_to_ptr.vmem [resolvable:$false] %s2284_s22 }
 0x169   : > { %s1660_s26 = sshll.u32 %s3104_s27, 7  ;;  %p2282_p2 = pnand %p2281_p5, %p3107_p4 }
 0x16a   : > { %s3106_s1 = smov %s3105_s19  ;;  %s2975_s5 = scalar_lea.hbm %s3105_s19, %s1660_s26 }
 0x16b   : > { %1710 = vmatpush3.bf16.msra.mxu0 %v1939_v13  ;;  %p2283_p7 = pneg %p2282_p2  ;;  %p2287_p10 = scmp.lt.s32.totalorder %s2977_s14, %s2285_s22 }
 0x16c   : > { %1721 = vmatprep.subr.bf16.mxu0 %v2397_v3 }
 0x1d3   : > { %v671_v17 = vpop.permute.xlu1 %670 }
 0x1d4   : > { %1700 = vmatpush3.bf16.msra.mxu1 %v671_v17 }
 0x1d5   : > { %1701 = vmatprep.subr.bf16.mxu1 %v2397_v3 }
 0x1d7   : > { %v673_v20 = vpop.permute.xlu1 %672 }
 0x1d8   : > { %1702 = vmatpush3.bf16.msra.mxu1 %v673_v20 }
 0x1d9   : > { %1715 = vmatprep.subr.bf16.mxu1 %v2397_v3 }
 0x1db   : > { %1704 = vmatmul.mubr.msk.bf16.vlgmr.msra.gmra.mrb[0].mxu1 %vm623_vm0, %v599_v11 }
 0x1dc   : > { %1717 = vmatprep.mubr.msk.bf16.mxu1 %vm2398_vm1, %v2397_v3 }
 0x1ec   : > { %v727_v4 = vpop.xlane.xlu0 %726 }
 0x1ed   : > { %v729_v5 = vmul.f32 0.03125, %v727_v4 }
 0x1ef   : > { %v730_v6 = vsub.f32 %v721_v0, %v729_v5  ;;  %v824_v0 = vsel %vm823_vm4, 0.0, %v2403_v63 }
 0x1f0   : > { %v877_v1 = vrot.slane %v824_v0, %v876_v62 }
 0x1f1   : > { %v731_v7 = vmul.f32 %v730_v6, %v730_v6 }
 0x1f3   : > { %v732_v8 = vsel %vm623_vm0, %v731_v7, 0.0 }
 0x1f4   : > { %733 = vadd.xlane.f32.xlu0 %v732_v8 }
 0x239   : > { %v661_v27 = vpop.f32.mrb[0].mxu0 }
 0x23a   : > { %v662_v28 = vadd.f32 %v2900_v26, %v661_v27  ;;  %v1697_v29 = vpop.f32.mrb[1].mxu0 }
 0x23b   : > { %v664_v30 = vpop.f32.mrb[2].mxu0 }
 0x23c   : > { %v667_v31 = vpack.c.bf16 %v662_v28, %v662_v28  ;;  %v1698_v32 = vpop.f32.mrb[3].mxu0 }
 0x23e   : > { %669 = vst.msk [vmem:[#allocation2] sm:$0xf] %vm668_vm2, %v667_v31 }
 0x245   : > { %v1940_v33 = vld [vmem:[#allocation2] ss:$0 sps:$4 sm:$0xff]  }
 0x246   : > { %v825_v34 = vld [vmem:[#allocation2] sm:$0xf]  ;;  %947 = vrot.lane.b32.xlu0 %v1940_v33, %s2400_s24 }
 0x247   : > { %v831_v35 = vsel %vm826_vm3, %v825_v34, 0  ;;  %v1941_v36 = vld [vmem:[#allocation2] ss:$0 sps:$4 sm:$0xff]  }
 0x248   : > { %1716 = vmatpush3.bf16.xpose.msra.mxu1 %v831_v35  ;;  %1073 = vrot.lane.b32.xlu1 %v1941_v36, %s2401_s20  ;;  %v1942_v49 = vld [vmem:[#allocation2] ss:$0 sps:$4 sm:$0xff]  }
 0x249   : > { %1727 = vmatprep.subr.bf16.mxu1 %v2397_v3 }
 0x281   : > { %v734_v14 = vpop.xlane.xlu0 %733 }
 0x282   : > { %v735_v15 = vmul.f32 0.03125, %v734_v14 }
 0x284   : > { %v736_v16 = vadd.f32 1e-05, %v735_v15 }
 0x286   : > { %1948 = vrsqrt.f32 %v736_v16 }
 0x290   : > { %v1949_v18 = vpop.eup %1948 }
 0x291   : > { %v738_v21 = vmul.f32 %v1949_v18, %v730_v6 }
 0x293   : > { %v745_v23 = vmul.f32 %v1635_v19, %v738_v21 }
 0x295   : > { %v2891_v24 = vadd.f32 %v1636_v22, %v745_v23 }
 0x297   : > { %v753_v25 = vpack.c.bf16 %v2891_v24, %v2891_v24 }
 0x299   : > { %1712 = vmatmul.mubr.msk.bf16.vlgmr.msra.gmra.mrb[4].mxu0 %vm623_vm0, %v753_v25 }
 0x29a   : > { %1723 = vmatprep.mubr.msk.bf16.mxu0 %vm2398_vm1, %v2397_v3 }
 0x2ae   : > { %v2914_v46 = vpop.f32.mrb[0].mxu1 }
 0x2af   : > { %v1705_v47 = vpop.f32.mrb[1].mxu1 }
 0x2b0   : > { %v716_v48 = vpop.f32.mrb[2].mxu1 }
 0x2b1   : > { %v1706_v50 = vpop.f32.mrb[3].mxu1 }
 0x2b8   : > { %v948_v39 = vpop.permute.xlu0 %947 }
 0x2b9   : > { %v953_v45 = vsel %vm826_vm3, %v948_v39, 0 }
 0x2ba   : > { %v1074_v51 = vpop.permute.xlu1 %1073 }
 0x2bb   : > { %v1079_v53 = vsel %vm826_vm3, %v1074_v51, 0 }
 0x36c   : > { %v814_v38 = vpop.f32.mrb[4].mxu0 }
 0x36d   : > { %v815_v40 = vadd.f32 %v1637_v37, %v814_v38  ;;  %v1713_v41 = vpop.f32.mrb[5].mxu0 }
 0x36e   : > { %v817_v42 = vpop.f32.mrb[6].mxu0 }
 0x36f   : > { %v820_v43 = vpack.c.bf16 %v815_v40, %v815_v40  ;;  %v1714_v44 = vpop.f32.mrb[7].mxu0 }
 0x371   : > { %942 = vrot.lane.b32.xlu1 %v820_v43, %s2400_s24  ;;  %1718 = vmatmul.mubr.msk.bf16.vlgmr.msra.gmra.mrb[4].mxu1 %vm826_vm3, %v820_v43 }
 0x372   : > { %1728 = vmatpush3.bf16.xpose.msra.mxu1 %v953_v45  ;;  %1729 = vmatprep.mubr.msk.bf16.mxu1 %vm2398_vm1, %v2397_v3 }
 0x373   : > { %1739 = vmatprep.subr.bf16.mxu1 %v2397_v3 }
 0x375   : > { %1068 = vrot.lane.b32.xlu1 %v820_v43, %s2401_s20 }
 0x379   : > { %1199 = vrot.lane.b32.xlu1 %v1942_v49, %s2402_s25 }
 0x37d   : > { %1194 = vrot.lane.b32.xlu1 %v820_v43, %s2402_s25 }
 0x3e3   : > { %v943_v52 = vpop.permute.xlu1 %942 }
 0x3e4   : > { %1730 = vmatmul.mubr.msk.bf16.vlgmr.msra.gmra.mrb[8].mxu1 %vm826_vm3, %v943_v52 }
 0x3e5   : > { %1740 = vmatpush3.bf16.xpose.msra.mxu1 %v1079_v53  ;;  %1741 = vmatprep.mubr.msk.bf16.mxu1 %vm2398_vm1, %v2397_v3 }
 0x3e6   : > { %1751 = vmatprep.subr.bf16.mxu1 %v2397_v3 }
 0x3e7   : > { %v1069_v54 = vpop.permute.xlu1 %1068 }
 0x3eb   : > { %v1200_v55 = vpop.permute.xlu1 %1199 }
 0x3ec   : > { %v1205_v56 = vsel %vm826_vm3, %v1200_v55, 0  ;;  %1742 = vmatmul.mubr.msk.bf16.vlgmr.msra.gmra.mrb[12].mxu1 %vm826_vm3, %v1069_v54 }
 0x3ed   : > { %1752 = vmatpush3.bf16.xpose.msra.mxu1 %v1205_v56  ;;  %1753 = vmatprep.mubr.msk.bf16.mxu1 %vm2398_vm1, %v2397_v3 }
 0x3ee   : > { %1763 = vmatprep.subr.bf16.mxu1 %v2397_v3 }
 0x3ef   : > { %v1195_v57 = vpop.permute.xlu1 %1194 }
 0x3f4   : > { %1754 = vmatmul.mubr.msk.bf16.vlgmr.msra.gmra.mrb[16].mxu1 %vm826_vm3, %v1195_v57 }
 0x3f5   : > { %1767 = vmatprep.mubr.msk.bf16.mxu1 %vm2398_vm1, %v2397_v3 }
 0x444   : > { %v867_v2 = vpop.f32.mrb[4].mxu1 }
 0x445   : > { %v873_v4 = vmul.f32 0.35355338, %v867_v2  ;;  %v1719_v5 = vpop.f32.mrb[5].mxu1 }
 0x446   : > { %v870_v6 = vpop.f32.mrb[6].mxu1 }
 0x447   : > { %v1720_v7 = vpop.f32.mrb[7].mxu1  ;;  %v878_v8 = vadd.f32 %v877_v1, %v873_v4 }
 0x449   : > { %v879_v9 = vsel %vm826_vm3, %v878_v8, -inf }
 0x44a   : > { %880 = vmax.xlane.f32.xlu1 %v879_v9 }
 0x4b7   : > { %v989_v10 = vpop.f32.mrb[8].mxu1 }
 0x4b8   : > { %v995_v11 = vmul.f32 0.35355338, %v989_v10  ;;  %v1731_v12 = vpop.f32.mrb[9].mxu1 }
 0x4b9   : > { %v992_v13 = vpop.f32.mrb[10].mxu1 }
 0x4ba   : > { %v1732_v14 = vpop.f32.mrb[11].mxu1  ;;  %v996_v15 = vadd.f32 %v995_v11, %v877_v1 }
 0x4bc   : > { %v997_v16 = vsel %vm826_vm3, %v996_v15, -inf }
 0x4bd   : > { %998 = vmax.xlane.f32.xlu0 %v997_v16 }
 0x4bf   : > { %v1115_v17 = vpop.f32.mrb[12].mxu1 }
 0x4c0   : > { %v1121_v18 = vmul.f32 0.35355338, %v1115_v17  ;;  %v1743_v19 = vpop.f32.mrb[13].mxu1 }
 0x4c1   : > { %v1118_v20 = vpop.f32.mrb[14].mxu1 }
 0x4c2   : > { %v1744_v21 = vpop.f32.mrb[15].mxu1  ;;  %v1122_v22 = vadd.f32 %v1121_v18, %v877_v1 }
 0x4c4   : > { %v1123_v23 = vsel %vm826_vm3, %v1122_v22, -inf }
 0x4c5   : > { %1124 = vmax.xlane.f32.xlu0 %v1123_v23 }
 0x4c7   : > { %v1241_v25 = vpop.f32.mrb[16].mxu1 }
 0x4c8   : > { %v1247_v27 = vmul.f32 0.35355338, %v1241_v25  ;;  %v1755_v28 = vpop.f32.mrb[17].mxu1 }
 0x4c9   : > { %v1244_v29 = vpop.f32.mrb[18].mxu1 }
 0x4ca   : > { %v1756_v30 = vpop.f32.mrb[19].mxu1  ;;  %v1248_v31 = vadd.f32 %v1247_v27, %v877_v1  ;;  %v1946_v29 = vld [vmem:[#allocation20] sm:$0xff]  }
 0x4cb   : > { %1764 = vmatpush3.bf16.msra.mxu1 %v1946_v29  ;;  %v1947_v30 = vld [vmem:[#allocation20 + $0x8] sm:$0xff]  }
 0x4cc   : > { %v1249_v32 = vsel %vm826_vm3, %v1248_v31, -inf  ;;  %1765 = vmatprep.subr.bf16.mxu1 %v2397_v3 }
 0x4cd   : > { %1250 = vmax.xlane.f32.xlu1 %v1249_v32 }
 0x4cf   : > { %1766 = vmatpush3.bf16.msra.mxu1 %v1947_v30 }
 0x4d7   : > { %v881_v33 = vpop.xlane.xlu1 %880 }
 0x4d8   : > { %v882_v34 = vsub.f32 %v878_v8, %v881_v33 }
 0x4da   : > { %v883_v35 = vmul.f32 1.442695, %v882_v34 }
 0x4db   : > { %676 = vrot.lane.b32.xlu0 %v2900_v26, %s2399_s23  ;;  %s2286_s23 = scalar_lea.vmem %s2285_s22, 256 }
 0x4dc   : > { %1950 = vpow2.f32 %v883_v35  ;;  %p2288_p6 = scmp.lt.s32.totalorder %s2286_s23, %s2280_s30 }
 0x4de   : > { %p2289_p13 = por %p2288_p6, %p2287_p10 }
 0x4e0   : > { %p2290_p9 = pnand %p2289_p13, %p2283_p7 }
 0x4e6   : > { %v1951_v36 = vpop.eup %1950 }
 0x4e7   : > { %v885_v37 = vsel %vm826_vm3, %v1951_v36, 0.0 }
 0x4e8   : > { %886 = vadd.xlane.f32.xlu1 %v885_v37 }
 0x54a   : > { %v999_v38 = vpop.xlane.xlu0 %998 }
 0x54b   : > { %v1000_v39 = vsub.f32 %v996_v15, %v999_v38 }
 0x54d   : > { %v1001_v40 = vmul.f32 1.442695, %v1000_v39 }
 0x54f   : > { %1952 = vpow2.f32 %v1001_v40 }
 0x552   : > { %v1125_v41 = vpop.xlane.xlu0 %1124 }
 0x553   : > { %v1126_v42 = vsub.f32 %v1122_v22, %v1125_v41 }
 0x555   : > { %v1127_v43 = vmul.f32 1.442695, %v1126_v42 }
 0x556   : > { %v677_v44 = vpop.permute.xlu0 %676 }
 0x557   : > { %1954 = vpow2.f32 %v1127_v43  ;;  %v714_v45 = vadd.f32 %v2914_v46, %v677_v44  ;;  %v1658_v44 = vld [vmem:[#allocation22] ss:$0 sm:$0xff] }
 0x559   : > { %v1953_v47 = vpop.eup %1952  ;;  %v719_v48 = vpack.c.bf16 %v714_v45, %v714_v45 }
 0x55a   : > { %v1251_v49 = vpop.xlane.xlu1 %1250  ;;  %v1003_v26 = vsel %vm826_vm3, %v1953_v47, 0.0 }
 0x55b   : > { %720 = vst.msk [vmem:[#allocation3] sm:$0xf] %vm668_vm2, %v719_v48  ;;  %v1252_v50 = vsub.f32 %v1248_v31, %v1251_v49  ;;  %1004 = vadd.xlane.f32.xlu1 %v1003_v26 }
 0x55d   : > { %v1253_v51 = vmul.f32 1.442695, %v1252_v50 }
 0x55f   : > { %1956 = vpow2.f32 %v1253_v51 }
 0x561   : > { %v1955_v52 = vpop.eup %1954 }
 0x562   : > { %v1129_v53 = vsel %vm826_vm3, %v1955_v52, 0.0  ;;  %v891_v54 = vld [vmem:[#allocation3] sm:$0xf] }
 0x563   : > { %1130 = vadd.xlane.f32.xlu1 %v1129_v53  ;;  %v897_v55 = vsel %vm895_vm5, %v891_v54, 0  ;;  %v1943_v46 = vld [vmem:[#allocation3] ss:$0 sps:$4 sm:$0xff]  }
 0x564   : > { %1722 = vmatpush3.bf16.msra.mxu0 %v897_v55  ;;  %1139 = vrot.lane.b32.xlu0 %v1943_v46, %s2401_s20  ;;  %v1944_v56 = vld [vmem:[#allocation3] ss:$0 sps:$4 sm:$0xff]  }
 0x565   : > { %1733 = vmatprep.subr.bf16.mxu0 %v2397_v3  ;;  %v1945_v60 = vld [vmem:[#allocation3] ss:$0 sps:$4 sm:$0xff]  }
 0x568   : > { %1265 = vrot.lane.b32.xlu0 %v1944_v56, %s2402_s25 }
 0x569   : > { %v1957_v57 = vpop.eup %1956 }
 0x56a   : > { %v1255_v58 = vsel %vm826_vm3, %v1957_v57, 0.0 }
 0x56b   : > { %1256 = vadd.xlane.f32.xlu1 %v1255_v58 }
 0x575   : > { %v887_v59 = vpop.xlane.xlu1 %886 }
 0x576   : > { %1958 = vrcp.f32 %v887_v59 }
 0x57c   : > { %1013 = vrot.lane.b32.xlu1 %v1945_v60, %s2400_s24 }
 0x580   : > { %v1959_v61 = vpop.eup %1958 }
 0x581   : > { %v889_v62 = vmul.f32 %v1959_v61, %v1951_v36 }
 0x583   : > { %v890_v63 = vpack.c.bf16 %v889_v62, %v889_v62 }
 0x585   : > { %1724 = vmatmul.mubr.msk.bf16.vlgmr.msra.gmra.mrb[8].mxu0 %vm826_vm3, %v890_v63 }
 0x586   : > { %1735 = vmatprep.mubr.msk.bf16.mxu0 %vm2398_vm1, %v2397_v3 }
 0x5d6   : > { %v1140_v8 = vpop.permute.xlu0 %1139 }
 0x5d7   : > { %v1145_v11 = vsel %vm895_vm5, %v1140_v8, 0 }
 0x5da   : > { %v1266_v13 = vpop.permute.xlu0 %1265 }
 0x5db   : > { %v1271_v16 = vsel %vm895_vm5, %v1266_v13, 0 }
 0x5e8   : > { %v1005_v0 = vpop.xlane.xlu1 %1004 }
 0x5e9   : > { %1960 = vrcp.f32 %v1005_v0 }
 0x5f0   : > { %v1131_v1 = vpop.xlane.xlu1 %1130 }
 0x5f1   : > { %1962 = vrcp.f32 %v1131_v1 }
 0x5f3   : > { %v1961_v2 = vpop.eup %1960 }
 0x5f4   : > { %v1007_v5 = vmul.f32 %v1961_v2, %v1953_v47 }
 0x5f6   : > { %v1008_v9 = vpack.c.bf16 %v1007_v5, %v1007_v5 }
 0x5f8   : > { %v1257_v4 = vpop.xlane.xlu1 %1256 }
 0x5f9   : > { %1964 = vrcp.f32 %v1257_v4 }
 0x5fb   : > { %v1963_v10 = vpop.eup %1962 }
 0x5fc   : > { %v1014_v6 = vpop.permute.xlu1 %1013  ;;  %v1133_v12 = vmul.f32 %v1963_v10, %v1955_v52 }
 0x5fd   : > { %v1019_v7 = vsel %vm895_vm5, %v1014_v6, 0 }
 0x5fe   : > { %1734 = vmatpush3.bf16.msra.mxu0 %v1019_v7  ;;  %v1134_v14 = vpack.c.bf16 %v1133_v12, %v1133_v12 }
 0x5ff   : > { %1745 = vmatprep.subr.bf16.mxu0 %v2397_v3 }
 0x601   : > { %1736 = vmatmul.mubr.msk.bf16.vlgmr.msra.gmra.mrb[12].mxu0 %vm826_vm3, %v1008_v9 }
 0x602   : > { %1746 = vmatpush3.bf16.msra.mxu0 %v1145_v11  ;;  %1747 = vmatprep.mubr.msk.bf16.mxu0 %vm2398_vm1, %v2397_v3 }
 0x603   : > { %1757 = vmatprep.subr.bf16.mxu0 %v2397_v3  ;;  %v1965_v15 = vpop.eup %1964 }
 0x604   : > { %v1259_v17 = vmul.f32 %v1965_v15, %v1957_v57 }
 0x606   : > { %v1260_v18 = vpack.c.bf16 %v1259_v17, %v1259_v17 }
 0x609   : > { %1748 = vmatmul.mubr.msk.bf16.vlgmr.msra.gmra.mrb[16].mxu0 %vm826_vm3, %v1134_v14 }
 0x60a   : > { %1758 = vmatpush3.bf16.msra.mxu0 %v1271_v16  ;;  %1759 = vmatprep.mubr.msk.bf16.mxu0 %vm2398_vm1, %v2397_v3 }
 0x611   : > { %1760 = vmatmul.mubr.msk.bf16.vlgmr.msra.gmra.mrb[20].mxu0 %vm826_vm3, %v1260_v18 }
 0x658   : > { %v933_v19 = vpop.f32.mrb[8].mxu0 }
 0x659   : > { %939 = vst.msk [vmem:[#allocation4] sm:$0xff] %vm826_vm3, %v933_v19  ;;  %v1725_v20 = vpop.f32.mrb[9].mxu0 }
 0x65a   : > { %v936_v21 = vpop.f32.mrb[10].mxu0 }
 0x65b   : > { %v1726_v22 = vpop.f32.mrb[11].mxu0 }
 0x6d4   : > { %v1055_v23 = vpop.f32.mrb[12].mxu0 }
 0x6d5   : > { %1062 = vrot.lane.b32.xlu0 %v1055_v23, %s2404_s15  ;;  %v1737_v25 = vpop.f32.mrb[13].mxu0 }
 0x6d6   : > { %v1058_v27 = vpop.f32.mrb[14].mxu0 }
 0x6d7   : > { %v1738_v28 = vpop.f32.mrb[15].mxu0 }
 0x6dc   : > { %v1181_v31 = vpop.f32.mrb[16].mxu0 }
 0x6dd   : > { %1188 = vrot.lane.b32.xlu0 %v1181_v31, %s2405_s16  ;;  %v1749_v32 = vpop.f32.mrb[17].mxu0 }
 0x6de   : > { %v1184_v33 = vpop.f32.mrb[18].mxu0 }
 0x6df   : > { %v1750_v34 = vpop.f32.mrb[19].mxu0 }
 0x6e4   : > { %v1307_v35 = vpop.f32.mrb[20].mxu0 }
 0x6e5   : > { %1314 = vrot.lane.b32.xlu1 %v1307_v35, %s2406_s12  ;;  %v1761_v36 = vpop.f32.mrb[21].mxu0 }
 0x6e6   : > { %v1310_v37 = vpop.f32.mrb[22].mxu0 }
 0x6e7   : > { %v1762_v38 = vpop.f32.mrb[23].mxu0 }
 0x747   : > { %v1063_v39 = vpop.permute.xlu0 %1062 }
 0x748   : > { %1066 = vst.msk [vmem:[#allocation4] sm:$0xff] %vm1065_vm6, %v1063_v39 }
 0x74f   : > { %v1189_v3 = vpop.permute.xlu0 %1188 }
 0x750   : > { %1192 = vst.msk [vmem:[#allocation4] sm:$0xff] %vm1191_vm7, %v1189_v3 }
 0x757   : > { %v1315_v40 = vpop.permute.xlu1 %1314 }
 0x758   : > { %1318 = vst.msk [vmem:[#allocation4] sm:$0xff] %vm1317_vm8, %v1315_v40 }
 0x75f   : > { %v1319_v41 = vld [vmem:[#allocation4] sm:$0xff] }
 0x760   : > { %v1320_v42 = vpack.c.bf16 %v1319_v41, %v1319_v41 }
 0x762   : > { %1768 = vmatmul.mubr.msk.bf16.vlgmr.msra.gmra.mrb[20].mxu1 %vm623_vm0, %v1320_v42 }
 0x835   : > { %v1374_v43 = vpop.f32.mrb[20].mxu1 }
 0x836   : > { %v1380_v45 = vadd.f32 %v1374_v43, %v2891_v24  ;;  %v1769_v47 = vpop.f32.mrb[21].mxu1 }
 0x837   : > { %v1377_v48 = vpop.f32.mrb[22].mxu1 }
 0x838   : > { %v1388_v49 = vadd.f32 %v1658_v44, %v1380_v45  ;;  %v1770_v26 = vpop.f32.mrb[23].mxu1 }
 0x83a   : > { %1389 = vst.msk [vmem:[%s592_s9] sm:$0xff] %vm623_vm0, %v1388_v49 }
 0x83b   : > { %2293 = shalt.err (!%p2290_p9)
}
 0x83c   : > { %s2294_s13 = scalar_lea.hbm %s2975_s5, 128  ;;  %s2298_s25 = scalar_lea.hbm %s3106_s1, 256 }
 0x83d   : > { %p2295_p3 = scmp.ne.s32.totalorder %s2975_s5, %s2294_s13  ;;  %p2299_p8 = scmp.lt.u32.totalorder %s2975_s5, %s3106_s1 }
 0x83e   : > { %p2300_p1 = scmp.lt.u32.totalorder %s2298_s25, %s2294_s13  ;;  %p2302_p5 = scmp.lt.u32.totalorder %s2294_s13, %s2975_s5 }
 0x83f   : > { %p2296_p11 = pnand %p2295_p3, %p3107_p4 }
 0x840   : > { %p2301_p0 = por %p2300_p1, %p2299_p8 }
 0x841   : > { %p2297_p12 = pneg %p2296_p11 }
 0x842   : > { %p2303_p2 = por %p2302_p5, %p2301_p0 }
 0x844   : > { %p2304_p7 = pnand %p2303_p2, %p2297_p12 }
 0x846   : > { %2307 = shalt.err (!%p2304_p7)
}
 0x847   : > { %1809 = dma.vmem_to_hbm [thread:$0]  (%p3107_p4), %s2977_s14, 128, %s2975_s5, %s1391_s29  }
 0x848 PF: > { %s3108_s12 = sld [smem:[#allocation37_spill]]  ;;  %s3109_s27 = sld [smem:[#allocation33_spill]] }
 0x849   : > { %s1417_s26 = sand.u32 1, %s2362_s17  }
 0x84a   : > { %s1418_s9 = scalar_lea.sflag [#allocation7], %s1417_s26 }
 0x84e   : > { %p3110_p10 = scmp.ne.s32.totalorder %s3108_s12, 0  ;;  %p3111_p6 = scmp.ge.s32.totalorder %s3109_s27, 2 }
 0x850   : > { %p1847_p13 = pnand %p3111_p6, %p3110_p10 }
 0x852   : > { %2357 = dma.done.wait (!%p1847_p13), %s1418_s9, 128  }
 0x853   : > { %2359 = vsyncadd (!%p1847_p13), %s1418_s9, 4294967168  ;;  %s34_s22 = sadd.s32 1, %s3109_s27   ;;  %s3112_s28 = sld [smem:[#allocation31_spill]] }
 0x854   : > { %p31_p9 = scmp.ge.s32.totalorder %s34_s22, 4   ;;  %s3113_s19 = sld [smem:[#allocation36_spill]] }
 0x855   : > { %s3114_s11 = sld [smem:[#allocation35_spill]]  ;;  %s3115_s17 = smov %s2366_s18 }
 0x856   : > { %s3117_s20 = smov %s2378_s21  ;;  %33 = sbr.rel (!%p31_p9) target bundleno = 19 (0x13), region = 169 }
 0x859   : > { %s3116_s18 = smov %s3112_s28 }
 0x85b   : > { %s3118_s21 = smov %s3114_s11 }
 0x85d   :  { %1423 = vsyncpa [#allocation6], 1 }
 0x85e   :  { %1425 = vsyncpa [#allocation6 + $0x1], 1 }
 0x85f   :  { %1426 = vsyncpa [#allocation9], 1 }
 0x860   :  { %1428 = vsyncpa [#allocation9 + $0x1], 1 }
 0x861   :  { %1429 = vsyncpa [#allocation12], 1 }
 0x862   :  { %1430 = vsyncpa [#allocation15], 1 }
 0x863   :  { %1431 = vsyncpa [#allocation18], 1 }
 0x864   :  { %1432 = vsyncpa [#allocation21], 1 }
 0x865   :  { %1433 = vsyncpa [#allocation7], 1 }
 0x866   :  { %1435 = vsyncpa [#allocation7 + $0x1], 1 }

// kernel: decoder_block.3
= control target key start
LH: loop header
LB: loop body
LE: loop exit
PB: predicated region body
PF: predicated region fallthrough
CT: control target
= control target key end

     0   :  { %s3460_s0 = inlined_call_operand.hbm [shape: f32[2,8,32], index: 0, kind: input, shape index: {}, may-alias: {0,1}]   ;;  %s3461_s1 = inlined_call_operand.hbm [shape: f32[2,8,32], index: 1, kind: input, shape index: {}, may-alias: {0,1}]   ;;  %s3462_s2 = inlined_call_operand.hbm [shape: f32[1,32], index: 2, kind: input, shape index: {}]   ;;  %s3463_s3 = inlined_call_operand.hbm [shape: f32[1,32], index: 3, kind: input, shape index: {}]   ;;  %s3464_s4 = inlined_call_operand.hbm [shape: bf16[32,32], index: 4, kind: input, shape index: {}]   ;;  %s3465_s5 = inlined_call_operand.hbm [shape: f32[1,32], index: 5, kind: input, shape index: {}]   ;;  %s3466_s6 = inlined_call_operand.hbm [shape: bf16[32,64], index: 6, kind: input, shape index: {}]   ;;  %s3467_s7 = inlined_call_operand.hbm [shape: f32[1,64], index: 7, kind: input, shape index: {}]   ;;  %s3468_s8 = inlined_call_operand.hbm [shape: bf16[32,32], index: 8, kind: input, shape index: {}]   ;;  %s3469_s9 = inlined_call_operand.hbm [shape: f32[1,32], index: 9, kind: input, shape index: {}]   ;;  %s3470_s10 = inlined_call_operand.hbm [shape: f32[2,8,32], index: 10, kind: output, shape index: {}]  }
   0x1   :  { %3476 = sst [smem:[#allocation32_spill]] %s3462_s2 }
   0x2   :  { %3477 = sst [smem:[#allocation33_spill]] %s3463_s3 }
   0x3   :  { %3478 = sst [smem:[#allocation34_spill]] %s3464_s4 }
   0x4   :  { %3479 = sst [smem:[#allocation35_spill]] %s3465_s5 }
   0x5   :  { %3480 = sst [smem:[#allocation36_spill]] %s3466_s6 }
   0x6   :  { %3481 = sst [smem:[#allocation37_spill]] %s3467_s7 }
   0x7   :  { %3482 = sst [smem:[#allocation38_spill]] %s3468_s8 }
   0x8   :  { %3483 = sst [smem:[#allocation39_spill]] %s3470_s10 }
   0x9   :  { %15 = vsyncpa [#allocation6], 0 }
   0xa   :  { %17 = vsyncpa [#allocation6 + $0x1], 0 }
   0xb   :  { %18 = vsyncpa [#allocation9], 0 }
   0xc   :  { %20 = vsyncpa [#allocation9 + $0x1], 0 }
   0xd   :  { %21 = vsyncpa [#allocation12], 0 }
   0xe   :  { %22 = vsyncpa [#allocation15], 0 }
   0xf   :  { %23 = vsyncpa [#allocation18], 0 }
  0x10   :  { %24 = vsyncpa [#allocation21], 0 }
  0x11   :  { %25 = vsyncpa [#allocation7], 0 }
  0x12   :  { %27 = vsyncpa [#allocation7 + $0x1], 0  ;;  %s2865_s13 = smov 0   ;;  %s2867_s14 = smov 0  }
  0x13   :  { %s2869_s15 = smov 0   ;;  %s2871_s16 = smov 0  }
  0x14   :  { %s2873_s17 = smov 0   ;;  %s2875_s18 = smov 0  }
  0x15 LB: > { %3484 = sst [smem:[#allocation31_spill]] %s2706_s16  ;;  %s2896_s19 = sadd.s32 4294967295, %s2714_s18   ;;  %s2714_s18 = sphi %s2875_s18, %s33_s18   ;;  %s2710_s17 = sphi %s2873_s17, %s3535_s17   ;;  %s2706_s16 = sphi %s2871_s16, %s3534_s16   ;;  %s2702_s15 = sphi %s2869_s15, %s3533_s15   ;;  %s2698_s14 = sphi %s2867_s14, %s3532_s14   ;;  %s2694_s13 = sphi %s2865_s13, %s3531_s13  }
  0x16   : > { %p1744_p0 = scmp.ge.s32.totalorder %s2714_s18, 1  ;;  %p3471_p1 = scmp.eq.s32.totalorder %s2896_s19, 0 }
  0x17   : > { %p300_p2 = scmp.lt.s32.totalorder %s2714_s18, 3  ;;  %s2780_s21 = smov [#allocation10]  }
  0x18   : > { %s313_s22 = sshll.u32 %s2780_s21, 4  ;;  %s2781_s23 = smov [#allocation11]   ;;  %s314_s22 = int_to_ptr.vmem [resolvable:$true] %s313_s22 }
  0x19   : > { %p2901_p3 = pnand %p1744_p0, %p300_p2  ;;  %s324_s24 = sshll.u32 %s2781_s23, 4  ;;  %s2914_s24 = int_to_ptr.vmem [resolvable:$true] %s324_s24 }
  0x1a   : > { %s2782_s26 = smov [#allocation14]   ;;  %s3487_s2 = sld [smem:[#allocation32_spill]] }
  0x1b   : > { %s3485_s20 = scalar_select %p2901_p3, 1, 0 }
  0x1c   : > { %p1963_p5 = pneg %p2901_p3  ;;  %s348_s27 = sshll.u32 %s2782_s26, 4  ;;  %s2916_s27 = int_to_ptr.vmem [resolvable:$true] %s348_s27 }
  0x1e   : > { %p2910_p6 = pnand %p1963_p5, %p3471_p1 }
  0x20   : > { %s2260_s30 = scalar_lea.hbm %s3487_s2, 16  ;;  %p2926_p8 = pneg %p2910_p6 }
  0x21   : > { %p2261_p7 = scmp.ne.s32.totalorder %s3487_s2, %s2260_s30  ;;  %p2267_p11 = scmp.lt.u32.totalorder %s2260_s30, %s3487_s2 }
  0x23   : > { %p2263_p9 = pnand %p2926_p8, %p2261_p7 }
  0x25   : > { %p2264_p10 = pneg %p2263_p9 }
  0x27   : > { %p2269_p12 = pnand %p2267_p11, %p2264_p10 }
  0x29   : > { %2272 = shalt.err (!%p2269_p12)
}
  0x2a   : > { %s2273_s28 = scalar_lea.vmem %s314_s22, 16  ;;  %s2280_s29 = scalar_lea.vmem %s314_s22, 32 }
  0x2b   : > { %p2274_p13 = scmp.ne.s32.totalorder %s314_s22, %s2273_s28  ;;  %p2281_p5 = scmp.lt.s32.totalorder %s314_s22, %s314_s22 }
  0x2c   : > { %p2282_p4 = scmp.lt.s32.totalorder %s2280_s29, %s2273_s28 }
  0x2d   : > { %p2276_p0 = pnand %p2274_p13, %p2926_p8 }
  0x2e   : > { %p2283_p1 = por %p2282_p4, %p2281_p5 }
  0x2f   : > { %p2277_p2 = pneg %p2276_p0 }
  0x31   : > { %p2284_p3 = pnand %p2283_p1, %p2277_p2 }
  0x33   : > { %2287 = shalt.err (!%p2284_p3)
}
  0x34   : > { %1966 = dma.hbm_to_vmem [thread:$0]  (!%p2910_p6), %s3487_s2, 16, %s314_s22, [#allocation9]  }
  0x35   : > { %s3489_s3 = sld [smem:[#allocation33_spill]] }
  0x3b   : > { %s2288_s26 = scalar_lea.hbm %s3489_s3, 16 }
  0x3c   : > { %p2289_p7 = scmp.ne.s32.totalorder %s3489_s3, %s2288_s26  ;;  %p2295_p1 = scmp.lt.u32.totalorder %s2288_s26, %s3489_s3 }
  0x3e   : > { %p2291_p9 = pnand %p2289_p7, %p2926_p8 }
  0x40   : > { %p2292_p4 = pneg %p2291_p9 }
  0x42   : > { %p2297_p3 = pnand %p2295_p1, %p2292_p4 }
  0x44   : > { %2300 = shalt.err (!%p2297_p3)
}
  0x45   : > { %s2301_s22 = scalar_lea.vmem %s2914_s24, 16  ;;  %s2308_s10 = scalar_lea.vmem %s2914_s24, 32 }
  0x46   : > { %p2302_p10 = scmp.ne.s32.totalorder %s2914_s24, %s2301_s22  ;;  %p2309_p13 = scmp.lt.s32.totalorder %s2914_s24, %s2914_s24 }
  0x47   : > { %p2310_p0 = scmp.lt.s32.totalorder %s2308_s10, %s2301_s22 }
  0x48   : > { %p2304_p11 = pnand %p2302_p10, %p2926_p8 }
  0x49   : > { %p2311_p2 = por %p2310_p0, %p2309_p13 }
  0x4a   : > { %p2305_p12 = pneg %p2304_p11 }
  0x4c   : > { %p2312_p5 = pnand %p2311_p2, %p2305_p12 }
  0x4e   : > { %2315 = shalt.err (!%p2312_p5)
}
  0x4f   : > { %1969 = dma.hbm_to_vmem [thread:$0]  (!%p2910_p6), %s3489_s3, 16, %s2914_s24, [#allocation12]  }
  0x50   : > { %s3490_s5 = sld [smem:[#allocation35_spill]] }
  0x56   : > { %s2316_s23 = scalar_lea.hbm %s3490_s5, 16 }
  0x57   : > { %p2317_p7 = scmp.ne.s32.totalorder %s3490_s5, %s2316_s23  ;;  %p2323_p1 = scmp.lt.u32.totalorder %s2316_s23, %s3490_s5 }
  0x59   : > { %p2319_p9 = pnand %p2317_p7, %p2926_p8 }
  0x5b   : > { %p2320_p4 = pneg %p2319_p9 }
  0x5d   : > { %p2325_p3 = pnand %p2323_p1, %p2320_p4 }
  0x5f   : > { %2328 = shalt.err (!%p2325_p3)
}
  0x60   : > { %s2329_s24 = scalar_lea.vmem %s2916_s27, 16  ;;  %s2336_s10 = scalar_lea.vmem %s2916_s27, 32 }
  0x61   : > { %p2330_p10 = scmp.ne.s32.totalorder %s2916_s27, %s2329_s24  ;;  %p2337_p13 = scmp.lt.s32.totalorder %s2916_s27, %s2916_s27 }
  0x62   : > { %p2338_p0 = scmp.lt.s32.totalorder %s2336_s10, %s2329_s24 }
  0x63   : > { %p2332_p11 = pnand %p2330_p10, %p2926_p8 }
  0x64   : > { %p2339_p2 = por %p2338_p0, %p2337_p13 }
  0x65   : > { %p2333_p12 = pneg %p2332_p11 }
  0x67   : > { %p2340_p5 = pnand %p2339_p2, %p2333_p12 }
  0x69   : > { %2343 = shalt.err (!%p2340_p5)
}
  0x6a   : > { %1975 = dma.hbm_to_vmem [thread:$0]  (!%p2910_p6), %s3490_s5, 16, %s2916_s27, [#allocation15]  }
  0x6b   : > { %s2783_s12 = smov [#allocation17]   ;;  %s2784_s23 = smov [#allocation13]  }
  0x6c   : > { %s372_s30 = sshll.u32 %s2783_s12, 4  ;;  %s334_s26 = sshll.u32 %s2784_s23, 4  ;;  %s373_s30 = int_to_ptr.vmem [resolvable:$true] %s372_s30  ;;  %s335_s26 = int_to_ptr.vmem [resolvable:$true] %s334_s26 }
  0x6d   : > { %s3491_s7 = sld [smem:[#allocation37_spill]] }
  0x73   : > { %s2344_s22 = scalar_lea.hbm %s3491_s7, 16 }
  0x74   : > { %p2345_p7 = scmp.ne.s32.totalorder %s3491_s7, %s2344_s22  ;;  %p2351_p1 = scmp.lt.u32.totalorder %s2344_s22, %s3491_s7 }
  0x76   : > { %p2347_p9 = pnand %p2345_p7, %p2926_p8 }
  0x78   : > { %p2348_p4 = pneg %p2347_p9 }
  0x7a   : > { %p2353_p3 = pnand %p2351_p1, %p2348_p4 }
  0x7c   : > { %2356 = shalt.err (!%p2353_p3)
}
  0x7d   : > { %s2357_s27 = scalar_lea.vmem %s373_s30, 16  ;;  %s2364_s11 = scalar_lea.vmem %s373_s30, 32 }
  0x7e   : > { %p2358_p10 = scmp.ne.s32.totalorder %s373_s30, %s2357_s27  ;;  %p2365_p13 = scmp.lt.s32.totalorder %s373_s30, %s373_s30 }
  0x7f   : > { %p2366_p0 = scmp.lt.s32.totalorder %s2364_s11, %s2357_s27 }
  0x80   : > { %p2360_p11 = pnand %p2358_p10, %p2926_p8 }
  0x81   : > { %p2367_p2 = por %p2366_p0, %p2365_p13 }
  0x82   : > { %p2361_p12 = pneg %p2360_p11 }
  0x84   : > { %p2368_p5 = pnand %p2367_p2, %p2361_p12 }
  0x86   : > { %2371 = shalt.err (!%p2368_p5)
}
  0x87   : > { %1981 = dma.hbm_to_vmem [thread:$0]  (!%p2910_p6), %s3491_s7, 16, %s373_s30, [#allocation18]  }
  0x88   : > { %s3492_s4 = sld [smem:[#allocation34_spill]] }
  0x8e   : > { %s2372_s29 = scalar_lea.hbm %s3492_s4, 256 }
  0x8f   : > { %p2373_p7 = scmp.ne.s32.totalorder %s3492_s4, %s2372_s29  ;;  %p2379_p1 = scmp.lt.u32.totalorder %s2372_s29, %s3492_s4 }
  0x91   : > { %p2375_p9 = pnand %p2373_p7, %p2926_p8 }
  0x93   : > { %p2376_p4 = pneg %p2375_p9 }
  0x95   : > { %p2381_p3 = pnand %p2379_p1, %p2376_p4 }
  0x97   : > { %2384 = shalt.err (!%p2381_p3)
}
  0x98   : > { %s2385_s27 = scalar_lea.vmem %s335_s26, 256  ;;  %p2393_p13 = scmp.lt.s32.totalorder %s335_s26, %s335_s26 }
  0x99   : > { %p2386_p10 = scmp.ne.s32.totalorder %s335_s26, %s2385_s27  ;;  %p2394_p0 = scmp.lt.s32.totalorder %s2385_s27, %s2385_s27 }
  0x9b   : > { %p2388_p11 = pnand %p2386_p10, %p2926_p8  ;;  %p2395_p2 = por %p2394_p0, %p2393_p13 }
  0x9d   : > { %p2389_p12 = pneg %p2388_p11 }
  0x9f   : > { %p2396_p5 = pnand %p2395_p2, %p2389_p12 }
  0xa1   : > { %2399 = shalt.err (!%p2396_p5)
}
  0xa2   : > { %s2785_s30 = smov 64   ;;  %s2786_s11 = smov 4  }
  0xa3   : > { %1972 = dma.hbm_to_vmem [thread:$0]  (!%p2910_p6), %s3492_s4, 256, %s335_s26, [#allocation12], %s2785_s30, %s2785_s30, %s2786_s11  }
  0xa4   : > { %s2787_s2 = smov [#allocation16]   ;;  %s2788_s29 = smov [#allocation19]  }
  0xa5   : > { %s358_s28 = sshll.u32 %s2787_s2, 4  ;;  %s382_s22 = sshll.u32 %s2788_s29, 4  ;;  %s359_s28 = int_to_ptr.vmem [resolvable:$true] %s358_s28  ;;  %s383_s22 = int_to_ptr.vmem [resolvable:$true] %s382_s22 }
  0xa6   : > { %s3493_s6 = sld [smem:[#allocation36_spill]] }
  0xac   : > { %s2400_s16 = scalar_lea.hbm %s3493_s6, 256 }
  0xad   : > { %p2401_p7 = scmp.ne.s32.totalorder %s3493_s6, %s2400_s16  ;;  %p2407_p1 = scmp.lt.u32.totalorder %s2400_s16, %s3493_s6 }
  0xaf   : > { %p2403_p9 = pnand %p2401_p7, %p2926_p8 }
  0xb1   : > { %p2404_p4 = pneg %p2403_p9 }
  0xb3   : > { %p2409_p3 = pnand %p2407_p1, %p2404_p4 }
  0xb5   : > { %2412 = shalt.err (!%p2409_p3)
}
  0xb6   : > { %s2413_s26 = scalar_lea.vmem %s359_s28, 256  ;;  %p2421_p13 = scmp.lt.s32.totalorder %s359_s28, %s359_s28 }
  0xb7   : > { %p2414_p10 = scmp.ne.s32.totalorder %s359_s28, %s2413_s26  ;;  %p2422_p0 = scmp.lt.s32.totalorder %s2413_s26, %s2413_s26 }
  0xb9   : > { %p2416_p11 = pnand %p2414_p10, %p2926_p8  ;;  %p2423_p2 = por %p2422_p0, %p2421_p13 }
  0xbb   : > { %p2417_p12 = pneg %p2416_p11 }
  0xbd   : > { %p2424_p5 = pnand %p2423_p2, %p2417_p12 }
  0xbf   : > { %2427 = shalt.err (!%p2424_p5)
}
  0xc0   : > { %1978 = dma.hbm_to_vmem [thread:$0]  (!%p2910_p6), %s3493_s6, 256, %s359_s28, [#allocation15], %s2785_s30, %s2785_s30, %s2786_s11  }
  0xc1   : > { %s3494_s8 = sld [smem:[#allocation38_spill]] }
  0xc7   : > { %s2428_s23 = scalar_lea.hbm %s3494_s8, 256 }
  0xc8   : > { %p2429_p7 = scmp.ne.s32.totalorder %s3494_s8, %s2428_s23  ;;  %p2435_p1 = scmp.lt.u32.totalorder %s2428_s23, %s3494_s8 }
  0xca   : > { %p2431_p9 = pnand %p2429_p7, %p2926_p8 }
  0xcc   : > { %p2432_p4 = pneg %p2431_p9 }
  0xce   : > { %p2437_p3 = pnand %p2435_p1, %p2432_p4 }
  0xd0   : > { %2440 = shalt.err (!%p2437_p3)
}
  0xd1   : > { %s2441_s16 = scalar_lea.vmem %s383_s22, 256  ;;  %p2449_p13 = scmp.lt.s32.totalorder %s383_s22, %s383_s22 }
  0xd2   : > { %p2442_p10 = scmp.ne.s32.totalorder %s383_s22, %s2441_s16  ;;  %p2450_p0 = scmp.lt.s32.totalorder %s2441_s16, %s2441_s16 }
  0xd4   : > { %p2444_p11 = pnand %p2442_p10, %p2926_p8  ;;  %p2451_p2 = por %p2450_p0, %p2449_p13 }
  0xd6   : > { %p2445_p12 = pneg %p2444_p11 }
  0xd8   : > { %p2452_p5 = pnand %p2451_p2, %p2445_p12 }
  0xda   : > { %2455 = shalt.err (!%p2452_p5)
}
  0xdb   : > { %1984 = dma.hbm_to_vmem [thread:$0]  (!%p2910_p6), %s3494_s8, 256, %s383_s22, [#allocation18], %s2785_s30, %s2785_s30, %s2786_s11  }
  0xdc   : > { %s2789_s26 = smov [#allocation20]   ;;  %s2456_s12 = scalar_lea.hbm %s3469_s9, 16 }
  0xdd   : > { %s396_s3 = sshll.u32 %s2789_s26, 4  ;;  %p2457_p7 = scmp.ne.s32.totalorder %s3469_s9, %s2456_s12  ;;  %s397_s3 = int_to_ptr.vmem [resolvable:$true] %s396_s3 }
  0xde   : > { %p2463_p1 = scmp.lt.u32.totalorder %s2456_s12, %s3469_s9 }
  0xdf   : > { %p2459_p9 = pnand %p2457_p7, %p2926_p8 }
  0xe1   : > { %p2460_p4 = pneg %p2459_p9 }
  0xe3   : > { %p2465_p3 = pnand %p2463_p1, %p2460_p4 }
  0xe5   : > { %2468 = shalt.err (!%p2465_p3)
}
  0xe6   : > { %s2469_s30 = scalar_lea.vmem %s397_s3, 16  ;;  %s2476_s11 = scalar_lea.vmem %s397_s3, 32 }
  0xe7   : > { %p2470_p10 = scmp.ne.s32.totalorder %s397_s3, %s2469_s30  ;;  %p2477_p13 = scmp.lt.s32.totalorder %s397_s3, %s397_s3 }
  0xe8   : > { %p2478_p0 = scmp.lt.s32.totalorder %s2476_s11, %s2469_s30 }
  0xe9   : > { %p2472_p11 = pnand %p2470_p10, %p2926_p8 }
  0xea   : > { %p2479_p2 = por %p2478_p0, %p2477_p13 }
  0xeb   : > { %p2473_p12 = pneg %p2472_p11 }
  0xed   : > { %p2480_p5 = pnand %p2479_p2, %p2473_p12 }
  0xef   : > { %2483 = shalt.err (!%p2480_p5)
}
  0xf0   : > { %1987 = dma.hbm_to_vmem [thread:$0]  (!%p2910_p6), %s3469_s9, 16, %s397_s3, [#allocation21]  }
  0xf1   : > { %s1743_s21 = sadd.s32 4294967294, %s2714_s18   ;;  %s45_s16 = sadd.s32 1, %s2710_s17 }
  0xf2   : > { %p47_p8 = scmp.ge.s32.totalorder %s45_s16, 2  ;;  %s54_s25 = sadd.s32 1, %s2702_s15 }
  0xf3   : > { %p61_p7 = scmp.ne.s32.totalorder %s2702_s15, %s2698_s14  ;;  %p62_p9 = scmp.eq.s32.totalorder %s2714_s18, 0 }
  0xf4   : > { %s3537_s16 = smov (%p47_p8, %s45_s16), 0  ;;  %p67_p1 = scmp.ne.s32.totalorder %s2698_s14, %s2694_s13 }
  0xf5   : > { %p3097_p4 = por %p62_p9, %p61_p7  ;;  %s49_s27 = ssub.s32 %s2710_s17, %s3537_s16 }
  0xf6   : > { %p287_p6 = scmp.eq.s32.totalorder %s2896_s19, 1  ;;  %p52_p3 = scmp.eq.s32.totalorder %s49_s27, 0 }
  0xf7   : > { %p3496_p10 = scmp.eq.s32.totalorder %s2896_s19, 0  ;;  %p293_p13 = scmp.eq.s32.totalorder %s1743_s21, 1 }
  0xf8   : > { %p3112_p12 = por %p287_p6, %p61_p7  ;;  %p2007_p2 = scmp.lt.s32.totalorder %s2714_s18, 2 }
  0xf9   : > { %p3108_p11 = por %p3496_p10, %p67_p1  ;;  %p3119_p0 = por %p293_p13, %p67_p1 }
  0xfa   : > { %s3498_s3 = scalar_select %p3112_p12, 1, 0 }
  0xfb   : > { %s3497_s26 = scalar_select %p3108_p11, 1, 0 }
  0xfc   : > { %s3117_s5 = scalar_select %p52_p3, %s2702_s15, %s54_s25  }
  0xfd   : > { %s3499_s7 = scalar_select %p3119_p0, 1, 0 }
  0xfe   : > { %s407_s12 = sand.u32 1, %s2702_s15   ;;  %s1755_s23 = sshll.u32 %s2710_s17, 7 }
  0xff   : > { %s3126_s2 = sshll.u32 %s407_s12, 3  ;;  %s3131_s30 = scalar_lea.hbm %s3460_s0, %s1755_s23 }
 0x100   : > { %s411_s11 = scalar_lea.vmem [#allocation5], %s3126_s2  ;;  %p3136_p5 = pnand %p2007_p2, %p3097_p4 }
 0x101   : > { %s419_s22 = sshll.u32 %s411_s11, 4  ;;  %s3145_s27 = scalar_lea.hbm %s3461_s1, %s1755_s23  ;;  %s3140_s22 = int_to_ptr.vmem [resolvable:$true] %s419_s22 }
 0x102   : > { %s408_s29 = scalar_lea.sflag [#allocation6], %s407_s12  ;;  %s2484_s24 = scalar_lea.hbm %s3131_s30, 128 }
 0x103   : > { %p2485_p8 = scmp.ne.s32.totalorder %s3131_s30, %s2484_s24  ;;  %p2486_p7 = pneg %p3136_p5 }
 0x104   : > { %s2489_s4 = scalar_lea.hbm %s3460_s0, 256  ;;  %p2490_p1 = scmp.lt.u32.totalorder %s3131_s30, %s3460_s0 }
 0x105   : > { %p2487_p9 = pnand %p2486_p7, %p2485_p8  ;;  %p2491_p6 = scmp.lt.u32.totalorder %s2489_s4, %s2484_s24 }
 0x106   : > { %p2493_p10 = scmp.lt.u32.totalorder %s2484_s24, %s3131_s30 }
 0x107   : > { %p2488_p4 = pneg %p2487_p9  ;;  %p2492_p3 = por %p2491_p6, %p2490_p1 }
 0x109   : > { %p2494_p13 = por %p2493_p10, %p2492_p3 }
 0x10b   : > { %p2495_p2 = pnand %p2494_p13, %p2488_p4 }
 0x10d   : > { %2498 = shalt.err (!%p2495_p2)
}
 0x10e   : > { %s2499_s12 = scalar_lea.vmem %s3140_s22, 128  ;;  %s2790_s23 = smov [#allocation5]  }
 0x10f   : > { %p2500_p8 = scmp.ne.s32.totalorder %s3140_s22, %s2499_s12  ;;  %s2504_s21 = sshll.u32 %s2790_s23, 4  ;;  %s2505_s21 = int_to_ptr.vmem [resolvable:$false] %s2504_s21 }
 0x110   : > { %s2506_s6 = scalar_lea.vmem %s2505_s21, 256  ;;  %p2507_p12 = scmp.lt.s32.totalorder %s3140_s22, %s2505_s21 }
 0x111   : > { %p2502_p9 = pnand %p2500_p8, %p2486_p7  ;;  %p2508_p1 = scmp.lt.s32.totalorder %s2506_s6, %s2499_s12 }
 0x113   : > { %p2503_p0 = pneg %p2502_p9  ;;  %p2509_p6 = por %p2508_p1, %p2507_p12 }
 0x115   : > { %p2510_p3 = pnand %p2509_p6, %p2503_p0 }
 0x117   : > { %2513 = shalt.err (!%p2510_p3)
}
 0x118   : > { %1991 = dma.hbm_to_vmem [thread:$0]  (!%p3136_p5), %s3131_s30, 128, %s3140_s22, %s408_s29  }
 0x119   : > { %s426_s4 = sand.u32 1, %s2714_s18   ;;  %s430_s8 = scalar_lea.vmem [#allocation8], %s3126_s2 }
 0x11a   : > { %s437_s25 = sshll.u32 %s430_s8, 4  ;;  %s427_s24 = scalar_lea.sflag [#allocation9], %s426_s4  ;;  %s438_s25 = int_to_ptr.vmem [resolvable:$true] %s437_s25 }
 0x11b   : > { %s2514_s28 = scalar_lea.hbm %s3145_s27, 128  ;;  %s2519_s23 = scalar_lea.hbm %s3461_s1, 256 }
 0x11c   : > { %p2515_p12 = scmp.ne.s32.totalorder %s3145_s27, %s2514_s28  ;;  %p2520_p10 = scmp.lt.u32.totalorder %s3145_s27, %s3461_s1 }
 0x11d   : > { %p2521_p13 = scmp.lt.u32.totalorder %s2519_s23, %s2514_s28  ;;  %p2523_p8 = scmp.lt.u32.totalorder %s2514_s28, %s3145_s27 }
 0x11e   : > { %p2517_p0 = pnand %p2515_p12, %p2486_p7 }
 0x11f   : > { %p2522_p2 = por %p2521_p13, %p2520_p10 }
 0x120   : > { %p2518_p4 = pneg %p2517_p0 }
 0x121   : > { %p2524_p9 = por %p2523_p8, %p2522_p2 }
 0x123   : > { %p2525_p1 = pnand %p2524_p9, %p2518_p4 }
 0x125   : > { %2528 = shalt.err (!%p2525_p1)
}
 0x126   : > { %s2529_s2 = scalar_lea.vmem %s438_s25, 128  ;;  %s2791_s30 = smov [#allocation8]  }
 0x127   : > { %p2530_p6 = scmp.ne.s32.totalorder %s438_s25, %s2529_s2  ;;  %s2534_s22 = sshll.u32 %s2791_s30, 4  ;;  %s2535_s22 = int_to_ptr.vmem [resolvable:$false] %s2534_s22 }
 0x128   : > { %s2536_s29 = scalar_lea.vmem %s2535_s22, 256  ;;  %p2537_p0 = scmp.lt.s32.totalorder %s438_s25, %s2535_s22 }
 0x129   : > { %p2532_p3 = pnand %p2530_p6, %p2486_p7  ;;  %p2538_p11 = scmp.lt.s32.totalorder %s2536_s29, %s2529_s2 }
 0x12b   : > { %p2533_p12 = pneg %p2532_p3  ;;  %p2539_p10 = por %p2538_p11, %p2537_p0 }
 0x12d   : > { %p2540_p13 = pnand %p2539_p10, %p2533_p12 }
 0x12f   : > { %2543 = shalt.err (!%p2540_p13)
}
 0x130   : > { %1994 = dma.hbm_to_vmem [thread:$0]  (!%p3136_p5), %s3145_s27, 128, %s438_s25, %s427_s24  }
 0x131   : > { %p3501_p4 = scmp.ne.s32.totalorder %s3485_s20, 0 }
 0x132   : > { %s3196_s4 = sand.u32 (!%p3501_p4), 1, %s2698_s14   ;;  %p3502_p11 = scmp.ne.s32.totalorder (!%p3501_p4), %s3497_s26, 0 }
 0x133   : > { %446 = sbr.rel (%p3501_p4) target bundleno = 4230 (0x1086), region = 60  ;;  %s3199_s8 = sshll.u32 (!%p3501_p4), %s3196_s4, 3 }
 0x134   : > { %s449_s28 = scalar_lea.sflag (!%p3501_p4), [#allocation6], %s3196_s4  ;;  %s452_s11 = scalar_lea.vmem (!%p3501_p4), [#allocation5], %s3199_s8 }
 0x13a   : > { %2661 = dma.done.wait (%p3502_p11), %s449_s28, 128  }
 0x13b   : > { %2663 = vsyncadd (%p3502_p11), %s449_s28, 4294967168  ;;  %s457_s20 = sand.u32 1, %s2896_s19   ;;  %s461_s27 = scalar_lea.vmem [#allocation8], %s3199_s8 }
 0x13c   : > { %s458_s10 = scalar_lea.sflag [#allocation9], %s457_s20 }
 0x13d   : > { %2665 = dma.done.wait (%p3502_p11), %s458_s10, 128  }
 0x13e   : > { %2667 = vsyncadd (%p3502_p11), %s458_s10, 4294967168  ;;  %p3503_p5 = scmp.eq.s32.totalorder %s2896_s19, 0 }
 0x140   : > { %2669 = dma.done.wait (%p3503_p5), [#allocation9], 16   ;;  %p3504_p7 = pmov %p3503_p5 }
 0x141   : > { %p3505_p2 = pmov %p3503_p5 }
 0x142   : > { %2671 = vsyncadd (%p3504_p7), [#allocation9], 4294967280 }
 0x143   : > { %2673 = dma.done.wait (%p3505_p2), [#allocation12], 272   ;;  %p3506_p8 = pmov %p3505_p2 }
 0x144   : > { %p3507_p9 = pmov %p3505_p2 }
 0x145   : > { %2675 = vsyncadd (%p3506_p8), [#allocation12], 4294967024 }
 0x146   : > { %2677 = dma.done.wait (%p3507_p9), [#allocation15], 272   ;;  %p3508_p1 = pmov %p3505_p2 }
 0x148   : > { %2679 = vsyncadd (%p3508_p1), [#allocation15], 4294967024  ;;  %p3509_p6 = pmov %p3508_p1 }
 0x149   : > { %p3510_p3 = pmov %p3508_p1 }
 0x14a   : > { %2681 = dma.done.wait (%p3509_p6), [#allocation18], 272  }
 0x14b   : > { %2683 = vsyncadd (%p3510_p3), [#allocation18], 4294967024  ;;  %p3511_p12 = pmov %p3508_p1 }
 0x14c   : > { %p3512_p0 = pmov %p3508_p1 }
 0x14d   : > { %2685 = dma.done.wait (%p3511_p12), [#allocation21], 16  }
 0x14e   : > { %2687 = vsyncadd (%p3512_p0), [#allocation21], 4294967280  ;;  %vm543_vm0 = vcmask 261120   ;;  %v540_v0 = vld [vmem:[%s461_s27] sm:$0xff]  ;;  %v693_v1 = vld [vmem:[%s452_s11] sm:$0xff]  ;;  %s2792_s26 = smov 96   ;;  %v795_v40 = vlaneseq }
 0x14f   : > { %v544_v2 = vsel %vm543_vm0, %v540_v0, 0.0  ;;  %v697_v3 = vsel %vm543_vm0, %v693_v1, 0.0  ;;  %v2220_v4 = vld [vmem:[#allocation16] sm:$0xff]   ;;  %v2221_v15 = vld [vmem:[#allocation16 + $0x8] sm:$0xff]   ;;  %v2793_v16 = vmov 0.0   ;;  %vm2794_vm1 = vmmov 0  }
 0x150   : > { %545 = vadd.xlane.f32.xlu0 %v544_v2  ;;  %1845 = vmatprep.subr.bf16.mxu0 %v2793_v16  ;;  %v1772_v18 = vld [vmem:[#allocation17] ss:$0 sm:$0xff]  ;;  %v1770_v27 = vld [vmem:[#allocation10] ss:$0 sm:$0xff]  ;;  %v1771_v29 = vld [vmem:[#allocation11] ss:$0 sm:$0xff] }
 0x151   : > { %1853 = vmatprep.subr.bf16.mxu1 %v2793_v16  ;;  %1846 = vmatpush3.bf16.msra.mxu0 %v2220_v4  ;;  %v2222_v34 = vld [vmem:[#allocation13] sm:$0xff]   ;;  %v2223_v37 = vld [vmem:[#allocation13 + $0x8] sm:$0xff]   ;;  %v3256_v41 = vshrl.u32 %v795_v40, 7  ;;  %v3258_v42 = vand.u32 127, %v795_v40  ;;  %vm640_vm2 = vcmask 257024   ;;  %s534_s19 = scalar_lea.vmem [#allocation22], %s3199_s8 }
 0x152   : > { %1847 = vmatprep.subr.bf16.mxu0 %v2793_v16  ;;  %1849 = vmatprep.mubr.msk.bf16.mxu0 %vm2794_vm1, %v2793_v16  ;;  %v1779_v56 = vld [vmem:[#allocation14] ss:$0 sm:$0xff]  ;;  %v3263_v63 = vmov 0.0   ;;  %s3269_s25 = smov 0  }
 0x153   : > { %1857 = vmatprep.mubr.msk.bf16.mxu1 %vm2794_vm1, %v2793_v16 }
 0x154   : > { %698 = vadd.xlane.f32.xlu0 %v697_v3 }
 0x155   : > { %1848 = vmatpush3.bf16.msra.mxu0 %v2221_v15 }
 0x156   : > { %1861 = vmatprep.subr.bf16.mxu0 %v2793_v16 }
 0x16a   : > { %642 = vrot.lane.b32.xlu0 %v2220_v4, %s2792_s26 }
 0x1dd   : > { %v546_v5 = vpop.xlane.xlu0 %545 }
 0x1de   : > { %v548_v6 = vmul.f32 0.03125, %v546_v5 }
 0x1e0   : > { %v549_v7 = vsub.f32 %v540_v0, %v548_v6  ;;  %v3265_v0 = vmov 0.0  }
 0x1e1   : > { %v699_v8 = vpop.xlane.xlu0 %698 }
 0x1e2   : > { %v701_v9 = vmul.f32 0.03125, %v699_v8  ;;  %v550_v10 = vmul.f32 %v549_v7, %v549_v7 }
 0x1e4   : > { %v702_v11 = vsub.f32 %v693_v1, %v701_v9  ;;  %v551_v12 = vsel %vm543_vm0, %v550_v10, 0.0  ;;  %v3267_v1 = vmov -1e+30  }
 0x1e5   : > { %552 = vadd.xlane.f32.xlu1 %v551_v12  ;;  %v643_v17 = vpop.permute.xlu0 %642 }
 0x1e6   : > { %v703_v13 = vmul.f32 %v702_v11, %v702_v11  ;;  %1854 = vmatpush3.bf16.msra.mxu1 %v643_v17 }
 0x1e7   : > { %1855 = vmatprep.subr.bf16.mxu1 %v2793_v16 }
 0x1e8   : > { %v704_v14 = vsel %vm543_vm0, %v703_v13, 0.0 }
 0x1e9   : > { %705 = vadd.xlane.f32.xlu1 %v704_v14 }
 0x1fa   : > { %644 = vrot.lane.b32.xlu1 %v2221_v15, %s2792_s26 }
 0x1fe   : > { %648 = vrot.lane.b32.xlu1 %v1772_v18, %s2792_s26 }
 0x272   : > { %v553_v19 = vpop.xlane.xlu1 %552 }
 0x273   : > { %v554_v20 = vmul.f32 0.03125, %v553_v19 }
 0x275   : > { %v555_v21 = vadd.f32 1e-05, %v554_v20 }
 0x276   : > { %v706_v22 = vpop.xlane.xlu1 %705 }
 0x277   : > { %2224 = vrsqrt.f32 %v555_v21  ;;  %v707_v23 = vmul.f32 0.03125, %v706_v22 }
 0x279   : > { %v708_v24 = vadd.f32 1e-05, %v707_v23 }
 0x27a   : > { %v645_v25 = vpop.permute.xlu1 %644 }
 0x27b   : > { %2226 = vrsqrt.f32 %v708_v24  ;;  %1856 = vmatpush3.bf16.msra.mxu1 %v645_v25 }
 0x27e   : > { %v649_v43 = vpop.permute.xlu1 %648 }
 0x281   : > { %v2225_v26 = vpop.eup %2224 }
 0x282   : > { %v557_v28 = vmul.f32 %v2225_v26, %v549_v7 }
 0x284   : > { %v564_v30 = vmul.f32 %v1770_v27, %v557_v28 }
 0x285   : > { %v2227_v31 = vpop.eup %2226 }
 0x286   : > { %v710_v32 = vmul.f32 %v2227_v31, %v702_v11  ;;  %v571_v33 = vadd.f32 %v1771_v29, %v564_v30 }
 0x288   : > { %v572_v35 = vpack.c.bf16 %v571_v33, %v571_v33  ;;  %v717_v36 = vmul.f32 %v1770_v27, %v710_v32 }
 0x28a   : > { %1850 = vmatmul.mubr.msk.bf16.vlgmr.msra.gmra.mrb[0].mxu0 %vm543_vm0, %v572_v35  ;;  %1858 = vmatmul.mubr.msk.bf16.vlgmr.msra.gmra.mrb[0].mxu1 %vm543_vm0, %v572_v35  ;;  %v3251_v38 = vadd.f32 %v1771_v29, %v717_v36 }
 0x28b   : > { %1862 = vmatpush3.bf16.msra.mxu0 %v2222_v34  ;;  %1865 = vmatprep.mubr.msk.bf16.mxu0 %vm2794_vm1, %v2793_v16 }
 0x28c   : > { %1863 = vmatprep.subr.bf16.mxu0 %v2793_v16  ;;  %v725_v39 = vpack.c.bf16 %v3251_v38, %v3251_v38 }
 0x28f   : > { %1864 = vmatpush3.bf16.msra.mxu0 %v2223_v37 }
 0x292   : > { %1866 = vmatmul.mubr.msk.bf16.vlgmr.msra.gmra.mrb[4].mxu0 %vm543_vm0, %v725_v39 }
 0x35d   : > { %v633_v44 = vpop.f32.mrb[0].mxu0  ;;  %v685_v45 = vpop.f32.mrb[0].mxu1 }
 0x35e   : > { %v634_v46 = vadd.f32 %v1772_v18, %v633_v44  ;;  %v686_v47 = vadd.f32 %v685_v45, %v649_v43  ;;  %v1851_v48 = vpop.f32.mrb[1].mxu0  ;;  %v1859_v49 = vpop.f32.mrb[1].mxu1 }
 0x35f   : > { %v636_v50 = vpop.f32.mrb[2].mxu0  ;;  %v688_v51 = vpop.f32.mrb[2].mxu1 }
 0x360   : > { %v639_v52 = vpack.c.bf16 %v634_v46, %v634_v46  ;;  %v691_v53 = vpack.c.bf16 %v686_v47, %v686_v47  ;;  %v1852_v54 = vpop.f32.mrb[3].mxu0  ;;  %v1860_v55 = vpop.f32.mrb[3].mxu1 }
 0x362   : > { %641 = vst.msk [vmem:[#allocation2] sm:$0xf] %vm640_vm2, %v639_v52  ;;  %692 = vst.msk [vmem:[#allocation3] sm:$0xf] %vm640_vm2, %v691_v53 }
 0x365   : > { %v786_v57 = vpop.f32.mrb[4].mxu0 }
 0x366   : > { %v787_v58 = vadd.f32 %v1779_v56, %v786_v57  ;;  %v1867_v59 = vpop.f32.mrb[5].mxu0 }
 0x367   : > { %v789_v60 = vpop.f32.mrb[6].mxu0 }
 0x368   : > { %v3260_v61 = vpack.c.bf16 %v787_v58, %v787_v58  ;;  %v1868_v62 = vpop.f32.mrb[7].mxu0 }
 0x369 LB: >> { %v2795_v2 = vmov 0.0   ;;  %vm2796_vm3 = vmmov 0   ;;  %s1783_s24 = sshll.u32 %s2730_s25, 3  ;;  %vm819_vm4 = vcmask 64512   ;;  %vm891_vm6 = vcmask 1043456   ;;  %s804_s25 = sadd.s32 1, %s2730_s25   ;;  %s2730_s25 = sphi %s3269_s25, %s804_s25   ;;  %v2726_v1 = vphi %v3267_v1, %v3515_v1   ;;  %v2722_v0 = vphi %v3265_v0, %v3514_v0   ;;  %v2718_v63 = vphi %v3263_v63, %v3513_v63  }
 0x36a   : >> { %1869 = vmatprep.subr.bf16.mxu0 %v2795_v2  ;;  %1871 = vmatprep.mubr.msk.bf16.mxu0 %vm2796_vm3, %v2795_v2  ;;  %s811_s12 = sshra.s32 %s1783_s24, 3  ;;  %v867_v5 = vstv %s1783_s24  ;;  %p803_p10 = scmp.ge.s32.totalorder %s804_s25, 1 }
 0x36b   : >> { %1875 = vmatprep.subr.bf16.mxu1 %v2795_v2  ;;  %1877 = vmatprep.mubr.msk.bf16.mxu1 %vm2796_vm3, %v2795_v2  ;;  %s1784_s23 = sshll.u32 %s811_s12, 2  ;;  %v868_v6 = vadd.s32 %v867_v5, %v3258_v42  ;;  %v3297_v39 = vmov (%p803_p10), 0.0   ;;  %v3299_v40 = vmov (%p803_p10), 0.0   ;;  %v3301_v43 = vmov (%p803_p10), -1e+30   ;;  %s3303_s2 = smov (%p803_p10), 0  }
 0x36c   : >> { %s814_s21 = scalar_lea.vmem [#allocation2], %s1784_s23  ;;  %s817_s6 = scalar_lea.vmem [#allocation3], %s1784_s23 }
 0x36d   : >> { %v815_v3 = vld [vmem:[%s814_s21] sm:$0xf]  ;;  %vm869_vm5 = vcmp.le.s32.totalorder %v868_v6, %v3256_v41 }
 0x36e   : >> { %v824_v4 = vsel %vm819_vm4, %v815_v3, 0  ;;  %v818_v14 = vld [vmem:[%s817_s6] sm:$0xf] }
 0x36f   : >> { %1870 = vmatpush3.bf16.xpose.msra.mxu0 %v824_v4  ;;  %v893_v15 = vsel %vm891_vm6, %v818_v14, 0 }
 0x370   : >> { %1876 = vmatpush3.bf16.msra.mxu1 %v893_v15 }
 0x376   : >> { %1872 = vmatmul.mubr.msk.bf16.vlgmr.msra.gmra.mrb[0].mxu0 %vm819_vm4, %v3260_v61 }
 0x449   : >> { %v860_v7 = vpop.f32.mrb[0].mxu0 }
 0x44a   : >> { %v866_v8 = vmul.f32 0.35355338, %v860_v7  ;;  %v1873_v9 = vpop.f32.mrb[1].mxu0 }
 0x44b   : >> { %v863_v10 = vpop.f32.mrb[2].mxu0 }
 0x44c   : >> { %v1874_v11 = vpop.f32.mrb[3].mxu0  ;;  %v870_v12 = vsel %vm869_vm5, %v866_v8, -1e+30 }
 0x44d   : >> { %v871_v13 = vsel %vm819_vm4, %v870_v12, -inf }
 0x44e   : >> { %872 = vmax.xlane.f32.xlu0 %v871_v13 }
 0x4db   : >> { %v873_v17 = vpop.xlane.xlu0 %872 }
 0x4dc   : >> { %v874_v18 = vmax.f32 %v2726_v1, %v873_v17  }
 0x4de   : >> { %v875_v19 = vsub.f32 %v2726_v1, %v874_v18  ;;  %v878_v20 = vsub.f32 %v870_v12, %v874_v18  ;;  %v3515_v1 = vmov %v874_v18 }
 0x4e0   : >> { %v879_v21 = vmul.f32 1.442695, %v878_v20  ;;  %v876_v25 = vmul.f32 1.442695, %v875_v19 }
 0x4e2   : >> { %2228 = vpow2.f32 %v879_v21 }
 0x4e3   : >> { %2230 = vpow2.f32 %v876_v25 }
 0x4ec   : >> { %v2229_v22 = vpop.eup %2228 }
 0x4ed   : >> { %v882_v23 = vsel %vm819_vm4, %v2229_v22, 0.0  ;;  %v887_v24 = vpack.c.bf16 %v2229_v22, %v2229_v22  ;;  %v2231_v26 = vpop.eup %2230 }
 0x4ee   : >> { %883 = vadd.xlane.f32.xlu0 %v882_v23  ;;  %v881_v27 = vmul.f32 %v2722_v0, %v2231_v26  ;;  %v886_v30 = vmul.f32 %v2718_v63, %v2231_v26 }
 0x4ef   : >> { %1878 = vmatmul.mubr.msk.bf16.vlgmr.msra.gmra.mrb[0].mxu1 %vm819_vm4, %v887_v24 }
 0x57b   : >> { %v884_v28 = vpop.xlane.xlu0 %883 }
 0x57c   : >> { %v885_v29 = vadd.f32 %v884_v28, %v881_v27  }
 0x57e   : >> { %v3514_v0 = vmov %v885_v29  ;;  %2232 = vrcp.f32 (%p803_p10), %v885_v29 }
 0x588   : > { %v2233_v36 = vpop.eup (%p803_p10), %2232 }
 0x5bf   : > { %806 = sbr.rel (!%p803_p10) target bundleno = 873 (0x369), region = 190 }
 0x5c2   : >> { %v929_v31 = vpop.f32.mrb[0].mxu1 }
 0x5c3   : >> { %v935_v32 = vadd.f32 %v929_v31, %v886_v30   ;;  %v1879_v33 = vpop.f32.mrb[1].mxu1 }
 0x5c4   : >> { %v932_v34 = vpop.f32.mrb[2].mxu1 }
 0x5c5   : >> { %v1880_v35 = vpop.f32.mrb[3].mxu1  ;;  %v3513_v63 = vmov %v935_v32  ;;  %v937_v37 = vmul.f32 (%p803_p10), %v2233_v36, %v935_v32 }
 0x5c7   : > { %939 = vst.msk [vmem:[#allocation4] sm:$0xff] %vm819_vm4, %v937_v37 }
 0x5c8 LB: >> { %v2797_v44 = vmov 0.0   ;;  %vm2798_vm7 = vmmov 0   ;;  %s1788_s30 = sshll.u32 %s2746_s2, 3  ;;  %s2799_s20 = smov 120   ;;  %s2746_s2 = sphi %s3303_s2, %s943_s2   ;;  %v2742_v43 = vphi %v3301_v43, %v3518_v43   ;;  %v2738_v40 = vphi %v3299_v40, %v3517_v40   ;;  %v2734_v39 = vphi %v3297_v39, %v3516_v39  }
 0x5c9   : >> { %1881 = vmatprep.subr.bf16.mxu0 %v2797_v44  ;;  %1883 = vmatprep.mubr.msk.bf16.mxu0 %vm2798_vm7, %v2797_v44  ;;  %s950_s22 = sshra.s32 %s1788_s30, 3  ;;  %v1013_v49 = vstv %s1788_s30  ;;  %s943_s2 = sadd.s32 1, %s2746_s2  }
 0x5ca   : >> { %1887 = vmatprep.subr.bf16.mxu1 %v2797_v44  ;;  %1889 = vmatprep.mubr.msk.bf16.mxu1 %vm2798_vm7, %v2797_v44  ;;  %s1789_s29 = sshll.u32 %s950_s22, 2  ;;  %v1014_v50 = vadd.s32 %v1013_v49, %v3258_v42  ;;  %p942_p13 = scmp.ge.s32.totalorder %s943_s2, 1 }
 0x5cb   : >> { %s953_s28 = scalar_lea.vmem [#allocation2], %s1789_s29  ;;  %s956_s11 = scalar_lea.vmem [#allocation3], %s1789_s29  ;;  %vm1093_vm9 = vcmask (%p942_p13), 130112   ;;  %v3330_v21 = vmov (%p942_p13), 0.0   ;;  %v3332_v22 = vmov (%p942_p13), 0.0  }
 0x5cc   : >> { %v2234_v45 = vld [vmem:[%s953_s28] ss:$0 sps:$4 sm:$0xff]   ;;  %vm1015_vm8 = vcmp.le.s32.totalorder %v1014_v50, %v3256_v41  ;;  %s2800_s10 = smov (%p942_p13), 8   ;;  %v3334_v23 = vmov (%p942_p13), -1e+30   ;;  %s3336_s27 = smov (%p942_p13), 0  }
 0x5cd   : >> { %964 = vrot.lane.b32.xlu0 %v2234_v45, %s2799_s20  ;;  %v2235_v58 = vld [vmem:[%s956_s11] ss:$0 sps:$4 sm:$0xff]  }
 0x5d1   : >> { %959 = vrot.lane.b32.xlu0 %v3260_v61, %s2799_s20 }
 0x63f   : >> { %v965_v46 = vpop.permute.xlu0 %964 }
 0x640   : >> { %v970_v47 = vsel %vm819_vm4, %v965_v46, 0 }
 0x641   : >> { %1882 = vmatpush3.bf16.xpose.msra.mxu0 %v970_v47 }
 0x643   : >> { %v960_v48 = vpop.permute.xlu0 %959 }
 0x648   : >> { %1884 = vmatmul.mubr.msk.bf16.vlgmr.msra.gmra.mrb[0].mxu0 %vm819_vm4, %v960_v48 }
 0x71b   : >> { %v1006_v51 = vpop.f32.mrb[0].mxu0 }
 0x71c   : >> { %v1012_v52 = vmul.f32 0.35355338, %v1006_v51  ;;  %v1885_v53 = vpop.f32.mrb[1].mxu0 }
 0x71d   : >> { %v1009_v54 = vpop.f32.mrb[2].mxu0 }
 0x71e   : >> { %v1886_v55 = vpop.f32.mrb[3].mxu0  ;;  %v1016_v56 = vsel %vm1015_vm8, %v1012_v52, -1e+30 }
 0x71f   : >> { %v1017_v57 = vsel %vm819_vm4, %v1016_v56, -inf }
 0x720   : >> { %1018 = vmax.xlane.f32.xlu1 %v1017_v57 }
 0x731   : >> { %1037 = vrot.lane.b32.xlu1 %v2235_v58, %s2799_s20 }
 0x7ad   : >> { %v1019_v59 = vpop.xlane.xlu1 %1018 }
 0x7ae   : >> { %v1020_v60 = vmax.f32 %v2742_v43, %v1019_v59  }
 0x7b0   : >> { %v1021_v62 = vsub.f32 %v2742_v43, %v1020_v60  ;;  %v1024_v63 = vsub.f32 %v1016_v56, %v1020_v60  ;;  %v3518_v43 = vmov %v1020_v60 }
 0x7b1   : >> { %v1038_v0 = vpop.permute.xlu1 %1037 }
 0x7b2   : >> { %v1025_v1 = vmul.f32 1.442695, %v1024_v63  ;;  %v1044_v2 = vsel %vm891_vm6, %v1038_v0, 0  ;;  %v1022_v6 = vmul.f32 1.442695, %v1021_v62 }
 0x7b3   : >> { %1888 = vmatpush3.bf16.msra.mxu1 %v1044_v2 }
 0x7b4   : >> { %2236 = vpow2.f32 %v1025_v1 }
 0x7b5   : >> { %2238 = vpow2.f32 %v1022_v6 }
 0x7be   : >> { %v2237_v3 = vpop.eup %2236 }
 0x7bf   : >> { %v1028_v4 = vsel %vm819_vm4, %v2237_v3, 0.0  ;;  %v1033_v5 = vpack.c.bf16 %v2237_v3, %v2237_v3  ;;  %v2239_v7 = vpop.eup %2238 }
 0x7c0   : >> { %1029 = vadd.xlane.f32.xlu0 %v1028_v4  ;;  %v1027_v8 = vmul.f32 %v2738_v40, %v2239_v7  ;;  %v1032_v11 = vmul.f32 %v2734_v39, %v2239_v7 }
 0x7c1   : >> { %1890 = vmatmul.mubr.msk.bf16.vlgmr.msra.gmra.mrb[0].mxu1 %vm819_vm4, %v1033_v5 }
 0x84d   : >> { %v1030_v9 = vpop.xlane.xlu0 %1029 }
 0x84e   : >> { %v1031_v10 = vadd.f32 %v1030_v9, %v1027_v8  }
 0x850   : >> { %v3517_v40 = vmov %v1031_v10  ;;  %2240 = vrcp.f32 (%p942_p13), %v1031_v10 }
 0x85a   : > { %v2241_v18 = vpop.eup (%p942_p13), %2240 }
 0x891   : > { %945 = sbr.rel (!%p942_p13) target bundleno = 1480 (0x5c8), region = 201 }
 0x894   : >> { %v1080_v12 = vpop.f32.mrb[0].mxu1 }
 0x895   : >> { %v1086_v13 = vadd.f32 %v1080_v12, %v1032_v11   ;;  %v1891_v14 = vpop.f32.mrb[1].mxu1 }
 0x896   : >> { %v1083_v15 = vpop.f32.mrb[2].mxu1 }
 0x897   : >> { %v1892_v17 = vpop.f32.mrb[3].mxu1  ;;  %v3516_v39 = vmov %v1086_v13  ;;  %v1088_v19 = vmul.f32 (%p942_p13), %v2241_v18, %v1086_v13 }
 0x899   : > { %1090 = vrot.lane.b32.xlu0 %v1088_v19, %s2800_s10 }
 0x90b   : > { %v1091_v20 = vpop.permute.xlu0 %1090 }
 0x90c   : > { %1094 = vst.msk [vmem:[#allocation4] sm:$0xff] %vm1093_vm9, %v1091_v20 }
 0x90d LB: >> { %v2801_v24 = vmov 0.0   ;;  %vm2802_vm10 = vmmov 0   ;;  %s1795_s26 = sshll.u32 %s2762_s27, 3  ;;  %s2803_s21 = smov 112   ;;  %s2762_s27 = sphi %s3336_s27, %s1098_s27   ;;  %v2758_v23 = vphi %v3334_v23, %v3521_v23   ;;  %v2754_v22 = vphi %v3332_v22, %v3520_v22   ;;  %v2750_v21 = vphi %v3330_v21, %v3519_v21  }
 0x90e   : >> { %1893 = vmatprep.subr.bf16.mxu0 %v2801_v24  ;;  %1895 = vmatprep.mubr.msk.bf16.mxu0 %vm2802_vm10, %v2801_v24  ;;  %s1105_s25 = sshra.s32 %s1795_s26, 3  ;;  %v1168_v29 = vstv %s1795_s26  ;;  %s1098_s27 = sadd.s32 1, %s2762_s27  }
 0x90f   : >> { %1899 = vmatprep.subr.bf16.mxu1 %v2801_v24  ;;  %1901 = vmatprep.mubr.msk.bf16.mxu1 %vm2802_vm10, %v2801_v24  ;;  %s1796_s24 = sshll.u32 %s1105_s25, 2  ;;  %v1169_v30 = vadd.s32 %v1168_v29, %v3258_v42  ;;  %p1097_p4 = scmp.ge.s32.totalorder %s1098_s27, 1 }
 0x910   : >> { %s1108_s12 = scalar_lea.vmem [#allocation2], %s1796_s24  ;;  %s1111_s23 = scalar_lea.vmem [#allocation3], %s1796_s24  ;;  %vm1248_vm12 = vcmask (%p1097_p4), 195712   ;;  %v3363_v3 = vmov (%p1097_p4), 0.0   ;;  %v3365_v4 = vmov (%p1097_p4), 0.0  }
 0x911   : >> { %v2242_v25 = vld [vmem:[%s1108_s12] ss:$0 sps:$4 sm:$0xff]   ;;  %vm1170_vm11 = vcmp.le.s32.totalorder %v1169_v30, %v3256_v41  ;;  %s2804_s6 = smov (%p1097_p4), 16   ;;  %v3367_v5 = vmov (%p1097_p4), -1e+30   ;;  %s3369_s2 = smov (%p1097_p4), 0  }
 0x912   : >> { %1119 = vrot.lane.b32.xlu0 %v2242_v25, %s2803_s21  ;;  %v2243_v39 = vld [vmem:[%s1111_s23] ss:$0 sps:$4 sm:$0xff]  }
 0x916   : >> { %1114 = vrot.lane.b32.xlu0 %v3260_v61, %s2803_s21 }
 0x984   : >> { %v1120_v26 = vpop.permute.xlu0 %1119 }
 0x985   : >> { %v1125_v27 = vsel %vm819_vm4, %v1120_v26, 0 }
 0x986   : >> { %1894 = vmatpush3.bf16.xpose.msra.mxu0 %v1125_v27 }
 0x988   : >> { %v1115_v28 = vpop.permute.xlu0 %1114 }
 0x98d   : >> { %1896 = vmatmul.mubr.msk.bf16.vlgmr.msra.gmra.mrb[0].mxu0 %vm819_vm4, %v1115_v28 }
 0xa60   : >> { %v1161_v31 = vpop.f32.mrb[0].mxu0 }
 0xa61   : >> { %v1167_v32 = vmul.f32 0.35355338, %v1161_v31  ;;  %v1897_v33 = vpop.f32.mrb[1].mxu0 }
 0xa62   : >> { %v1164_v34 = vpop.f32.mrb[2].mxu0 }
 0xa63   : >> { %v1898_v35 = vpop.f32.mrb[3].mxu0  ;;  %v1171_v36 = vsel %vm1170_vm11, %v1167_v32, -1e+30 }
 0xa64   : >> { %v1172_v37 = vsel %vm819_vm4, %v1171_v36, -inf }
 0xa65   : >> { %1173 = vmax.xlane.f32.xlu1 %v1172_v37 }
 0xa76   : >> { %1192 = vrot.lane.b32.xlu1 %v2243_v39, %s2803_s21 }
 0xaf2   : >> { %v1174_v40 = vpop.xlane.xlu1 %1173 }
 0xaf3   : >> { %v1175_v43 = vmax.f32 %v2758_v23, %v1174_v40  }
 0xaf5   : >> { %v1176_v44 = vsub.f32 %v2758_v23, %v1175_v43  ;;  %v1179_v45 = vsub.f32 %v1171_v36, %v1175_v43  ;;  %v3521_v23 = vmov %v1175_v43 }
 0xaf6   : >> { %v1193_v46 = vpop.permute.xlu1 %1192 }
 0xaf7   : >> { %v1180_v47 = vmul.f32 1.442695, %v1179_v45  ;;  %v1199_v48 = vsel %vm891_vm6, %v1193_v46, 0  ;;  %v1177_v52 = vmul.f32 1.442695, %v1176_v44 }
 0xaf8   : >> { %1900 = vmatpush3.bf16.msra.mxu1 %v1199_v48 }
 0xaf9   : >> { %2244 = vpow2.f32 %v1180_v47 }
 0xafa   : >> { %2246 = vpow2.f32 %v1177_v52 }
 0xb03   : >> { %v2245_v49 = vpop.eup %2244 }
 0xb04   : >> { %v1183_v50 = vsel %vm819_vm4, %v2245_v49, 0.0  ;;  %v1188_v51 = vpack.c.bf16 %v2245_v49, %v2245_v49  ;;  %v2247_v53 = vpop.eup %2246 }
 0xb05   : >> { %1184 = vadd.xlane.f32.xlu0 %v1183_v50  ;;  %v1182_v54 = vmul.f32 %v2754_v22, %v2247_v53  ;;  %v1187_v57 = vmul.f32 %v2750_v21, %v2247_v53 }
 0xb06   : >> { %1902 = vmatmul.mubr.msk.bf16.vlgmr.msra.gmra.mrb[0].mxu1 %vm819_vm4, %v1188_v51 }
 0xb92   : >> { %v1185_v55 = vpop.xlane.xlu0 %1184 }
 0xb93   : >> { %v1186_v56 = vadd.f32 %v1185_v55, %v1182_v54  }
 0xb95   : >> { %v3520_v22 = vmov %v1186_v56  ;;  %2248 = vrcp.f32 (%p1097_p4), %v1186_v56 }
 0xb9f   : > { %v2249_v0 = vpop.eup (%p1097_p4), %2248 }
 0xbd6   : > { %1100 = sbr.rel (!%p1097_p4) target bundleno = 2317 (0x90d), region = 212 }
 0xbd9   : >> { %v1235_v58 = vpop.f32.mrb[0].mxu1 }
 0xbda   : >> { %v1241_v59 = vadd.f32 %v1235_v58, %v1187_v57   ;;  %v1903_v60 = vpop.f32.mrb[1].mxu1 }
 0xbdb   : >> { %v1238_v62 = vpop.f32.mrb[2].mxu1 }
 0xbdc   : >> { %v1904_v63 = vpop.f32.mrb[3].mxu1  ;;  %v3519_v21 = vmov %v1241_v59  ;;  %v1243_v1 = vmul.f32 (%p1097_p4), %v2249_v0, %v1241_v59 }
 0xbde   : > { %1245 = vrot.lane.b32.xlu0 %v1243_v1, %s2804_s6 }
 0xc50   : > { %v1246_v2 = vpop.permute.xlu0 %1245 }
 0xc51   : > { %1249 = vst.msk [vmem:[#allocation4] sm:$0xff] %vm1248_vm12, %v1246_v2 }
 0xc52 LB: >> { %v2805_v6 = vmov 0.0   ;;  %vm2806_vm13 = vmmov 0   ;;  %s1802_s30 = sshll.u32 %s2778_s2, 3  ;;  %s2807_s20 = smov 104   ;;  %s2778_s2 = sphi %s3369_s2, %s1253_s2   ;;  %v2774_v5 = vphi %v3367_v5, %v3524_v5   ;;  %v2770_v4 = vphi %v3365_v4, %v3523_v4   ;;  %v2766_v3 = vphi %v3363_v3, %v3522_v3  }
 0xc53   : >> { %1905 = vmatprep.subr.bf16.mxu0 %v2805_v6  ;;  %1907 = vmatprep.mubr.msk.bf16.mxu0 %vm2806_vm13, %v2805_v6  ;;  %s1260_s22 = sshra.s32 %s1802_s30, 3  ;;  %v1323_v11 = vstv %s1802_s30  ;;  %s1253_s2 = sadd.s32 1, %s2778_s2  }
 0xc54   : >> { %1911 = vmatprep.subr.bf16.mxu1 %v2805_v6  ;;  %1913 = vmatprep.mubr.msk.bf16.mxu1 %vm2806_vm13, %v2805_v6  ;;  %s1803_s29 = sshll.u32 %s1260_s22, 2  ;;  %v1324_v12 = vadd.s32 %v1323_v11, %v3258_v42  ;;  %p1252_p11 = scmp.ge.s32.totalorder %s1253_s2, 1 }
 0xc55   : >> { %s1263_s28 = scalar_lea.vmem [#allocation2], %s1803_s29  ;;  %s1266_s11 = scalar_lea.vmem [#allocation3], %s1803_s29  ;;  %v2256_v46 = vld [vmem:[#allocation19] sm:$0xff] (%p1252_p11)   ;;  %v2257_v47 = vld [vmem:[#allocation19 + $0x8] sm:$0xff] (%p1252_p11)   ;;  %vm1403_vm15 = vcmask (%p1252_p11), 261312  }
 0xc56   : >> { %v2250_v7 = vld [vmem:[%s1263_s28] ss:$0 sps:$4 sm:$0xff]   ;;  %vm1325_vm14 = vcmp.le.s32.totalorder %v1324_v12, %v3256_v41  ;;  %s3525_s10 = sld [smem:[#allocation31_spill]] (%p1252_p11)  ;;  %s2808_s27 = smov (%p1252_p11), 24   ;;  %v1812_v51 = vld [vmem:[#allocation20] ss:$0 sm:$0xff] (%p1252_p11) }
 0xc57   : >> { %1274 = vrot.lane.b32.xlu0 %v2250_v7, %s2807_s20  ;;  %v2251_v21 = vld [vmem:[%s1266_s11] ss:$0 sps:$4 sm:$0xff]   ;;  %s1491_s25 = sshll.u32 (%p1252_p11), %s534_s19, 4  ;;  %s3526_s23 = sld [smem:[#allocation39_spill]] (%p1252_p11)  ;;  %s3410_s25 = int_to_ptr.vmem [resolvable:$true] %s1491_s25 }
 0xc58   : > { %s1477_s6 = scalar_lea.sflag (%p1252_p11), [#allocation7], %s3196_s4  ;;  %s2544_s2 = scalar_lea.vmem (%p1252_p11), %s3410_s25, 128 }
 0xc59   : > { %p2545_p5 = scmp.ne.s32.totalorder (%p1252_p11), %s3410_s25, %s2544_s2  ;;  %p3527_p7 = scmp.ne.s32.totalorder (%p1252_p11), %s3498_s3, 0 }
 0xc5a   : > { %s2809_s30 = smov (%p1252_p11), [#allocation22]  }
 0xc5b   : >> { %1269 = vrot.lane.b32.xlu0 %v3260_v61, %s2807_s20  ;;  %p2546_p2 = pnand (%p1252_p11), %p2545_p5, %p3527_p7  ;;  %s2548_s22 = sshll.u32 (%p1252_p11), %s2809_s30, 4  ;;  %s2549_s22 = int_to_ptr.vmem [resolvable:$false] %s2548_s22 }
 0xc5c   : > { %s1814_s26 = sshll.u32 (%p1252_p11), %s3525_s10, 7  ;;  %s2550_s29 = scalar_lea.vmem (%p1252_p11), %s2549_s22, 256 }
 0xc5d   : > { %s3408_s21 = scalar_lea.hbm (%p1252_p11), %s3526_s23, %s1814_s26  ;;  %p2547_p8 = pneg (%p1252_p11), %p2546_p2 }
 0xc5e   : > { %p2551_p9 = scmp.lt.s32.totalorder (%p1252_p11), %s3410_s25, %s2549_s22  ;;  %p2552_p1 = scmp.lt.s32.totalorder (%p1252_p11), %s2550_s29, %s2544_s2 }
 0xc60   : > { %p2553_p6 = por (%p1252_p11), %p2552_p1, %p2551_p9 }
 0xc62   : > { %p2554_p3 = pnand (%p1252_p11), %p2553_p6, %p2547_p8 }
 0xcc9   : >> { %v1275_v8 = vpop.permute.xlu0 %1274 }
 0xcca   : >> { %v1280_v9 = vsel %vm819_vm4, %v1275_v8, 0 }
 0xccb   : >> { %1906 = vmatpush3.bf16.xpose.msra.mxu0 %v1280_v9 }
 0xccc   : > { %1917 = vmatprep.subr.bf16.mxu0 (%p1252_p11), %v2793_v16 }
 0xccd   : >> { %v1270_v10 = vpop.permute.xlu0 %1269 }
 0xcd2   : >> { %1908 = vmatmul.mubr.msk.bf16.vlgmr.msra.gmra.mrb[0].mxu0 %vm819_vm4, %v1270_v10 }
 0xcd3   : > { %1921 = vmatprep.mubr.msk.bf16.mxu0 (%p1252_p11), %vm2794_vm1, %v2793_v16  ;;  %1918 = vmatpush3.bf16.msra.mxu0 (%p1252_p11), %v2256_v46 }
 0xcd4   : > { %1919 = vmatprep.subr.bf16.mxu0 (%p1252_p11), %v2793_v16 }
 0xcd7   : > { %1920 = vmatpush3.bf16.msra.mxu0 (%p1252_p11), %v2257_v47 }
 0xda5   : >> { %v1316_v13 = vpop.f32.mrb[0].mxu0 }
 0xda6   : >> { %v1322_v14 = vmul.f32 0.35355338, %v1316_v13  ;;  %v1909_v15 = vpop.f32.mrb[1].mxu0 }
 0xda7   : >> { %v1319_v17 = vpop.f32.mrb[2].mxu0 }
 0xda8   : >> { %v1910_v18 = vpop.f32.mrb[3].mxu0  ;;  %v1326_v19 = vsel %vm1325_vm14, %v1322_v14, -1e+30 }
 0xda9   : >> { %v1327_v20 = vsel %vm819_vm4, %v1326_v19, -inf }
 0xdaa   : >> { %1328 = vmax.xlane.f32.xlu1 %v1327_v20 }
 0xdbb   : >> { %1347 = vrot.lane.b32.xlu1 %v2251_v21, %s2807_s20 }
 0xe37   : >> { %v1329_v22 = vpop.xlane.xlu1 %1328 }
 0xe38   : >> { %v1330_v23 = vmax.f32 %v2774_v5, %v1329_v22  }
 0xe3a   : >> { %v1331_v24 = vsub.f32 %v2774_v5, %v1330_v23  ;;  %v1334_v25 = vsub.f32 %v1326_v19, %v1330_v23  ;;  %v3524_v5 = vmov %v1330_v23 }
 0xe3b   : >> { %v1348_v26 = vpop.permute.xlu1 %1347 }
 0xe3c   : >> { %v1335_v27 = vmul.f32 1.442695, %v1334_v25  ;;  %v1354_v28 = vsel %vm891_vm6, %v1348_v26, 0  ;;  %v1332_v32 = vmul.f32 1.442695, %v1331_v24 }
 0xe3d   : >> { %1912 = vmatpush3.bf16.msra.mxu1 %v1354_v28 }
 0xe3e   : >> { %2252 = vpow2.f32 %v1335_v27 }
 0xe3f   : >> { %2254 = vpow2.f32 %v1332_v32 }
 0xe48   : >> { %v2253_v29 = vpop.eup %2252 }
 0xe49   : >> { %v1338_v30 = vsel %vm819_vm4, %v2253_v29, 0.0  ;;  %v1343_v31 = vpack.c.bf16 %v2253_v29, %v2253_v29  ;;  %v2255_v33 = vpop.eup %2254 }
 0xe4a   : >> { %1339 = vadd.xlane.f32.xlu0 %v1338_v30  ;;  %v1337_v34 = vmul.f32 %v2770_v4, %v2255_v33  ;;  %v1342_v37 = vmul.f32 %v2766_v3, %v2255_v33 }
 0xe4b   : >> { %1914 = vmatmul.mubr.msk.bf16.vlgmr.msra.gmra.mrb[0].mxu1 %vm819_vm4, %v1343_v31 }
 0xed7   : >> { %v1340_v35 = vpop.xlane.xlu0 %1339 }
 0xed8   : >> { %v1341_v36 = vadd.f32 %v1340_v35, %v1337_v34  }
 0xeda   : >> { %v3523_v4 = vmov %v1341_v36  ;;  %2258 = vrcp.f32 (%p1252_p11), %v1341_v36 }
 0xee4   : > { %v2259_v48 = vpop.eup (%p1252_p11), %2258 }
 0xf1b   : > { %1255 = sbr.rel (!%p1252_p11) target bundleno = 3154 (0xc52), region = 223 }
 0xf1e   : >> { %v1390_v39 = vpop.f32.mrb[0].mxu1 }
 0xf1f   : >> { %v1396_v40 = vadd.f32 %v1390_v39, %v1342_v37   ;;  %v1915_v43 = vpop.f32.mrb[1].mxu1 }
 0xf20   : >> { %v1393_v44 = vpop.f32.mrb[2].mxu1 }
 0xf21   : >> { %v1916_v45 = vpop.f32.mrb[3].mxu1  ;;  %v3522_v3 = vmov %v1396_v40  ;;  %v1398_v49 = vmul.f32 (%p1252_p11), %v2259_v48, %v1396_v40 }
 0xf23   : > { %1400 = vrot.lane.b32.xlu0 %v1398_v49, %s2808_s27 }
 0xf95   : > { %v1401_v50 = vpop.permute.xlu0 %1400 }
 0xf96   : > { %1404 = vst.msk [vmem:[#allocation4] sm:$0xff] %vm1403_vm15, %v1401_v50 }
 0xf9d   : > { %v1405_v41 = vld [vmem:[#allocation4] sm:$0xff] }
 0xf9e   : > { %v1406_v42 = vpack.c.bf16 %v1405_v41, %v1405_v41 }
 0xfa0   : > { %1922 = vmatmul.mubr.msk.bf16.vlgmr.msra.gmra.mrb[0].mxu0 %vm543_vm0, %v1406_v42 }
0x1073   : > { %v1460_v61 = vpop.f32.mrb[0].mxu0 }
0x1074   : > { %v1466_v16 = vadd.f32 %v1460_v61, %v3251_v38  ;;  %v1923_v52 = vpop.f32.mrb[1].mxu0 }
0x1075   : > { %v1463_v53 = vpop.f32.mrb[2].mxu0 }
0x1076   : > { %v1474_v54 = vadd.f32 %v1812_v51, %v1466_v16  ;;  %v1924_v55 = vpop.f32.mrb[3].mxu0 }
0x1078   : > { %1475 = vst.msk [vmem:[%s534_s19] sm:$0xff] %vm543_vm0, %v1474_v54 }
0x1079   : > { %2557 = shalt.err (!%p2554_p3)
}
0x107a   : > { %s2558_s4 = scalar_lea.hbm %s3408_s21, 128  ;;  %s2562_s28 = scalar_lea.hbm %s3526_s23, 256 }
0x107b   : > { %p2559_p12 = scmp.ne.s32.totalorder %s3408_s21, %s2558_s4  ;;  %p2563_p13 = scmp.lt.u32.totalorder %s3408_s21, %s3526_s23 }
0x107c   : > { %p2564_p4 = scmp.lt.u32.totalorder %s2562_s28, %s2558_s4  ;;  %p2566_p5 = scmp.lt.u32.totalorder %s2558_s4, %s3408_s21 }
0x107d   : > { %p2560_p0 = pnand %p2559_p12, %p3527_p7 }
0x107e   : > { %p2565_p11 = por %p2564_p4, %p2563_p13 }
0x107f   : > { %p2561_p10 = pneg %p2560_p0 }
0x1080   : > { %p2567_p2 = por %p2566_p5, %p2565_p11 }
0x1082   : > { %p2568_p8 = pnand %p2567_p2, %p2561_p10 }
0x1084   : > { %2571 = shalt.err (!%p2568_p8)
}
0x1085   : > { %1961 = dma.vmem_to_hbm [thread:$0]  (%p3527_p7), %s3410_s25, 128, %s3408_s21, %s1477_s6  }
0x1086 PF: > { %s1503_s10 = sand.u32 1, %s2694_s13   ;;  %p3528_p9 = scmp.ne.s32.totalorder %s3499_s7, 0 }
0x1087   : > { %p3529_p1 = scmp.ge.s32.totalorder %s2714_s18, 2  ;;  %s1504_s27 = scalar_lea.sflag [#allocation7], %s1503_s10 }
0x1089   : > { %p1996_p6 = pnand %p3529_p1, %p3528_p9 }
0x108b   : > { %2689 = dma.done.wait (!%p1996_p6), %s1504_s27, 128  }
0x108c   : > { %2691 = vsyncadd (!%p1996_p6), %s1504_s27, 4294967168  ;;  %s33_s18 = sadd.s32 1, %s2714_s18   ;;  %s3530_s3 = smov %s3537_s16 }
0x108d   : > { %p30_p3 = scmp.ge.s32.totalorder %s33_s18, 4   ;;  %s3531_s13 = smov %s2698_s14 }
0x108e   : > { %s3532_s14 = smov %s2702_s15  ;;  %s3533_s15 = smov %s3117_s5 }
0x108f   : > { %s3534_s16 = smov %s2710_s17  ;;  %s3535_s17 = smov %s3530_s3 }
0x1090   :  { %32 = sbr.rel (!%p30_p3) target bundleno = 21 (0x15), region = 234 }
0x1097   :  { %1509 = vsyncpa [#allocation6], 1 }
0x1098   :  { %1511 = vsyncpa [#allocation6 + $0x1], 1 }
0x1099   :  { %1512 = vsyncpa [#allocation9], 1 }
0x109a   :  { %1514 = vsyncpa [#allocation9 + $0x1], 1 }
0x109b   :  { %1515 = vsyncpa [#allocation12], 1 }
0x109c   :  { %1516 = vsyncpa [#allocation15], 1 }
0x109d   :  { %1517 = vsyncpa [#allocation18], 1 }
0x109e   :  { %1518 = vsyncpa [#allocation21], 1 }
0x109f   :  { %1519 = vsyncpa [#allocation7], 1 }
0x10a0   :  { %1521 = vsyncpa [#allocation7 + $0x1], 1 }

</bundles_post_ra>
